<compile_context>
chip_gen: v5e
topology: v5e:2x2
jax: 0.10.0
libtpu: 0.0.40
codegen_flags: <defaults>
</compile_context>

<pallas_src>
import functools

import jax
import jax.numpy as jnp
import numpy as np
from jax import lax
from jax.experimental import pallas as pl
from jax.experimental.pallas import tpu as pltpu

BN_EPS = 1e-5
EXPANSION = 2
LANE = 128


def _round_up(x, m):
    return (x + m - 1) // m * m


def _pick_row_tile(hout, wout, target_rows=128):
    """Largest divisor of Hout such that th*Wout stays near the target M tile."""
    limit = max(1, target_rows // max(1, wout))
    th = 1
    for cand in range(1, hout + 1):
        if hout % cand == 0 and cand <= limit:
            th = cand
    return th


def _fold_params(params):
    """Fold BN scale into conv weights (bf16); return f32 shifts as biases."""
    w1, s1, b1, w2, s2, b2, w3, s3, b3 = params
    w1f = (w1 * s1).astype(jnp.bfloat16)                       # (Cin, Cb)
    w2f = (w2 * s2.reshape(1, 1, 1, -1)).astype(jnp.bfloat16)  # (3,3,Cb,Cb)
    w3f = (w3 * s3).astype(jnp.bfloat16)                       # (Cb, Cp)
    return (w1f, b1.astype(jnp.float32), w2f, b2.astype(jnp.float32),
            w3f, b3.astype(jnp.float32))


# --------------------------------- kernel ---------------------------------
def _bottleneck_kernel(
    x_ref, res_ref,
    w1_ref, b1_ref, w2_ref, b2_ref, w3_ref, b3_ref,
    o_ref,
    pad_ref, col_ref,
    *, H, W, Cin_p, Cb_p, Cp_p, Wout, th, stride, dilation,
):
    d = dilation
    t = pl.program_id(1)
    rows = th * Wout
    Wp = W + 2 * d

    # -------- per-frame work (only on the first row-tile of each image) -----
    @pl.when(t == 0)
    def _():
        # Zero only the halo border; the interior is fully overwritten below.
        zrow = jnp.zeros((d, Wp, Cb_p), pad_ref.dtype)
        zcol = jnp.zeros((H + 2 * d, d, Cb_p), pad_ref.dtype)
        pad_ref[0:d, :, :] = zrow
        pad_ref[d + H:2 * d + H, :, :] = zrow
        pad_ref[:, 0:d, :] = zcol
        pad_ref[:, d + W:2 * d + W, :] = zcol

        # conv1 (1x1) + bn1 + relu over the whole frame, streamed in row
        # chunks to bound the live f32 accumulator, stored as bf16.
        c1 = min(H, max(1, 1024 // max(1, W)))
        for r0 in range(0, H, c1):
            rr = min(c1, H - r0)
            xm = x_ref[0, r0:r0 + rr, :, :].reshape(rr * W, Cin_p)
            h1 = jnp.dot(xm, w1_ref[...], preferred_element_type=jnp.float32)
            h1 = jnp.maximum(h1 + b1_ref[...], 0.0)
            pad_ref[d + r0:d + r0 + rr, d:d + W, :] = (
                h1.reshape(rr, W, Cb_p).astype(pad_ref.dtype))

    # -------- per-tile: conv2 (3x3, stride/dilation) via im2col + 1 matmul --
    row0 = pl.multiple_of(t * (th * stride), th * stride)   # tile start, padded coords
    win_h = (th - 1) * stride + 1
    win_w = (Wout - 1) * stride + 1
    for idx in range(9):
        ky, kx = divmod(idx, 3)
        if stride == 1:
            tap = pad_ref[pl.ds(row0 + ky * d, th), pl.ds(kx * d, Wout), :]
        else:
            # TODO(synk): for stride>1, pre-split W into even/odd phases once
            # per frame to avoid per-tap strided sublane gathers.
            tap = pad_ref[pl.ds(row0 + ky * d, win_h), pl.ds(kx * d, win_w), :]
            tap = tap[::stride, ::stride, :]
        col_ref[:, idx * Cb_p:(idx + 1) * Cb_p] = tap.reshape(rows, Cb_p)

    acc2 = jnp.dot(col_ref[...], w2_ref[...], preferred_element_type=jnp.float32)
    h2 = jnp.maximum(acc2 + b2_ref[...], 0.0)                 # (rows, Cb_p) f32

    # -------- conv3 (1x1) + bn3 + residual + relu ---------------------------
    h3 = jnp.dot(h2.astype(w3_ref.dtype), w3_ref[...],
                 preferred_element_type=jnp.float32)
    h3 = h3 + b3_ref[...]
    out = h3.reshape(th, Wout, Cp_p) + res_ref[0]
    o_ref[0] = jnp.maximum(out, 0.0).astype(o_ref.dtype)


# --------------------------------- wrapper ---------------------------------
def bottleneck_pallas(x_nchw, residual_nchw, params, *, stride=1, dilation=1):
    """Bottleneck forward. Inputs/outputs are NCHW float32.

    `residual` must already have shape (N, planes, Hout, Wout) (i.e. be the
    projected/downsampled residual when stride > 1 or planes != inplanes).
    If `residual_nchw` is None, the input is used (as in the PyTorch module).
    """
    assert stride >= 1 and dilation >= 1
    if residual_nchw is None:
        residual_nchw = x_nchw
    N, Cin, H, W = x_nchw.shape
    w1f, b1, w2f, b2, w3f, b3 = _fold_params(params)
    Cb = w1f.shape[1]
    Cp = w3f.shape[1]
    Hout = (H - 1) // stride + 1
    Wout = (W - 1) // stride + 1
    assert residual_nchw.shape == (N, Cp, Hout, Wout), (
        "residual must already be projected to (N, planes, Hout, Wout)")

    Cin_p = _round_up(Cin, LANE)
    Cb_p = _round_up(Cb, LANE)
    Cp_p = _round_up(Cp, LANE)
    d = dilation
    th = _pick_row_tile(Hout, Wout)
    T = Hout // th

    # Layout glue: NCHW -> NHWC, lane-dense channel padding, bf16 activations.
    x = jnp.transpose(x_nchw, (0, 2, 3, 1)).astype(jnp.bfloat16)
    x = jnp.pad(x, ((0, 0), (0, 0), (0, 0), (0, Cin_p - Cin)))
    res = jnp.transpose(residual_nchw, (0, 2, 3, 1)).astype(jnp.float32)
    res = jnp.pad(res, ((0, 0), (0, 0), (0, 0), (0, Cp_p - Cp)))

    # Weights: BN folded in, zero-padded to lane-dense, bf16; biases f32.
    w1p = jnp.pad(w1f, ((0, Cin_p - Cin), (0, Cb_p - Cb)))
    b1p = jnp.pad(b1, ((0, 0), (0, Cb_p - Cb)))
    w2p = jnp.pad(w2f, ((0, 0), (0, 0), (0, Cb_p - Cb), (0, Cb_p - Cb)))
    w2p = w2p.reshape(9 * Cb_p, Cb_p)        # row = (ky*3+kx)*Cb_p + cin
    b2p = jnp.pad(b2, ((0, 0), (0, Cb_p - Cb)))
    w3p = jnp.pad(w3f, ((0, Cb_p - Cb), (0, Cp_p - Cp)))
    b3p = jnp.pad(b3, ((0, 0), (0, Cp_p - Cp)))

    kernel = functools.partial(
        _bottleneck_kernel,
        H=H, W=W, Cin_p=Cin_p, Cb_p=Cb_p, Cp_p=Cp_p,
        Wout=Wout, th=th, stride=stride, dilation=dilation,
    )

    def const(shape):
        return pl.BlockSpec(shape, lambda n, t: (0,) * len(shape))

    out_p = pl.pallas_call(
        kernel,
        out_shape=jax.ShapeDtypeStruct((N, Hout, Wout, Cp_p), jnp.float32),
        grid_spec=pltpu.PrefetchScalarGridSpec(
            num_scalar_prefetch=0,
            grid=(N, T),
            in_specs=[
                pl.BlockSpec((1, H, W, Cin_p), lambda n, t: (n, 0, 0, 0)),
                pl.BlockSpec((1, th, Wout, Cp_p), lambda n, t: (n, t, 0, 0)),
                const(w1p.shape), const(b1p.shape),
                const(w2p.shape), const(b2p.shape),
                const(w3p.shape), const(b3p.shape),
            ],
            out_specs=pl.BlockSpec((1, th, Wout, Cp_p), lambda n, t: (n, t, 0, 0)),
            scratch_shapes=[
                pltpu.VMEM((H + 2 * d, W + 2 * d, Cb_p), jnp.bfloat16),  # padded h1
                pltpu.VMEM((th * Wout, 9 * Cb_p), jnp.bfloat16),         # im2col
            ],
        ),
        compiler_params=pltpu.CompilerParams(
            dimension_semantics=("parallel", "arbitrary"),
            vmem_limit_bytes=32 * 1024 * 1024,
        ),
    )(x, res, w1p, b1p, w2p, b2p, w3p, b3p)

    out = out_p[..., :Cp]
    return jnp.transpose(out, (0, 3, 1, 2))          # back to NCHW


# --------------------------- reference (plain JAX) ---------------------------
def bottleneck_ref(x_nchw, residual_nchw, params, *, stride=1, dilation=1):
    """Emulates the kernel arithmetic: bf16 conv inputs, f32 accumulation."""
    w1f, b1, w2f, b2, w3f, b3 = _fold_params(params)
    d = dilation
    x = jnp.transpose(x_nchw, (0, 2, 3, 1)).astype(jnp.bfloat16)
    res = jnp.transpose(residual_nchw, (0, 2, 3, 1)).astype(jnp.float32)
    dn = ("NHWC", "HWIO", "NHWC")

    h = lax.conv_general_dilated(
        x, w1f[None, None], (1, 1), [(0, 0), (0, 0)],
        dimension_numbers=dn, preferred_element_type=jnp.float32)
    h = jnp.maximum(h + b1, 0.0).astype(jnp.bfloat16)
    h = lax.conv_general_dilated(
        h, w2f, (stride, stride), [(d, d), (d, d)], rhs_dilation=(d, d),
        dimension_numbers=dn, preferred_element_type=jnp.float32)
    h = jnp.maximum(h + b2, 0.0).astype(jnp.bfloat16)
    h = lax.conv_general_dilated(
        h, w3f[None, None], (1, 1), [(0, 0), (0, 0)],
        dimension_numbers=dn, preferred_element_type=jnp.float32)
    h = h + b3
    out = jnp.maximum(h + res, 0.0)
    return jnp.transpose(out, (0, 3, 1, 2))


# ------------------------------ parameter setup ------------------------------
def make_params(key, inplanes, planes):
    bottle = planes // EXPANSION
    ks = jax.random.split(key, 12)

    def bn_fold(kg, kb, km, kv, c):
        gamma = 1.0 + 0.1 * jax.random.normal(kg, (c,), jnp.float32)
        beta = 0.1 * jax.random.normal(kb, (c,), jnp.float32)
        mean = 0.1 * jax.random.normal(km, (c,), jnp.float32)
        var = jnp.abs(jax.random.normal(kv, (c,), jnp.float32)) + 0.5
        scale = gamma / jnp.sqrt(var + BN_EPS)
        shift = beta - mean * scale
        return scale.reshape(1, c), shift.reshape(1, c)

    # conv weights stored as (Cin, Cout) / (3, 3, Cin, Cout)  [HWIO]
    w1 = 0.2 * jax.random.normal(ks[0], (inplanes, bottle), jnp.float32)
    w2 = 0.2 * jax.random.normal(ks[1], (3, 3, bottle, bottle), jnp.float32)
    w3 = 0.2 * jax.random.normal(ks[2], (bottle, planes), jnp.float32)
    s1, b1 = bn_fold(ks[3], ks[4], ks[5], ks[6], bottle)
    s2, b2 = bn_fold(ks[7], ks[8], ks[9], ks[10], bottle)
    s3, b3 = bn_fold(ks[11], ks[11], ks[3], ks[4], planes)
    return (w1, s1, b1, w2, s2, b2, w3, s3, b3)


if __name__ == "__main__":
    N, C, H, W = 2, 4, 16, 16          # inplanes == planes == 4, stride == 1
    inplanes = planes = C
    stride, dilation = 1, 1

    key = jax.random.PRNGKey(0)
    kx, kp = jax.random.split(key)
    x = jax.random.normal(kx, (N, C, H, W), jnp.float32)
    params = make_params(kp, inplanes, planes)

    # residual defaults to the input (as in the PyTorch module)
    out = bottleneck_pallas(x, None, params, stride=stride, dilation=dilation)
    out = jax.block_until_ready(out)

    ref = bottleneck_ref(x, x, params, stride=stride, dilation=dilation)
    np.testing.assert_allclose(np.asarray(out), np.asarray(ref),
                               rtol=1e-2, atol=1e-2)
    print("KERNEL_OK")
</pallas_src>

<mosaic_0001>
module attributes {stable_mosaic.version = 11 : i64} {
  func.func @_bottleneck_kernel(%arg0: i32, %arg1: i32, %arg2: memref<1x16x16x128xbf16, #tpu.memory_space<vmem>>, %arg3: memref<1x8x16x128xf32, #tpu.memory_space<vmem>>, %arg4: memref<128x128xbf16, #tpu.memory_space<vmem>>, %arg5: memref<1x128xf32, #tpu.memory_space<vmem>>, %arg6: memref<1152x128xbf16, #tpu.memory_space<vmem>>, %arg7: memref<1x128xf32, #tpu.memory_space<vmem>>, %arg8: memref<128x128xbf16, #tpu.memory_space<vmem>>, %arg9: memref<1x128xf32, #tpu.memory_space<vmem>>, %arg10: memref<1x8x16x128xf32, #tpu.memory_space<vmem>>, %arg11: memref<18x18x128xbf16, #tpu.memory_space<vmem>>, %arg12: memref<128x1152xbf16, #tpu.memory_space<vmem>>) attributes {dimension_semantics = [#tpu.dimension_semantics<parallel>, #tpu.dimension_semantics<arbitrary>], iteration_bounds = array<i64: 2, 2>, scalar_prefetch = 0 : i64, scratch_operands = 2 : i64, tpu.core_type = #tpu.core_type<tc>, window_params = [{transform_indices = @transform_0, window_bounds = array<i64: 1, 16, 16, 128>}, {transform_indices = @transform_1, window_bounds = array<i64: 1, 8, 16, 128>}, {pipeline_mode = #tpu.pipeline_mode<synchronous>, transform_indices = @transform_2, window_bounds = array<i64: 128, 128>}, {pipeline_mode = #tpu.pipeline_mode<synchronous>, transform_indices = @transform_3, window_bounds = array<i64: 1, 128>}, {pipeline_mode = #tpu.pipeline_mode<synchronous>, transform_indices = @transform_4, window_bounds = array<i64: 1152, 128>}, {pipeline_mode = #tpu.pipeline_mode<synchronous>, transform_indices = @transform_5, window_bounds = array<i64: 1, 128>}, {pipeline_mode = #tpu.pipeline_mode<synchronous>, transform_indices = @transform_6, window_bounds = array<i64: 128, 128>}, {pipeline_mode = #tpu.pipeline_mode<synchronous>, transform_indices = @transform_7, window_bounds = array<i64: 1, 128>}, {transform_indices = @transform_8, window_bounds = array<i64: 1, 8, 16, 128>}]} {
    %c0_i32 = arith.constant 0 : i32
    %0 = arith.cmpi eq, %arg1, %c0_i32 : i32
    %1 = arith.extui %0 : i1 to i32
    %c0_i32_0 = arith.constant 0 : i32
    %2 = arith.cmpi ne, %1, %c0_i32_0 : i32
    scf.if %2 {
      %cst_54 = arith.constant 0.000000e+00 : bf16
      %73 = vector.broadcast %cst_54 : bf16 to vector<1x18x128xbf16>
      %cst_55 = arith.constant 0.000000e+00 : bf16
      %74 = vector.broadcast %cst_55 : bf16 to vector<18x1x128xbf16>
      %c0_56 = arith.constant 0 : index
      %c0_57 = arith.constant 0 : index
      %c0_58 = arith.constant 0 : index
      %75 = vector.load %arg11[%c0_56, %c0_57, %c0_58] : memref<18x18x128xbf16, #tpu.memory_space<vmem>>, vector<1x18x128xbf16>
      tpu.vector_store %arg11[%c0_56, %c0_57, %c0_58], %73 {strides = array<i32>} : memref<18x18x128xbf16, #tpu.memory_space<vmem>>, vector<1x18x128xbf16>,
      %c17 = arith.constant 17 : index
      %c0_59 = arith.constant 0 : index
      %c0_60 = arith.constant 0 : index
      %76 = vector.load %arg11[%c17, %c0_59, %c0_60] : memref<18x18x128xbf16, #tpu.memory_space<vmem>>, vector<1x18x128xbf16>
      tpu.vector_store %arg11[%c17, %c0_59, %c0_60], %73 {strides = array<i32>} : memref<18x18x128xbf16, #tpu.memory_space<vmem>>, vector<1x18x128xbf16>,
      %c0_61 = arith.constant 0 : index
      %c0_62 = arith.constant 0 : index
      %c0_63 = arith.constant 0 : index
      %77 = vector.load %arg11[%c0_61, %c0_62, %c0_63] : memref<18x18x128xbf16, #tpu.memory_space<vmem>>, vector<18x1x128xbf16>
      tpu.vector_store %arg11[%c0_61, %c0_62, %c0_63], %74 {strides = array<i32>} : memref<18x18x128xbf16, #tpu.memory_space<vmem>>, vector<18x1x128xbf16>,
      %c0_64 = arith.constant 0 : index
      %c17_65 = arith.constant 17 : index
      %c0_66 = arith.constant 0 : index
      %78 = vector.load %arg11[%c0_64, %c17_65, %c0_66] : memref<18x18x128xbf16, #tpu.memory_space<vmem>>, vector<18x1x128xbf16>
      tpu.vector_store %arg11[%c0_64, %c17_65, %c0_66], %74 {strides = array<i32>} : memref<18x18x128xbf16, #tpu.memory_space<vmem>>, vector<18x1x128xbf16>,
      %c0_67 = arith.constant 0 : index
      %c0_68 = arith.constant 0 : index
      %c0_69 = arith.constant 0 : index
      %c0_70 = arith.constant 0 : index
      %79 = vector.load %arg2[%c0_67, %c0_68, %c0_69, %c0_70] : memref<1x16x16x128xbf16, #tpu.memory_space<vmem>>, vector<1x16x16x128xbf16>
      %80 = vector.shape_cast %79 : vector<1x16x16x128xbf16> to vector<16x16x128xbf16>
      %81 = vector.shape_cast %80 : vector<16x16x128xbf16> to vector<256x128xbf16>
      %c0_71 = arith.constant 0 : index
      %c0_72 = arith.constant 0 : index
      %82 = vector.load %arg4[%c0_71, %c0_72] : memref<128x128xbf16, #tpu.memory_space<vmem>>, vector<128x128xbf16>
      %cst_73 = arith.constant dense<0.000000e+00> : vector<256x128xf32>
      %83 = tpu.matmul %81, %82, %cst_73 {dimension_numbers = #tpu.dot_dimension_numbers<[1], [0], [0], [1], [0, 0, 1, 1], [], []>} : vector<256x128xbf16>, vector<128x128xbf16>, vector<256x128xf32> -> vector<256x128xf32>
      %c0_74 = arith.constant 0 : index
      %c0_75 = arith.constant 0 : index
      %84 = vector.load %arg5[%c0_74, %c0_75] : memref<1x128xf32, #tpu.memory_space<vmem>>, vector<1x128xf32>
      %85 = vector.broadcast %84 : vector<1x128xf32> to vector<256x128xf32>
      %86 = arith.addf %83, %85 : vector<256x128xf32>
      %cst_76 = arith.constant 0.000000e+00 : f32
      %87 = vector.broadcast %cst_76 : f32 to vector<256x128xf32>
      %88 = arith.maximumf %86, %87 : vector<256x128xf32>
      %89 = vector.shape_cast %88 : vector<256x128xf32> to vector<16x16x128xf32>
      %90 = arith.truncf %89 : vector<16x16x128xf32> to vector<16x16x128xbf16>
      %c1_77 = arith.constant 1 : index
      %c1_78 = arith.constant 1 : index
      %c0_79 = arith.constant 0 : index
      %91 = vector.load %arg11[%c1_77, %c1_78, %c0_79] : memref<18x18x128xbf16, #tpu.memory_space<vmem>>, vector<16x16x128xbf16>
      tpu.vector_store %arg11[%c1_77, %c1_78, %c0_79], %90 {strides = array<i32>} : memref<18x18x128xbf16, #tpu.memory_space<vmem>>, vector<16x16x128xbf16>,
    } else {
    }
    %c8_i32 = arith.constant 8 : i32
    %3 = arith.muli %arg1, %c8_i32 : i32
    %4 = tpu.assume_multiple %3, 8 : i32
    %c0_i32_1 = arith.constant 0 : i32
    %5 = arith.addi %4, %c0_i32_1 : i32
    %6 = arith.index_cast %5 : i32 to index
    %c0 = arith.constant 0 : index
    %c0_2 = arith.constant 0 : index
    %7 = vector.load %arg11[%6, %c0, %c0_2] : memref<18x18x128xbf16, #tpu.memory_space<vmem>>, vector<8x16x128xbf16>
    %8 = vector.shape_cast %7 : vector<8x16x128xbf16> to vector<128x128xbf16>
    %c0_3 = arith.constant 0 : index
    %c0_4 = arith.constant 0 : index
    %9 = vector.load %arg12[%c0_3, %c0_4] : memref<128x1152xbf16, #tpu.memory_space<vmem>>, vector<128x128xbf16>
    tpu.vector_store %arg12[%c0_3, %c0_4], %8 {strides = array<i32>} : memref<128x1152xbf16, #tpu.memory_space<vmem>>, vector<128x128xbf16>,
    %c0_i32_5 = arith.constant 0 : i32
    %10 = arith.addi %4, %c0_i32_5 : i32
    %11 = arith.index_cast %10 : i32 to index
    %c1 = arith.constant 1 : index
    %c0_6 = arith.constant 0 : index
    %12 = vector.load %arg11[%11, %c1, %c0_6] : memref<18x18x128xbf16, #tpu.memory_space<vmem>>, vector<8x16x128xbf16>
    %13 = vector.shape_cast %12 : vector<8x16x128xbf16> to vector<128x128xbf16>
    %c0_7 = arith.constant 0 : index
    %c128 = arith.constant 128 : index
    %14 = vector.load %arg12[%c0_7, %c128] : memref<128x1152xbf16, #tpu.memory_space<vmem>>, vector<128x128xbf16>
    tpu.vector_store %arg12[%c0_7, %c128], %13 {strides = array<i32>} : memref<128x1152xbf16, #tpu.memory_space<vmem>>, vector<128x128xbf16>,
    %c0_i32_8 = arith.constant 0 : i32
    %15 = arith.addi %4, %c0_i32_8 : i32
    %16 = arith.index_cast %15 : i32 to index
    %c2 = arith.constant 2 : index
    %c0_9 = arith.constant 0 : index
    %17 = vector.load %arg11[%16, %c2, %c0_9] : memref<18x18x128xbf16, #tpu.memory_space<vmem>>, vector<8x16x128xbf16>
    %18 = vector.shape_cast %17 : vector<8x16x128xbf16> to vector<128x128xbf16>
    %c0_10 = arith.constant 0 : index
    %c256 = arith.constant 256 : index
    %19 = vector.load %arg12[%c0_10, %c256] : memref<128x1152xbf16, #tpu.memory_space<vmem>>, vector<128x128xbf16>
    tpu.vector_store %arg12[%c0_10, %c256], %18 {strides = array<i32>} : memref<128x1152xbf16, #tpu.memory_space<vmem>>, vector<128x128xbf16>,
    %c1_i32 = arith.constant 1 : i32
    %20 = arith.addi %4, %c1_i32 : i32
    %21 = arith.index_cast %20 : i32 to index
    %c0_11 = arith.constant 0 : index
    %c0_12 = arith.constant 0 : index
    %22 = vector.load %arg11[%21, %c0_11, %c0_12] : memref<18x18x128xbf16, #tpu.memory_space<vmem>>, vector<8x16x128xbf16>
    %23 = vector.shape_cast %22 : vector<8x16x128xbf16> to vector<128x128xbf16>
    %c0_13 = arith.constant 0 : index
    %c384 = arith.constant 384 : index
    %24 = vector.load %arg12[%c0_13, %c384] : memref<128x1152xbf16, #tpu.memory_space<vmem>>, vector<128x128xbf16>
    tpu.vector_store %arg12[%c0_13, %c384], %23 {strides = array<i32>} : memref<128x1152xbf16, #tpu.memory_space<vmem>>, vector<128x128xbf16>,
    %c1_i32_14 = arith.constant 1 : i32
    %25 = arith.addi %4, %c1_i32_14 : i32
    %26 = arith.index_cast %25 : i32 to index
    %c1_15 = arith.constant 1 : index
    %c0_16 = arith.constant 0 : index
    %27 = vector.load %arg11[%26, %c1_15, %c0_16] : memref<18x18x128xbf16, #tpu.memory_space<vmem>>, vector<8x16x128xbf16>
    %28 = vector.shape_cast %27 : vector<8x16x128xbf16> to vector<128x128xbf16>
    %c0_17 = arith.constant 0 : index
    %c512 = arith.constant 512 : index
    %29 = vector.load %arg12[%c0_17, %c512] : memref<128x1152xbf16, #tpu.memory_space<vmem>>, vector<128x128xbf16>
    tpu.vector_store %arg12[%c0_17, %c512], %28 {strides = array<i32>} : memref<128x1152xbf16, #tpu.memory_space<vmem>>, vector<128x128xbf16>,
    %c1_i32_18 = arith.constant 1 : i32
    %30 = arith.addi %4, %c1_i32_18 : i32
    %31 = arith.index_cast %30 : i32 to index
    %c2_19 = arith.constant 2 : index
    %c0_20 = arith.constant 0 : index
    %32 = vector.load %arg11[%31, %c2_19, %c0_20] : memref<18x18x128xbf16, #tpu.memory_space<vmem>>, vector<8x16x128xbf16>
    %33 = vector.shape_cast %32 : vector<8x16x128xbf16> to vector<128x128xbf16>
    %c0_21 = arith.constant 0 : index
    %c640 = arith.constant 640 : index
    %34 = vector.load %arg12[%c0_21, %c640] : memref<128x1152xbf16, #tpu.memory_space<vmem>>, vector<128x128xbf16>
    tpu.vector_store %arg12[%c0_21, %c640], %33 {strides = array<i32>} : memref<128x1152xbf16, #tpu.memory_space<vmem>>, vector<128x128xbf16>,
    %c2_i32 = arith.constant 2 : i32
    %35 = arith.addi %4, %c2_i32 : i32
    %36 = arith.index_cast %35 : i32 to index
    %c0_22 = arith.constant 0 : index
    %c0_23 = arith.constant 0 : index
    %37 = vector.load %arg11[%36, %c0_22, %c0_23] : memref<18x18x128xbf16, #tpu.memory_space<vmem>>, vector<8x16x128xbf16>
    %38 = vector.shape_cast %37 : vector<8x16x128xbf16> to vector<128x128xbf16>
    %c0_24 = arith.constant 0 : index
    %c768 = arith.constant 768 : index
    %39 = vector.load %arg12[%c0_24, %c768] : memref<128x1152xbf16, #tpu.memory_space<vmem>>, vector<128x128xbf16>
    tpu.vector_store %arg12[%c0_24, %c768], %38 {strides = array<i32>} : memref<128x1152xbf16, #tpu.memory_space<vmem>>, vector<128x128xbf16>,
    %c2_i32_25 = arith.constant 2 : i32
    %40 = arith.addi %4, %c2_i32_25 : i32
    %41 = arith.index_cast %40 : i32 to index
    %c1_26 = arith.constant 1 : index
    %c0_27 = arith.constant 0 : index
    %42 = vector.load %arg11[%41, %c1_26, %c0_27] : memref<18x18x128xbf16, #tpu.memory_space<vmem>>, vector<8x16x128xbf16>
    %43 = vector.shape_cast %42 : vector<8x16x128xbf16> to vector<128x128xbf16>
    %c0_28 = arith.constant 0 : index
    %c896 = arith.constant 896 : index
    %44 = vector.load %arg12[%c0_28, %c896] : memref<128x1152xbf16, #tpu.memory_space<vmem>>, vector<128x128xbf16>
    tpu.vector_store %arg12[%c0_28, %c896], %43 {strides = array<i32>} : memref<128x1152xbf16, #tpu.memory_space<vmem>>, vector<128x128xbf16>,
    %c2_i32_29 = arith.constant 2 : i32
    %45 = arith.addi %4, %c2_i32_29 : i32
    %46 = arith.index_cast %45 : i32 to index
    %c2_30 = arith.constant 2 : index
    %c0_31 = arith.constant 0 : index
    %47 = vector.load %arg11[%46, %c2_30, %c0_31] : memref<18x18x128xbf16, #tpu.memory_space<vmem>>, vector<8x16x128xbf16>
    %48 = vector.shape_cast %47 : vector<8x16x128xbf16> to vector<128x128xbf16>
    %c0_32 = arith.constant 0 : index
    %c1024 = arith.constant 1024 : index
    %49 = vector.load %arg12[%c0_32, %c1024] : memref<128x1152xbf16, #tpu.memory_space<vmem>>, vector<128x128xbf16>
    tpu.vector_store %arg12[%c0_32, %c1024], %48 {strides = array<i32>} : memref<128x1152xbf16, #tpu.memory_space<vmem>>, vector<128x128xbf16>,
    %c0_33 = arith.constant 0 : index
    %c0_34 = arith.constant 0 : index
    %50 = vector.load %arg12[%c0_33, %c0_34] : memref<128x1152xbf16, #tpu.memory_space<vmem>>, vector<128x1152xbf16>
    %c0_35 = arith.constant 0 : index
    %c0_36 = arith.constant 0 : index
    %51 = vector.load %arg6[%c0_35, %c0_36] : memref<1152x128xbf16, #tpu.memory_space<vmem>>, vector<1152x128xbf16>
    %cst = arith.constant dense<0.000000e+00> : vector<128x128xf32>
    %52 = tpu.matmul %50, %51, %cst {dimension_numbers = #tpu.dot_dimension_numbers<[1], [0], [0], [1], [0, 0, 1, 1], [], []>} : vector<128x1152xbf16>, vector<1152x128xbf16>, vector<128x128xf32> -> vector<128x128xf32>
    %c0_37 = arith.constant 0 : index
    %c0_38 = arith.constant 0 : index
    %53 = vector.load %arg7[%c0_37, %c0_38] : memref<1x128xf32, #tpu.memory_space<vmem>>, vector<1x128xf32>
    %54 = vector.broadcast %53 : vector<1x128xf32> to vector<128x128xf32>
    %55 = arith.addf %52, %54 : vector<128x128xf32>
    %cst_39 = arith.constant 0.000000e+00 : f32
    %56 = vector.broadcast %cst_39 : f32 to vector<128x128xf32>
    %57 = arith.maximumf %55, %56 : vector<128x128xf32>
    %58 = arith.truncf %57 : vector<128x128xf32> to vector<128x128xbf16>
    %c0_40 = arith.constant 0 : index
    %c0_41 = arith.constant 0 : index
    %59 = vector.load %arg8[%c0_40, %c0_41] : memref<128x128xbf16, #tpu.memory_space<vmem>>, vector<128x128xbf16>
    %cst_42 = arith.constant dense<0.000000e+00> : vector<128x128xf32>
    %60 = tpu.matmul %58, %59, %cst_42 {dimension_numbers = #tpu.dot_dimension_numbers<[1], [0], [0], [1], [0, 0, 1, 1], [], []>} : vector<128x128xbf16>, vector<128x128xbf16>, vector<128x128xf32> -> vector<128x128xf32>
    %c0_43 = arith.constant 0 : index
    %c0_44 = arith.constant 0 : index
    %61 = vector.load %arg9[%c0_43, %c0_44] : memref<1x128xf32, #tpu.memory_space<vmem>>, vector<1x128xf32>
    %62 = vector.broadcast %61 : vector<1x128xf32> to vector<128x128xf32>
    %63 = arith.addf %60, %62 : vector<128x128xf32>
    %64 = vector.shape_cast %63 : vector<128x128xf32> to vector<8x16x128xf32>
    %c0_45 = arith.constant 0 : index
    %c0_46 = arith.constant 0 : index
    %c0_47 = arith.constant 0 : index
    %c0_48 = arith.constant 0 : index
    %65 = vector.load %arg3[%c0_45, %c0_46, %c0_47, %c0_48] : memref<1x8x16x128xf32, #tpu.memory_space<vmem>>, vector<1x8x16x128xf32>
    %66 = vector.shape_cast %65 : vector<1x8x16x128xf32> to vector<8x16x128xf32>
    %67 = arith.addf %64, %66 : vector<8x16x128xf32>
    %cst_49 = arith.constant 0.000000e+00 : f32
    %68 = vector.broadcast %cst_49 : f32 to vector<8x16x128xf32>
    %69 = arith.maximumf %67, %68 : vector<8x16x128xf32>
    %c0_50 = arith.constant 0 : index
    %c0_51 = arith.constant 0 : index
    %c0_52 = arith.constant 0 : index
    %c0_53 = arith.constant 0 : index
    %70 = vector.load %arg10[%c0_50, %c0_51, %c0_52, %c0_53] : memref<1x8x16x128xf32, #tpu.memory_space<vmem>>, vector<1x8x16x128xf32>
    %71 = vector.shape_cast %70 : vector<1x8x16x128xf32> to vector<8x16x128xf32>
    %72 = vector.shape_cast %69 : vector<8x16x128xf32> to vector<1x8x16x128xf32>
    tpu.vector_store %arg10[%c0_50, %c0_51, %c0_52, %c0_53], %72 {strides = array<i32>} : memref<1x8x16x128xf32, #tpu.memory_space<vmem>>, vector<1x8x16x128xf32>,
    return
  }
  func.func @transform_0(%arg0: i32, %arg1: i32) -> (i32, i32, i32, i32) {
    %c0_i32 = arith.constant 0 : i32
    %c0_i32_0 = arith.constant 0 : i32
    %c0_i32_1 = arith.constant 0 : i32
    %c0_i32_2 = arith.constant 0 : i32
    return %arg0, %c0_i32, %c0_i32_0, %c0_i32_1 : i32, i32, i32, i32
  }
  func.func @transform_1(%arg0: i32, %arg1: i32) -> (i32, i32, i32, i32) {
    %c0_i32 = arith.constant 0 : i32
    %c0_i32_0 = arith.constant 0 : i32
    %c0_i32_1 = arith.constant 0 : i32
    return %arg0, %arg1, %c0_i32, %c0_i32_0 : i32, i32, i32, i32
  }
  func.func @transform_2(%arg0: i32, %arg1: i32) -> (i32, i32) {
    %c0_i32 = arith.constant 0 : i32
    %c0_i32_0 = arith.constant 0 : i32
    %c0_i32_1 = arith.constant 0 : i32
    return %c0_i32, %c0_i32_0 : i32, i32
  }
  func.func @transform_3(%arg0: i32, %arg1: i32) -> (i32, i32) {
    %c0_i32 = arith.constant 0 : i32
    %c0_i32_0 = arith.constant 0 : i32
    %c0_i32_1 = arith.constant 0 : i32
    return %c0_i32, %c0_i32_0 : i32, i32
  }
  func.func @transform_4(%arg0: i32, %arg1: i32) -> (i32, i32) {
    %c0_i32 = arith.constant 0 : i32
    %c0_i32_0 = arith.constant 0 : i32
    %c0_i32_1 = arith.constant 0 : i32
    return %c0_i32, %c0_i32_0 : i32, i32
  }
  func.func @transform_5(%arg0: i32, %arg1: i32) -> (i32, i32) {
    %c0_i32 = arith.constant 0 : i32
    %c0_i32_0 = arith.constant 0 : i32
    %c0_i32_1 = arith.constant 0 : i32
    return %c0_i32, %c0_i32_0 : i32, i32
  }
  func.func @transform_6(%arg0: i32, %arg1: i32) -> (i32, i32) {
    %c0_i32 = arith.constant 0 : i32
    %c0_i32_0 = arith.constant 0 : i32
    %c0_i32_1 = arith.constant 0 : i32
    return %c0_i32, %c0_i32_0 : i32, i32
  }
  func.func @transform_7(%arg0: i32, %arg1: i32) -> (i32, i32) {
    %c0_i32 = arith.constant 0 : i32
    %c0_i32_0 = arith.constant 0 : i32
    %c0_i32_1 = arith.constant 0 : i32
    return %c0_i32, %c0_i32_0 : i32, i32
  }
  func.func @transform_8(%arg0: i32, %arg1: i32) -> (i32, i32, i32, i32) {
    %c0_i32 = arith.constant 0 : i32
    %c0_i32_0 = arith.constant 0 : i32
    %c0_i32_1 = arith.constant 0 : i32
    return %arg0, %arg1, %c0_i32, %c0_i32_0 : i32, i32, i32, i32
  }
}

</mosaic_0001>

<bundles_post_ra>
// kernel: tpu_custom_call.1
= control target key start
LH: loop header
LB: loop body
LE: loop exit
PB: predicated region body
PF: predicated region fallthrough
CT: control target
= control target key end

     0   :  { %s7231_s0 = inlined_call_operand.hbm [shape: bf16[2,16,16,128], index: 0, kind: input, shape index: {}]   ;;  %s7232_s1 = inlined_call_operand.hbm [shape: f32[2,16,16,128], index: 1, kind: input, shape index: {}]   ;;  %s7233_s2 = inlined_call_operand.hbm [shape: bf16[128,128], index: 2, kind: input, shape index: {}]   ;;  %s7234_s3 = inlined_call_operand.vmem [shape: f32[1,128], index: 3, kind: input, shape index: {}]   ;;  %s7235_s4 = inlined_call_operand.hbm [shape: bf16[1152,128], index: 4, kind: input, shape index: {}]   ;;  %s7236_s5 = inlined_call_operand.vmem [shape: f32[1,128], index: 5, kind: input, shape index: {}]   ;;  %s7237_s6 = inlined_call_operand.hbm [shape: bf16[128,128], index: 6, kind: input, shape index: {}]   ;;  %s7238_s7 = inlined_call_operand.vmem [shape: f32[1,128], index: 7, kind: input, shape index: {}]   ;;  %s7239_s8 = inlined_call_operand.hbm [shape: f32[2,16,16,128], index: 8, kind: output, shape index: {}]  }
   0x1   :  { %7251 = sst [smem:[#allocation26_spill]] %s7231_s0 }
   0x2   :  { %7252 = sst [smem:[#allocation27_spill]] %s7233_s2 }
   0x3   :  { %7253 = sst [smem:[#allocation28_spill]] %s7234_s3 }
   0x4   :  { %7254 = sst [smem:[#allocation29_spill]] %s7235_s4 }
   0x5   :  { %7255 = sst [smem:[#allocation30_spill]] %s7236_s5 }
   0x6   :  { %7256 = sst [smem:[#allocation31_spill]] %s7237_s6 }
   0x7   :  { %7257 = sst [smem:[#allocation32_spill]] %s7238_s7 }
   0x8   :  { %7258 = sst [smem:[#allocation33_spill]] %s7239_s8 }
   0x9   :  { %13 = vsyncpa [#allocation5], 0 }
   0xa   :  { %15 = vsyncpa [#allocation5 + $0x1], 0 }
   0xb   :  { %16 = vsyncpa [#allocation8], 0 }
   0xc   :  { %18 = vsyncpa [#allocation8 + $0x1], 0 }
   0xd   :  { %19 = vsyncpa [#allocation11], 0 }
   0xe   :  { %20 = vsyncpa [#allocation6], 0 }
   0xf   :  { %22 = vsyncpa [#allocation6 + $0x1], 0  ;;  %s6062_s27 = smov 0   ;;  %s6064_s28 = smov 0  }
  0x10   :  { %s6066_s29 = smov 0   ;;  %s6068_s30 = smov 0  }
  0x11   :  { %s6070_s9 = smov 0   ;;  %s6072_s10 = smov 0  }
  0x12   :  { %s6074_s11 = smov 0   ;;  %s6076_s12 = smov 0  }
  0x13   :  { %s6078_s13 = smov 0   ;;  %s6080_s14 = smov 0  }
  0x14   :  { %s6082_s15 = smov 0  }
  0x15 LB: > { %7259 = sst [smem:[#allocation19_spill]] %s5965_s27  ;;  %s6118_s16 = sadd.s32 4294967295, %s6005_s15   ;;  %s6005_s15 = sphi %s6082_s15, %s28_s15   ;;  %s6001_s14 = sphi %s6080_s14, %s7313_s14   ;;  %s5997_s13 = sphi %s6078_s13, %s7312_s13   ;;  %s5993_s12 = sphi %s6076_s12, %s7311_s12   ;;  %s5989_s11 = sphi %s6074_s11, %s7310_s11   ;;  %s5985_s10 = sphi %s6072_s10, %s7309_s10   ;;  %s5981_s9 = sphi %s6070_s9, %s7308_s9   ;;  %s5977_s30 = sphi %s6068_s30, %s7307_s30   ;;  %s5973_s29 = sphi %s6066_s29, %s7306_s29   ;;  %s5969_s28 = sphi %s6064_s28, %s7305_s28   ;;  %s5965_s27 = sphi %s6062_s27, %s7304_s27  }
  0x16   : > { %7260 = sst [smem:[#allocation20_spill]] %s5989_s11  ;;  %s4460_s17 = sadd.s32 4294967294, %s6005_s15  }
  0x17   : > { %7261 = sst [smem:[#allocation21_spill]] %s5993_s12  ;;  %p61_p0 = scmp.eq.s32.totalorder %s6118_s16, 0 }
  0x18   : > { %p88_p1 = scmp.ne.s32.totalorder %s5969_s28, %s5965_s27  ;;  %p240_p2 = scmp.eq.s32.totalorder %s6118_s16, 3 }
  0x19   : > { %p246_p3 = scmp.eq.s32.totalorder %s4460_s17, 3  ;;  %p4461_p5 = scmp.ge.s32.totalorder %s6005_s15, 1 }
  0x1a   : > { %p6127_p4 = por %p88_p1, %p61_p0  ;;  %p253_p7 = scmp.lt.s32.totalorder %s6005_s15, 5 }
  0x1b   : > { %p6132_p6 = por %p246_p3, %p88_p1  ;;  %s7266_s2 = sld [smem:[#allocation27_spill]] }
  0x1c   : > { %s7262_s18 = scalar_select %p6127_p4, 1, 0 }
  0x1d   : > { %s7264_s19 = scalar_select %p6132_p6, 1, 0 }
  0x1e   : > { %7263 = sst [smem:[#allocation22_spill]] %s7262_s18  ;;  %p6140_p8 = pnand %p4461_p5, %p253_p7 }
  0x1f   : > { %7265 = sst [smem:[#allocation23_spill]] %s7264_s19  ;;  %s6007_s24 = smov [#allocation9]  }
  0x20   : > { %p5590_p9 = pneg %p6140_p8  ;;  %s266_s25 = sshll.u32 %s6007_s24, 4  ;;  %s267_s25 = int_to_ptr.vmem [resolvable:$true] %s266_s25 }
  0x21   : > { %s264_s22 = sshll.u32 %s7266_s2, 4  ;;  %s7269_s4 = sld [smem:[#allocation29_spill]]  ;;  %s265_s22 = int_to_ptr.hbm [resolvable:$true] %s264_s22 }
  0x22   : > { %p6148_p10 = pnand %p5590_p9, %p61_p0  ;;  %s7243_s21 = smov 64  }
  0x23   : > { %s6009_s24 = smov 4   ;;  %s6010_s19 = smov [#allocation10]  }
  0x24   : > { %5593 = dma.hbm_to_vmem [thread:$0]  (!%p6148_p10), %s265_s22, 1024, %s267_s25, [#allocation8], %s7243_s21, %s7243_s21, %s6009_s24  }
  0x25   : > { %s283_s17 = sshll.u32 %s6010_s19, 4  ;;  %s7270_s6 = sld [smem:[#allocation31_spill]]  ;;  %s284_s17 = int_to_ptr.vmem [resolvable:$true] %s283_s17 }
  0x26   : > { %s6011_s8 = smov [#allocation12]   ;;  %s40_s2 = sadd.s32 1, %s6001_s14 }
  0x27   : > { %s281_s20 = sshll.u32 %s7269_s4, 4  ;;  %s300_s22 = sshll.u32 %s6011_s8, 4  ;;  %s282_s20 = int_to_ptr.hbm [resolvable:$true] %s281_s20  ;;  %s301_s22 = int_to_ptr.vmem [resolvable:$true] %s300_s22 }
  0x28   : > { %5596 = dma.hbm_to_vmem [thread:$0]  (!%p6148_p10), %s282_s20, 9216, %s284_s17, [#allocation11], %s7243_s21, %s7243_s21, %s6009_s24  }
  0x29   : > { %p54_p11 = scmp.ne.s32.totalorder %s5985_s10, %s5981_s9  ;;  %p55_p12 = scmp.eq.s32.totalorder %s6005_s15, 0 }
  0x2a   : > { %p60_p13 = scmp.ne.s32.totalorder %s5981_s9, %s5977_s30  ;;  %p5614_p1 = scmp.lt.s32.totalorder %s6005_s15, 4 }
  0x2b   : > { %s298_s27 = sshll.u32 %s7270_s6, 4  ;;  %s317_s25 = sand.u32 1, %s5985_s10   ;;  %s299_s27 = int_to_ptr.hbm [resolvable:$true] %s298_s27 }
  0x2c   : > { %5599 = dma.hbm_to_vmem [thread:$0]  (!%p6148_p10), %s299_s27, 1024, %s301_s22, [#allocation11], %s7243_s21, %s7243_s21, %s6009_s24  }
  0x2d   : > { %p56_p3 = por %p55_p12, %p54_p11  ;;  %p6186_p5 = por %p61_p0, %p60_p13 }
  0x2e   : > { %s4466_s27 = sshll.u32 %s317_s25, 7  ;;  %s5352_s26 = sshll.u32 %s6001_s14, 7 }
  0x2f   : > { %s7272_s0 = sld [smem:[#allocation26_spill]]  ;;  %s321_s17 = scalar_lea.vmem [#allocation4], %s4466_s27 }
  0x30   : > { %s329_s22 = sshll.u32 %s321_s17, 4  ;;  %p5601_p7 = pnand %p5614_p1, %p56_p3  ;;  %s330_s22 = int_to_ptr.vmem [resolvable:$true] %s329_s22 }
  0x31   : > { %s318_s21 = scalar_lea.sflag [#allocation5], %s317_s25  ;;  %s7273_s6 = smov 64  }
  0x32   : > { %s37_s20 = sadd.s32 1, %s5997_s13  ;;  %p82_p10 = scmp.ne.s32.totalorder %s5973_s29, %s5969_s28 }
  0x33   : > { %p38_p9 = scmp.ge.s32.totalorder %s37_s20, 2  ;;  %s339_s27 = sand.u32 1, %s6005_s15  }
  0x34   : > { %p6211_p11 = por %p82_p10, %p55_p12  ;;  %p6217_p3 = por %p240_p2, %p82_p10 }
  0x35   : > { %s326_s30 = scalar_lea.hbm %s7272_s0, %s5352_s26  ;;  %s75_s26 = sadd.s32 1, %s5973_s29 }
  0x36   : > { %s327_s4 = sshll.u32 %s326_s30, 4  ;;  %s7315_s20 = smov (%p38_p9, %s37_s20), 0  ;;  %s328_s4 = int_to_ptr.hbm [resolvable:$true] %s327_s4 }
  0x37   : > { %5603 = dma.hbm_to_vmem [thread:$0]  (!%p5601_p7), %s328_s4, 2048, %s330_s22, %s318_s21, %s7273_s6, %s7273_s6, %s6009_s24  }
  0x38   : > { %7274 = sst [smem:[#allocation24_spill]] %s7315_s20  ;;  %s7317_s2 = smov (!%p38_p9, %s40_s2), %s6001_s14 }
  0x39   : > { %s71_s25 = ssub.s32 %s5997_s13, %s7315_s20  ;;  %p42_p13 = scmp.ge.s32.totalorder %s7317_s2, 2 }
  0x3a   : > { %s7276_s6 = scalar_select %p6217_p3, 1, 0 }
  0x3b   : > { %s341_s21 = sand.u32 1, %s5973_s29   ;;  %s7319_s2 = smov (%p42_p13, %s7317_s2), 0 }
  0x3c   : > { %7277 = sst [smem:[#allocation25_spill]] %s7276_s6  ;;  %s4469_s24 = sshll.u32 %s341_s21, 7 }
  0x3d   : > { %s5353_s4 = sshll.u32 %s5997_s13, 4  ;;  %s44_s30 = ssub.s32 %s6001_s14, %s7319_s2 }
  0x3e   : > { %p45_p7 = scmp.eq.s32.totalorder %s44_s30, 0  ;;  %s72_s17 = sor.u32 %s71_s25, %s44_s30 }
  0x3f   : > { %p73_p12 = scmp.eq.s32.totalorder %s72_s17, 0  ;;  %s4472_s22 = sshll.u32 %s6001_s14, 5 }
  0x40   : > { %s7278_s0 = sadd.s32 1, %s5985_s10  ;;  %s349_s7 = sadd.s32 %s5353_s4, %s4472_s22 }
  0x41   : > { %s6231_s20 = scalar_select %p45_p7, %s5985_s10, %s7278_s0  }
  0x42   : > { %s6234_s12 = scalar_select %p73_p12, %s5973_s29, %s75_s26  }
  0x43   : > { %s343_s6 = scalar_lea.vmem [#allocation7], %s4469_s24  ;;  %s4473_s3 = sshll.u32 %s349_s7, 3 }
  0x44   : > { %s354_s5 = sshll.u32 %s343_s6, 4  ;;  %s351_s21 = scalar_lea.hbm %s7232_s1, %s4473_s3  ;;  %s355_s5 = int_to_ptr.vmem [resolvable:$true] %s354_s5 }
  0x45   : > { %p5604_p2 = pnand %p5614_p1, %p6211_p11  ;;  %s352_s25 = sshll.u32 %s351_s21, 4  ;;  %s353_s25 = int_to_ptr.hbm [resolvable:$true] %s352_s25 }
  0x46   : > { %s340_s30 = scalar_lea.sflag [#allocation8], %s339_s27  ;;  %s6012_s17 = smov 128  }
  0x47   : > { %s6013_s0 = smov 8   ;;  %366 = sbr.rel (%p6140_p8) target bundleno = 978 (0x3d2), region = 52 }
  0x48   : > { %5606 = dma.hbm_to_vmem [thread:$0]  (!%p5604_p2), %s353_s25, 2048, %s355_s5, %s340_s30, %s6012_s17, %s6012_s17, %s6013_s0  }
  0x49   : > { %s368_s7 = sand.u32 (!%p6140_p8), 1, %s5981_s9  }
  0x4a   : > { %s4475_s26 = sshll.u32 (!%p6140_p8), %s368_s7, 7  ;;  %s369_s6 = scalar_lea.sflag (!%p6140_p8), [#allocation5], %s368_s7 }
  0x4b   : > { %s6246_s24 = scalar_lea.vmem (!%p6140_p8), [#allocation4], %s4475_s26 }
  0x4c   : > { %5944 = dma.done.wait (%p6186_p5), %s369_s6, 2048  }
  0x4d   : > { %5946 = vsyncadd (%p6186_p5), %s369_s6, 4294965248  ;;  %s378_s5 = sand.u32 1, %s6118_s16   ;;  %s380_s11 = sand.u32 1, %s5969_s28  }
  0x4e   : > { %s4476_s18 = sshll.u32 %s380_s11, 7  ;;  %s379_s23 = scalar_lea.sflag [#allocation8], %s378_s5 }
  0x4f   : > { %s6256_s27 = scalar_lea.vmem [#allocation7], %s4476_s18 }
  0x50   : > { %5948 = dma.done.wait (%p6127_p4), %s379_s23, 2048  }
  0x51   : > { %5950 = vsyncadd (%p6127_p4), %s379_s23, 4294965248 }
  0x52   : > { %5952 = dma.done.wait (%p61_p0), [#allocation8], 1024  }
  0x53   : > { %5954 = vsyncadd (%p61_p0), [#allocation8], 4294966272 }
  0x54   : > { %5956 = dma.done.wait (%p61_p0), [#allocation11], 10240  }
  0x55   : > { %5958 = vsyncadd (%p61_p0), [#allocation11], 4294957056  ;;  %s6270_s8 = scalar_lea.vmem [#allocation13], %s4476_s18  ;;  %s7280_s19 = sld [smem:[#allocation20_spill]] }
  0x5b   : > { %p4481_p8 = scmp.ne.s32.totalorder %s7280_s19, 0 }
  0x5c   : > { %s7285_s22 = sld [smem:[#allocation28_spill]] (!%p4481_p8) }
  0x5d   : > { %442 = sbr.rel (%p4481_p8) target bundleno = 348 (0x15c), region = 76 }
  0x62   : > { %v5377_v0 = vld [vmem:[#allocation9 + $0x38] sm:$0xff]  ;;  %v6014_v1 = vmov 0   ;;  %v5376_v2 = vld [vmem:[#allocation9 + $0x30] sm:$0xff]  ;;  %v5375_v3 = vld [vmem:[#allocation9 + $0x28] sm:$0xff]  ;;  %vm450_vm0 = vcmask 1040384   ;;  %vm1235_vm5 = vcmask 1043456  }
  0x63   : > { %443 = vst [vmem:[#allocation2] sm:$0xf] %v6014_v1  ;;  %759 = vmatpush.bf16.msra.mxu0 %v5377_v0  ;;  %5532 = vmatpush.bf16.msra.mxu1 %v5377_v0  ;;  %v5374_v4 = vld [vmem:[#allocation9 + $0x20] sm:$0xff]  ;;  %v5373_v5 = vld [vmem:[#allocation9 + $0x18] sm:$0xff]  ;;  %v5372_v6 = vld [vmem:[#allocation9 + $0x10] sm:$0xff] }
  0x64   : > { %444 = vst [vmem:[#allocation2 + $0x4] sm:$0xf] %v6014_v1  ;;  %5533 = vmatpush.bf16.msra.mxu2 %v5377_v0  ;;  %5534 = vmatpush.bf16.msra.mxu3 %v5377_v0  ;;  %v5371_v7 = vld [vmem:[#allocation9 + $0x8] sm:$0xff]  ;;  %v5370_v8 = vld [vmem:[#allocation9] sm:$0xff]  ;;  %vm451_vm1 = vsmask.f32 256 }
  0x65   : > { %445 = vst [vmem:[#allocation2 + $0x8] sm:$0x1] %v6014_v1  ;;  %v5354_v9 = vld [vmem:[%s6246_s24] sm:$0xff]  ;;  %v5355_v13 = vld [vmem:[%s6246_s24 + $0x8] sm:$0xff]  ;;  %v456_v20 = vld [vmem:[#allocation2 + $0xc] sm:$0x1] }
  0x66   : > { %447 = vst [vmem:[#allocation2 + $0xcc] sm:$0xf] %v6014_v1  ;;  %v5358_v10 = vld [vmem:[%s6246_s24 + $0x20] sm:$0xff]  ;;  %v5359_v14 = vld [vmem:[%s6246_s24 + $0x28] sm:$0xff]  ;;  %vm6282_vm2 = vmand %vm450_vm0, %vm451_vm1  ;;  %vm507_vm3 = vsmask.f32 7938 }
  0x67   : > { %448 = vst [vmem:[#allocation2 + $0xd0] sm:$0xf] %v6014_v1  ;;  %760 = vmatpush.bf16.msra.mxu0 %v5376_v2  ;;  %5535 = vmatpush.bf16.msra.mxu1 %v5376_v2  ;;  %v5362_v11 = vld [vmem:[%s6246_s24 + $0x40] sm:$0xff]  ;;  %v5363_v15 = vld [vmem:[%s6246_s24 + $0x48] sm:$0xff]  ;;  %v457_v24 = vsel %vm6282_vm2, 0, %v456_v20  ;;  %vm6293_vm4 = vmand %vm450_vm0, %vm507_vm3 }
  0x68   : > { %449 = vst [vmem:[#allocation2 + $0xd4] sm:$0x1] %v6014_v1  ;;  %5536 = vmatpush.bf16.msra.mxu2 %v5376_v2  ;;  %5537 = vmatpush.bf16.msra.mxu3 %v5376_v2  ;;  %v5366_v12 = vld [vmem:[%s6246_s24 + $0x60] sm:$0xff]  ;;  %v5367_v16 = vld [vmem:[%s6246_s24 + $0x68] sm:$0xff]  ;;  %v5356_v29 = vld [vmem:[%s6246_s24 + $0x10] sm:$0xff] }
  0x69   : > { %458 = vst [vmem:[#allocation2 + $0xc] sm:$0x1] %v457_v24  ;;  %v5360_v30 = vld [vmem:[%s6246_s24 + $0x30] sm:$0xff]  ;;  %v5357_v33 = vld [vmem:[%s6246_s24 + $0x18] sm:$0xff]  ;;  %v468_v37 = vld [vmem:[#allocation2 + $0x3c] sm:$0x1] }
  0x6a   : > { %v453_v17 = vld [vmem:[#allocation2] sm:$0x1]  ;;  %v5364_v31 = vld [vmem:[%s6246_s24 + $0x50] sm:$0xff]  ;;  %v5361_v34 = vld [vmem:[%s6246_s24 + $0x38] sm:$0xff]  ;;  %v469_v38 = vsel %vm6282_vm2, 0, %v468_v37 }
  0x6b   : > { %761 = vmatpush.bf16.msra.mxu0 %v5375_v3  ;;  %5538 = vmatpush.bf16.msra.mxu1 %v5375_v3  ;;  %v454_v23 = vsel %vm6282_vm2, 0, %v453_v17  ;;  %v5368_v32 = vld [vmem:[%s6246_s24 + $0x70] sm:$0xff]  ;;  %v5365_v35 = vld [vmem:[%s6246_s24 + $0x58] sm:$0xff]  ;;  %470 = vst [vmem:[#allocation2 + $0x3c] sm:$0x1] %v469_v38  ;;  %vm6352_vm6 = vmand %vm1235_vm5, %vm507_vm3 }
  0x6c   : > { %5539 = vmatpush.bf16.msra.mxu2 %v5375_v3  ;;  %5540 = vmatpush.bf16.msra.mxu3 %v5375_v3  ;;  %v509_v19 = vld [vmem:[#allocation2 + $0x8] sm:$0x1]  ;;  %455 = vst [vmem:[#allocation2] sm:$0x1] %v454_v23  ;;  %v5369_v36 = vld [vmem:[%s6246_s24 + $0x78] sm:$0xff] }
  0x6d   : > { %v504_v18 = vld [vmem:[#allocation2 + $0xcc] sm:$0x1]  ;;  %v510_v27 = vsel %vm6293_vm4, 0, %v509_v19  ;;  %v492_v40 = vld [vmem:[#allocation2 + $0x9c] sm:$0x1] }
  0x6e   : > { %v505_v25 = vsel %vm6282_vm2, 0, %v504_v18  ;;  %511 = vst [vmem:[#allocation2 + $0x8] sm:$0x1] %v510_v27  ;;  %v480_v39 = vld [vmem:[#allocation2 + $0x6c] sm:$0x1]  ;;  %v493_v42 = vsel %vm6282_vm2, 0, %v492_v40 }
  0x6f   : > { %762 = vmatpush.bf16.msra.mxu0 %v5374_v4  ;;  %5541 = vmatpush.bf16.msra.mxu1 %v5374_v4  ;;  %v560_v21 = vld [vmem:[#allocation2 + $0xd4] sm:$0x1]  ;;  %506 = vst [vmem:[#allocation2 + $0xcc] sm:$0x1] %v505_v25  ;;  %v481_v41 = vsel %vm6282_vm2, 0, %v480_v39 }
  0x70   : > { %5542 = vmatpush.bf16.msra.mxu2 %v5374_v4  ;;  %5543 = vmatpush.bf16.msra.mxu3 %v5374_v4  ;;  %v561_v28 = vsel %vm6293_vm4, 0, %v560_v21  ;;  %482 = vst [vmem:[#allocation2 + $0x6c] sm:$0x1] %v481_v41  ;;  %v512_v43 = vld [vmem:[#allocation2 + $0x14] sm:$0x1] }
  0x71   : > { %562 = vst [vmem:[#allocation2 + $0xd4] sm:$0x1] %v561_v28  ;;  %v513_v44 = vsel %vm6293_vm4, 0, %v512_v43  ;;  %v524_v45 = vld [vmem:[#allocation2 + $0x44] sm:$0x1] }
  0x72   : > { %494 = vst [vmem:[#allocation2 + $0x9c] sm:$0x1] %v493_v42  ;;  %v525_v46 = vsel %vm6293_vm4, 0, %v524_v45  ;;  %v536_v47 = vld [vmem:[#allocation2 + $0x74] sm:$0x1] }
  0x73   : > { %763 = vmatpush.bf16.msra.mxu0 %v5373_v5  ;;  %5544 = vmatpush.bf16.msra.mxu1 %v5373_v5  ;;  %514 = vst [vmem:[#allocation2 + $0x14] sm:$0x1] %v513_v44  ;;  %v537_v48 = vsel %vm6293_vm4, 0, %v536_v47  ;;  %v548_v49 = vld [vmem:[#allocation2 + $0xa4] sm:$0x1] }
  0x74   : > { %5545 = vmatpush.bf16.msra.mxu2 %v5373_v5  ;;  %5546 = vmatpush.bf16.msra.mxu3 %v5373_v5  ;;  %526 = vst [vmem:[#allocation2 + $0x44] sm:$0x1] %v525_v46  ;;  %v549_v50 = vsel %vm6293_vm4, 0, %v548_v49  ;;  %v6326_v51 = vld [vmem:[%s7285_s22] ss:$0 sm:$0xff] }
  0x75   : > { %538 = vst [vmem:[#allocation2 + $0x74] sm:$0x1] %v537_v48  ;;  %v459_v52 = vld [vmem:[#allocation2 + $0x18] sm:$0x1]  ;;  %v471_v53 = vld [vmem:[#allocation2 + $0x48] sm:$0x1] }
  0x76   : > { %550 = vst [vmem:[#allocation2 + $0xa4] sm:$0x1] %v549_v50  ;;  %v460_v54 = vsel %vm6282_vm2, 0, %v459_v52  ;;  %v472_v55 = vsel %vm6282_vm2, 0, %v471_v53  ;;  %v483_v56 = vld [vmem:[#allocation2 + $0x78] sm:$0x1] }
  0x77   : > { %764 = vmatpush.bf16.msra.mxu0 %v5372_v6  ;;  %5547 = vmatpush.bf16.msra.mxu1 %v5372_v6  ;;  %461 = vst [vmem:[#allocation2 + $0x18] sm:$0x1] %v460_v54  ;;  %v484_v59 = vsel %vm6282_vm2, 0, %v483_v56  ;;  %v495_v62 = vld [vmem:[#allocation2 + $0xa8] sm:$0x1] }
  0x78   : > { %5548 = vmatpush.bf16.msra.mxu2 %v5372_v6  ;;  %5549 = vmatpush.bf16.msra.mxu3 %v5372_v6  ;;  %473 = vst [vmem:[#allocation2 + $0x48] sm:$0x1] %v472_v55  ;;  %v515_v63 = vld [vmem:[#allocation2 + $0x20] sm:$0x1]  ;;  %v496_v0 = vsel %vm6282_vm2, 0, %v495_v62 }
  0x79   : > { %485 = vst [vmem:[#allocation2 + $0x78] sm:$0x1] %v484_v59  ;;  %v516_v1 = vsel %vm6293_vm4, 0, %v515_v63  ;;  %v527_v2 = vld [vmem:[#allocation2 + $0x50] sm:$0x1] }
  0x7a   : > { %497 = vst [vmem:[#allocation2 + $0xa8] sm:$0x1] %v496_v0  ;;  %v528_v5 = vsel %vm6293_vm4, 0, %v527_v2  ;;  %v1237_v19 = vld [vmem:[#allocation2 + $0xc] sm:$0xf] }
  0x7b   : > { %765 = vmatpush.bf16.msra.mxu0 %v5371_v7  ;;  %5550 = vmatpush.bf16.msra.mxu1 %v5371_v7  ;;  %517 = vst [vmem:[#allocation2 + $0x20] sm:$0x1] %v516_v1  ;;  %v1265_v25 = vld [vmem:[#allocation2 + $0x3c] sm:$0xf]  ;;  %vm912_vm7 = vsmask.f32 4368 }
  0x7c   : > { %5551 = vmatpush.bf16.msra.mxu2 %v5371_v7  ;;  %5552 = vmatpush.bf16.msra.mxu3 %v5371_v7  ;;  %529 = vst [vmem:[#allocation2 + $0x50] sm:$0x1] %v528_v5  ;;  %v1293_v46 = vld [vmem:[#allocation2 + $0x6c] sm:$0xf]  ;;  %v1321_v55 = vld [vmem:[#allocation2 + $0x9c] sm:$0xf]  ;;  %vm6384_vm8 = vmor %vm451_vm1, %vm912_vm7 }
  0x7f   : > { %766 = vmatpush.bf16.msra.mxu0 %v5370_v8  ;;  %5553 = vmatpush.bf16.msra.mxu1 %v5370_v8 }
  0x80   : > { %5554 = vmatpush.bf16.msra.mxu2 %v5370_v8  ;;  %5555 = vmatpush.bf16.msra.mxu3 %v5370_v8 }
  0x82   : > { %767 = vmatmul.bf16.vlgmr.msra.gmra.mxu0 %v5354_v9  ;;  %787 = vmatmul.bf16.vlgmr.msra.gmra.mxu1 %v5358_v10 }
  0x83   : > { %807 = vmatmul.bf16.vlgmr.msra.gmra.mxu2 %v5362_v11  ;;  %827 = vmatmul.bf16.vlgmr.msra.gmra.mxu3 %v5366_v12 }
  0x92   : > { %772 = vmatmul.bf16.gmra.mxu0 %v5355_v13  ;;  %792 = vmatmul.bf16.gmra.mxu1 %v5359_v14 }
  0x93   : > { %812 = vmatmul.bf16.gmra.mxu2 %v5363_v15  ;;  %832 = vmatmul.bf16.gmra.mxu3 %v5367_v16 }
  0xa2   : > { %777 = vmatmul.bf16.gmra.mxu0 %v5356_v29  ;;  %797 = vmatmul.bf16.gmra.mxu1 %v5360_v30  ;;  %v539_v29 = vld [vmem:[#allocation2 + $0x80] sm:$0x1] }
  0xa3   : > { %817 = vmatmul.bf16.gmra.mxu2 %v5364_v31  ;;  %837 = vmatmul.bf16.gmra.mxu3 %v5368_v32  ;;  %v551_v32 = vld [vmem:[#allocation2 + $0xb0] sm:$0x1]  ;;  %v540_v40 = vsel %vm6293_vm4, 0, %v539_v29 }
  0xa4   : > { %v552_v44 = vsel %vm6293_vm4, 0, %v551_v32  ;;  %541 = vst [vmem:[#allocation2 + $0x80] sm:$0x1] %v540_v40 }
  0xa5   : > { %553 = vst [vmem:[#allocation2 + $0xb0] sm:$0x1] %v552_v44 }
  0xb2   : > { %782 = vmatmul.bf16.gmra.mxu0 %v5357_v33  ;;  %802 = vmatmul.bf16.gmra.mxu1 %v5361_v34 }
  0xb3   : > { %822 = vmatmul.bf16.gmra.mxu2 %v5365_v35  ;;  %842 = vmatmul.bf16.gmra.mxu3 %v5369_v36 }
  0xff   : > { %v768_v57 = vpop.f32.mrf.mxu0  ;;  %v788_v58 = vpop.f32.mrf.mxu1 }
 0x100   : > { %v769_v60 = vadd.f32 %v6326_v51, %v768_v57  ;;  %v789_v61 = vadd.f32 %v6326_v51, %v788_v58 }
 0x102   : > { %v848_v3 = vmax.f32 %v769_v60, 0.0  ;;  %v856_v4 = vmax.f32 %v789_v61, 0.0 }
 0x104   : > { %v880_v6 = vpack.c.bf16 %v848_v3, %v848_v3  ;;  %v888_v7 = vpack.c.bf16 %v856_v4, %v856_v4 }
 0x106   : > { %v915_v8 = vshrl.u32 %v880_v6, 16  ;;  %v918_v9 = vshll.u32 %v880_v6, 16  ;;  %v983_v10 = vshrl.u32 %v888_v7, 16  ;;  %v986_v11 = vshll.u32 %v888_v7, 16  ;;  %v808_v12 = vpop.f32.mrf.mxu2  ;;  %v828_v13 = vpop.f32.mrf.mxu3 }
 0x107   : > { %v809_v14 = vadd.f32 %v6326_v51, %v808_v12  ;;  %v829_v15 = vadd.f32 %v6326_v51, %v828_v13  ;;  %v770_v16 = vpop.f32.mrf.mxu0  ;;  %v790_v17 = vpop.f32.mrf.mxu1  ;;  %v1269_v12 = vld [vmem:[#allocation2 + $0x44] sm:$0x1] }
 0x108   : > { %v6344_v18 = vrot.slane %v915_v8, 7  ;;  %v6346_v20 = vrot.slane %v983_v10, 7  ;;  %v771_v21 = vadd.f32 %v6326_v51, %v770_v16  ;;  %v791_v23 = vadd.f32 %v6326_v51, %v790_v17 }
 0x109   : > { %v864_v27 = vmax.f32 %v809_v14, 0.0  ;;  %v872_v28 = vmax.f32 %v829_v15, 0.0 }
 0x10a   : > { %v920_v30 = vor.u32 %v918_v9, %v6344_v18  ;;  %v988_v31 = vor.u32 %v986_v11, %v6346_v20  ;;  %v849_v35 = vmax.f32 %v771_v21, 0.0  ;;  %v857_v36 = vmax.f32 %v791_v23, 0.0  ;;  %v1241_v11 = vld [vmem:[#allocation2 + $0x14] sm:$0x1] }
 0x10b   : > { %v896_v33 = vpack.c.bf16 %v864_v27, %v864_v27  ;;  %v904_v34 = vpack.c.bf16 %v872_v28, %v872_v28  ;;  %v921_v37 = vrot.slane %v6344_v18, 4  ;;  %v989_v41 = vrot.slane %v6346_v20, 4 }
 0x10c   : > { %v1238_v38 = vsel %vm6352_vm6, %v920_v30, %v1237_v19  ;;  %v1266_v39 = vsel %vm6352_vm6, %v988_v31, %v1265_v25  ;;  %v881_v48 = vpack.c.bf16 %v849_v35, %v849_v35  ;;  %v889_v49 = vpack.c.bf16 %v857_v36, %v857_v36 }
 0x10d   : > { %1239 = vst [vmem:[#allocation2 + $0xc] sm:$0xf] %v1238_v38  ;;  %v1051_v42 = vshrl.u32 %v896_v33, 16  ;;  %v1119_v43 = vshrl.u32 %v904_v34, 16  ;;  %v1054_v45 = vshll.u32 %v896_v33, 16  ;;  %v1122_v47 = vshll.u32 %v904_v34, 16 }
 0x10e   : > { %1267 = vst [vmem:[#allocation2 + $0x3c] sm:$0xf] %v1266_v39  ;;  %v810_v50 = vpop.f32.mrf.mxu2  ;;  %v830_v52 = vpop.f32.mrf.mxu3  ;;  %v923_v60 = vshrl.u32 %v881_v48, 16  ;;  %v926_v61 = vshll.u32 %v881_v48, 16  ;;  %v991_v62 = vshrl.u32 %v889_v49, 16  ;;  %v994_v63 = vshll.u32 %v889_v49, 16 }
 0x10f   : > { %v6368_v53 = vrot.slane %v1051_v42, 7  ;;  %v6370_v54 = vrot.slane %v1119_v43, 7  ;;  %v811_v56 = vadd.f32 %v6326_v51, %v810_v50  ;;  %v831_v57 = vadd.f32 %v6326_v51, %v830_v52  ;;  %v773_v58 = vpop.f32.mrf.mxu0  ;;  %v793_v59 = vpop.f32.mrf.mxu1  ;;  %v1297_v43 = vld [vmem:[#allocation2 + $0x74] sm:$0x1] }
 0x110   : > { %v925_v4 = vrot.slane %v923_v60, 7  ;;  %v993_v5 = vrot.slane %v991_v62, 7  ;;  %v774_v13 = vadd.f32 %v6326_v51, %v773_v58  ;;  %v794_v14 = vadd.f32 %v6326_v51, %v793_v59  ;;  %v1325_v58 = vld [vmem:[#allocation2 + $0xa4] sm:$0x1] }
 0x111   : > { %v1056_v0 = vor.u32 %v1054_v45, %v6368_v53  ;;  %v1057_v1 = vrot.slane %v6368_v53, 4  ;;  %v1124_v2 = vor.u32 %v1122_v47, %v6370_v54  ;;  %v1125_v3 = vrot.slane %v6370_v54, 4 }
 0x112   : > { %v865_v6 = vmax.f32 %v811_v56, 0.0  ;;  %v873_v7 = vmax.f32 %v831_v57, 0.0  ;;  %v928_v15 = vor.u32 %v926_v61, %v925_v4  ;;  %v930_v16 = vrot.slane %v925_v4, 4  ;;  %v1244_v4 = vld [vmem:[#allocation2 + $0x18] sm:$0xf] }
 0x113   : > { %v1294_v8 = vsel %vm6352_vm6, %v1056_v0, %v1293_v46  ;;  %v1322_v9 = vsel %vm6352_vm6, %v1124_v2, %v1321_v55  ;;  %v996_v17 = vor.u32 %v994_v63, %v993_v5  ;;  %v998_v18 = vrot.slane %v993_v5, 4  ;;  %v1272_v5 = vld [vmem:[#allocation2 + $0x48] sm:$0xf] }
 0x114   : > { %1295 = vst [vmem:[#allocation2 + $0x6c] sm:$0xf] %v1294_v8  ;;  %v897_v19 = vpack.c.bf16 %v865_v6, %v865_v6  ;;  %v905_v20 = vpack.c.bf16 %v873_v7, %v873_v7  ;;  %v850_v21 = vmax.f32 %v774_v13, 0.0  ;;  %v858_v23 = vmax.f32 %v794_v14, 0.0 }
 0x115   : > { %1323 = vst [vmem:[#allocation2 + $0x9c] sm:$0xf] %v1322_v9  ;;  %v929_v25 = vsel %vm6384_vm8, %v921_v37, %v928_v15  ;;  %v1242_v27 = vsel %vm6282_vm2, %v930_v16, %v1241_v11  ;;  %v997_v28 = vsel %vm6384_vm8, %v989_v41, %v996_v17  ;;  %v1270_v29 = vsel %vm6282_vm2, %v998_v18, %v1269_v12  ;;  %v462_v17 = vld [vmem:[#allocation2 + $0x24] sm:$0x1] }
 0x116   : > { %v813_v30 = vpop.f32.mrf.mxu2  ;;  %v833_v31 = vpop.f32.mrf.mxu3  ;;  %1240 = vst [vmem:[#allocation2 + $0x10] sm:$0xf] %v929_v25  ;;  %v1059_v32 = vshrl.u32 %v897_v19, 16  ;;  %v1062_v33 = vshll.u32 %v897_v19, 16  ;;  %v1127_v34 = vshrl.u32 %v905_v20, 16  ;;  %v1130_v35 = vshll.u32 %v905_v20, 16 }
 0x117   : > { %v775_v36 = vpop.f32.mrf.mxu0  ;;  %v795_v38 = vpop.f32.mrf.mxu1  ;;  %1243 = vst [vmem:[#allocation2 + $0x14] sm:$0x1] %v1242_v27  ;;  %v882_v37 = vpack.c.bf16 %v850_v21, %v850_v21  ;;  %v890_v39 = vpack.c.bf16 %v858_v23, %v858_v23  ;;  %v814_v40 = vadd.f32 %v6326_v51, %v813_v30  ;;  %v834_v42 = vadd.f32 %v6326_v51, %v833_v31  ;;  %v1300_v23 = vld [vmem:[#allocation2 + $0x78] sm:$0xf]  ;;  %v1328_v25 = vld [vmem:[#allocation2 + $0xa8] sm:$0xf] }
 0x118   : > { %1268 = vst [vmem:[#allocation2 + $0x40] sm:$0xf] %v997_v28  ;;  %v1061_v41 = vrot.slane %v1059_v32, 7  ;;  %v1129_v44 = vrot.slane %v1127_v34, 7  ;;  %v776_v45 = vadd.f32 %v6326_v51, %v775_v36  ;;  %v796_v46 = vadd.f32 %v6326_v51, %v795_v38  ;;  %v474_v32 = vld [vmem:[#allocation2 + $0x54] sm:$0x1] }
 0x119   : > { %1271 = vst [vmem:[#allocation2 + $0x44] sm:$0x1] %v1270_v29  ;;  %v932_v47 = vshrl.u32 %v882_v37, 16  ;;  %v935_v48 = vshll.u32 %v882_v37, 16  ;;  %v1000_v49 = vshrl.u32 %v890_v39, 16  ;;  %v1003_v50 = vshll.u32 %v890_v39, 16 }
 0x11a   : > { %v1064_v52 = vor.u32 %v1062_v33, %v1061_v41  ;;  %v1066_v55 = vrot.slane %v1061_v41, 4  ;;  %v1132_v56 = vor.u32 %v1130_v35, %v1129_v44  ;;  %v1134_v57 = vrot.slane %v1129_v44, 4 }
 0x11b   : > { %v6402_v59 = vrot.slane %v932_v47, 7  ;;  %v6404_v60 = vrot.slane %v1000_v49, 7  ;;  %v866_v61 = vmax.f32 %v814_v40, 0.0  ;;  %v874_v62 = vmax.f32 %v834_v42, 0.0 }
 0x11c   : > { %v1065_v63 = vsel %vm6384_vm8, %v1057_v1, %v1064_v52  ;;  %v1298_v0 = vsel %vm6282_vm2, %v1066_v55, %v1297_v43  ;;  %v1133_v2 = vsel %vm6384_vm8, %v1125_v3, %v1132_v56  ;;  %v1326_v6 = vsel %vm6282_vm2, %v1134_v57, %v1325_v58  ;;  %v1248_v55 = vld [vmem:[#allocation2 + $0x20] sm:$0x1]  ;;  %v1276_v56 = vld [vmem:[#allocation2 + $0x50] sm:$0x1] }
 0x11d   : > { %1296 = vst [vmem:[#allocation2 + $0x70] sm:$0xf] %v1065_v63  ;;  %v937_v7 = vor.u32 %v935_v48, %v6402_v59  ;;  %v938_v53 = vrot.slane %v6402_v59, 4  ;;  %v1005_v1 = vor.u32 %v1003_v50, %v6404_v60  ;;  %v898_v11 = vpack.c.bf16 %v866_v61, %v866_v61 }
 0x11e   : > { %v815_v8 = vpop.f32.mrf.mxu2  ;;  %v835_v9 = vpop.f32.mrf.mxu3  ;;  %1299 = vst [vmem:[#allocation2 + $0x74] sm:$0x1] %v1298_v0  ;;  %v906_v54 = vpack.c.bf16 %v874_v62, %v874_v62  ;;  %v851_v12 = vmax.f32 %v776_v45, 0.0  ;;  %v859_v13 = vmax.f32 %v796_v46, 0.0  ;;  %v463_v35 = vsel %vm6282_vm2, 0, %v462_v17 }
 0x11f   : > { %1324 = vst [vmem:[#allocation2 + $0xa0] sm:$0xf] %v1133_v2  ;;  %v1245_v3 = vsel %vm6352_vm6, %v937_v7, %v1244_v4  ;;  %v1273_v14 = vsel %vm6352_vm6, %v1005_v1, %v1272_v5  ;;  %v816_v15 = vadd.f32 %v6326_v51, %v815_v8  ;;  %v836_v16 = vadd.f32 %v6326_v51, %v835_v9  ;;  %v778_v31 = vpop.f32.mrf.mxu0  ;;  %v798_v42 = vpop.f32.mrf.mxu1  ;;  %v486_v0 = vld [vmem:[#allocation2 + $0x84] sm:$0x1] }
 0x120   : > { %1327 = vst [vmem:[#allocation2 + $0xa4] sm:$0x1] %v1326_v6  ;;  %v1068_v18 = vshrl.u32 %v898_v11, 16  ;;  %v1071_v19 = vshll.u32 %v898_v11, 16  ;;  %v1136_v20 = vshrl.u32 %v906_v54, 16  ;;  %v1139_v21 = vshll.u32 %v906_v54, 16 }
 0x121   : > { %1246 = vst [vmem:[#allocation2 + $0x18] sm:$0xf] %v1245_v3  ;;  %v883_v27 = vpack.c.bf16 %v851_v12, %v851_v12  ;;  %v891_v28 = vpack.c.bf16 %v859_v13, %v859_v13  ;;  %v867_v29 = vmax.f32 %v816_v15, 0.0  ;;  %v875_v30 = vmax.f32 %v836_v16, 0.0  ;;  %v1304_v13 = vld [vmem:[#allocation2 + $0x80] sm:$0x1] }
 0x122   : > { %1274 = vst [vmem:[#allocation2 + $0x48] sm:$0xf] %v1273_v14  ;;  %v6427_v33 = vrot.slane %v1068_v18, 7  ;;  %v6429_v34 = vrot.slane %v1136_v20, 7  ;;  %v779_v36 = vadd.f32 %v6326_v51, %v778_v31  ;;  %v1006_v38 = vrot.slane %v6404_v60, 4 }
 0x123   : > { %v940_v37 = vshrl.u32 %v883_v27, 16  ;;  %v943_v39 = vshll.u32 %v883_v27, 16  ;;  %v1008_v40 = vshrl.u32 %v891_v28, 16  ;;  %464 = vst [vmem:[#allocation2 + $0x24] sm:$0x1] %v463_v35  ;;  %v1011_v45 = vshll.u32 %v891_v28, 16 }
 0x124   : > { %v1073_v41 = vor.u32 %v1071_v19, %v6427_v33  ;;  %v1074_v43 = vrot.slane %v6427_v33, 4  ;;  %v1141_v44 = vor.u32 %v1139_v21, %v6429_v34  ;;  %v899_v48 = vpack.c.bf16 %v867_v29, %v867_v29  ;;  %v498_v18 = vld [vmem:[#allocation2 + $0xb4] sm:$0x1]  ;;  %v518_v27 = vld [vmem:[#allocation2 + $0x2c] sm:$0x1] }
 0x125   : > { %v942_v46 = vrot.slane %v940_v37, 7  ;;  %v1010_v47 = vrot.slane %v1008_v40, 7  ;;  %v907_v49 = vpack.c.bf16 %v875_v30, %v875_v30  ;;  %v852_v57 = vmax.f32 %v779_v36, 0.0  ;;  %v530_v37 = vld [vmem:[#allocation2 + $0x5c] sm:$0x1] }
 0x126   : > { %v1301_v50 = vsel %vm6352_vm6, %v1073_v41, %v1300_v23  ;;  %v1329_v52 = vsel %vm6352_vm6, %v1141_v44, %v1328_v25  ;;  %v475_v58 = vsel %vm6282_vm2, 0, %v474_v32  ;;  %v1076_v2 = vshrl.u32 %v899_v48, 16  ;;  %v818_v7 = vpop.f32.mrf.mxu2  ;;  %v838_v1 = vpop.f32.mrf.mxu3  ;;  %v542_v44 = vld [vmem:[#allocation2 + $0x8c] sm:$0x1] }
 0x127   : > { %1302 = vst [vmem:[#allocation2 + $0x78] sm:$0xf] %v1301_v50  ;;  %v945_v60 = vor.u32 %v943_v39, %v942_v46  ;;  %v947_v61 = vrot.slane %v942_v46, 4  ;;  %v1013_v62 = vor.u32 %v1011_v45, %v1010_v47  ;;  %v1015_v63 = vrot.slane %v1010_v47, 4  ;;  %v780_v32 = vpop.f32.mrf.mxu0  ;;  %v800_v33 = vpop.f32.mrf.mxu1 }
 0x128   : > { %1330 = vst [vmem:[#allocation2 + $0xa8] sm:$0xf] %v1329_v52  ;;  %v1079_v4 = vshll.u32 %v899_v48, 16  ;;  %v1144_v5 = vshrl.u32 %v907_v49, 16  ;;  %v1147_v6 = vshll.u32 %v907_v49, 16  ;;  %v1078_v12 = vrot.slane %v1076_v2, 7 }
 0x129   : > { %v946_v8 = vsel %vm6384_vm8, %v938_v53, %v945_v60  ;;  %v1249_v9 = vsel %vm6282_vm2, %v947_v61, %v1248_v55  ;;  %v1014_v11 = vsel %vm6384_vm8, %v1006_v38, %v1013_v62  ;;  %v1277_v54 = vsel %vm6282_vm2, %v1015_v63, %v1276_v56  ;;  %476 = vst [vmem:[#allocation2 + $0x54] sm:$0x1] %v475_v58  ;;  %v1332_v53 = vld [vmem:[#allocation2 + $0xb0] sm:$0x1] }
 0x12a   : > { %1247 = vst [vmem:[#allocation2 + $0x1c] sm:$0xf] %v946_v8  ;;  %v1146_v3 = vrot.slane %v1144_v5, 7  ;;  %v884_v14 = vpack.c.bf16 %v852_v57, %v852_v57  ;;  %v799_v59 = vadd.f32 %v6326_v51, %v798_v42  ;;  %v1142_v15 = vrot.slane %v6429_v34, 4  ;;  %v554_v8 = vld [vmem:[#allocation2 + $0xbc] sm:$0x1] }
 0x12b   : > { %1250 = vst [vmem:[#allocation2 + $0x20] sm:$0x1] %v1249_v9  ;;  %v487_v16 = vsel %vm6282_vm2, 0, %v486_v0  ;;  %v819_v17 = vadd.f32 %v6326_v51, %v818_v7  ;;  %v839_v19 = vadd.f32 %v6326_v51, %v838_v1  ;;  %v1081_v20 = vor.u32 %v1079_v4, %v1078_v12 }
 0x12c   : > { %1275 = vst [vmem:[#allocation2 + $0x4c] sm:$0xf] %v1014_v11  ;;  %v1083_v21 = vrot.slane %v1078_v12, 4  ;;  %v1149_v23 = vor.u32 %v1147_v6, %v1146_v3  ;;  %v1151_v25 = vrot.slane %v1146_v3, 4  ;;  %v949_v28 = vshrl.u32 %v884_v14, 16 }
 0x12d   : > { %1278 = vst [vmem:[#allocation2 + $0x50] sm:$0x1] %v1277_v54  ;;  %v952_v29 = vshll.u32 %v884_v14, 16  ;;  %v860_v30 = vmax.f32 %v799_v59, 0.0  ;;  %v868_v31 = vmax.f32 %v819_v17, 0.0  ;;  %v1082_v34 = vsel %vm6384_vm8, %v1074_v43, %v1081_v20 }
 0x12e   : > { %v1305_v35 = vsel %vm6282_vm2, %v1083_v21, %v1304_v13  ;;  %v1150_v36 = vsel %vm6384_vm8, %v1142_v15, %v1149_v23  ;;  %v1333_v38 = vsel %vm6282_vm2, %v1151_v25, %v1332_v53  ;;  %488 = vst [vmem:[#allocation2 + $0x84] sm:$0x1] %v487_v16  ;;  %v6468_v39 = vrot.slane %v949_v28, 7  ;;  %v1251_v43 = vld [vmem:[#allocation2 + $0x24] sm:$0xf]  ;;  %v820_v62 = vpop.f32.mrf.mxu2  ;;  %v840_v3 = vpop.f32.mrf.mxu3 }
 0x12f   : > { %1303 = vst [vmem:[#allocation2 + $0x7c] sm:$0xf] %v1082_v34  ;;  %v892_v40 = vpack.c.bf16 %v860_v30, %v860_v30  ;;  %v900_v42 = vpack.c.bf16 %v868_v31, %v868_v31  ;;  %v876_v41 = vmax.f32 %v839_v19, 0.0  ;;  %v499_v45 = vsel %vm6282_vm2, 0, %v498_v18  ;;  %v465_v14 = vld [vmem:[#allocation2 + $0x30] sm:$0x1]  ;;  %v783_v21 = vpop.f32.mrf.mxu0 }
 0x130   : > { %1306 = vst [vmem:[#allocation2 + $0x80] sm:$0x1] %v1305_v35  ;;  %v519_v46 = vsel %vm6293_vm4, 0, %v518_v27  ;;  %v781_v47 = vadd.f32 %v6326_v51, %v780_v32  ;;  %v801_v48 = vadd.f32 %v6326_v51, %v800_v33  ;;  %v954_v49 = vor.u32 %v952_v29, %v6468_v39  ;;  %v1279_v57 = vld [vmem:[#allocation2 + $0x54] sm:$0xf] }
 0x131   : > { %1331 = vst [vmem:[#allocation2 + $0xac] sm:$0xf] %v1150_v36  ;;  %v1017_v50 = vshrl.u32 %v892_v40, 16  ;;  %v1020_v52 = vshll.u32 %v892_v40, 16  ;;  %v531_v55 = vsel %vm6293_vm4, 0, %v530_v37  ;;  %v955_v56 = vrot.slane %v6468_v39, 4 }
 0x132   : > { %1334 = vst [vmem:[#allocation2 + $0xb0] sm:$0x1] %v1333_v38  ;;  %v1085_v58 = vshrl.u32 %v900_v42, 16  ;;  %v908_v60 = vpack.c.bf16 %v876_v41, %v876_v41  ;;  %v853_v61 = vmax.f32 %v781_v47, 0.0  ;;  %v1252_v63 = vsel %vm6352_vm6, %v954_v49, %v1251_v43  ;;  %v477_v33 = vld [vmem:[#allocation2 + $0x60] sm:$0x1] }
 0x133   : > { %v6482_v0 = vrot.slane %v1017_v50, 7  ;;  %v1088_v2 = vshll.u32 %v900_v42, 16  ;;  %500 = vst [vmem:[#allocation2 + $0xb4] sm:$0x1] %v499_v45  ;;  %v861_v4 = vmax.f32 %v801_v48, 0.0  ;;  %v543_v1 = vsel %vm6293_vm4, 0, %v542_v44  ;;  %v803_v44 = vpop.f32.mrf.mxu1 }
 0x134   : > { %1253 = vst [vmem:[#allocation2 + $0x24] sm:$0xf] %v1252_v63  ;;  %v6484_v5 = vrot.slane %v1085_v58, 7  ;;  %v1153_v6 = vshrl.u32 %v908_v60, 16  ;;  %v885_v7 = vpack.c.bf16 %v853_v61, %v853_v61  ;;  %v1156_v54 = vshll.u32 %v908_v60, 16 }
 0x135   : > { %v1022_v9 = vor.u32 %v1020_v52, %v6482_v0  ;;  %v1307_v11 = vld [vmem:[#allocation2 + $0x84] sm:$0xf]  ;;  %520 = vst [vmem:[#allocation2 + $0x2c] sm:$0x1] %v519_v46  ;;  %v893_v12 = vpack.c.bf16 %v861_v4, %v861_v4  ;;  %v821_v13 = vadd.f32 %v6326_v51, %v820_v62  ;;  %v1023_v59 = vrot.slane %v6482_v0, 4 }
 0x136   : > { %v1090_v15 = vor.u32 %v1088_v2, %v6484_v5  ;;  %v6492_v53 = vrot.slane %v1153_v6, 7  ;;  %v957_v16 = vshrl.u32 %v885_v7, 16  ;;  %532 = vst [vmem:[#allocation2 + $0x5c] sm:$0x1] %v531_v55  ;;  %v1091_v18 = vrot.slane %v6484_v5, 4  ;;  %v823_v50 = vpop.f32.mrf.mxu2 }
 0x137   : > { %v1280_v17 = vsel %vm6352_vm6, %v1022_v9, %v1279_v57  ;;  %v960_v19 = vshll.u32 %v885_v7, 16  ;;  %v1025_v20 = vshrl.u32 %v893_v12, 16  ;;  %544 = vst [vmem:[#allocation2 + $0x8c] sm:$0x1] %v543_v1  ;;  %v1028_v28 = vshll.u32 %v893_v12, 16  ;;  %v843_v1 = vpop.f32.mrf.mxu3 }
 0x138   : > { %1281 = vst [vmem:[#allocation2 + $0x54] sm:$0xf] %v1280_v17  ;;  %v1308_v23 = vsel %vm6352_vm6, %v1090_v15, %v1307_v11  ;;  %v1158_v25 = vor.u32 %v1156_v54, %v6492_v53  ;;  %v959_v27 = vrot.slane %v957_v16, 7  ;;  %v869_v30 = vmax.f32 %v821_v13, 0.0  ;;  %v489_v43 = vld [vmem:[#allocation2 + $0x90] sm:$0x1]  ;;  %v785_v15 = vpop.f32.mrf.mxu0 }
 0x139   : > { %1309 = vst [vmem:[#allocation2 + $0x84] sm:$0xf] %v1308_v23  ;;  %v1027_v29 = vrot.slane %v1025_v20, 7  ;;  %v555_v31 = vsel %vm6293_vm4, 0, %v554_v8  ;;  %v841_v32 = vadd.f32 %v6326_v51, %v840_v3  ;;  %v466_v38 = vsel %vm6282_vm2, 0, %v465_v14 }
 0x13a   : > { %v1335_v34 = vld [vmem:[#allocation2 + $0xb4] sm:$0xf]  ;;  %v962_v35 = vor.u32 %v960_v19, %v959_v27  ;;  %v964_v36 = vrot.slane %v959_v27, 4  ;;  %556 = vst [vmem:[#allocation2 + $0xbc] sm:$0x1] %v555_v31  ;;  %v784_v37 = vadd.f32 %v6326_v51, %v783_v21  ;;  %v901_v41 = vpack.c.bf16 %v869_v30, %v869_v30 }
 0x13b   : > { %v1336_v39 = vsel %vm6352_vm6, %v1158_v25, %v1335_v34  ;;  %v1030_v40 = vor.u32 %v1028_v28, %v1027_v29  ;;  %v1032_v42 = vrot.slane %v1027_v29, 4  ;;  %467 = vst [vmem:[#allocation2 + $0x30] sm:$0x1] %v466_v38  ;;  %v877_v47 = vmax.f32 %v841_v32, 0.0  ;;  %v521_v32 = vld [vmem:[#allocation2 + $0x38] sm:$0x1] }
 0x13c   : > { %1337 = vst [vmem:[#allocation2 + $0xb4] sm:$0xf] %v1336_v39  ;;  %v963_v45 = vsel %vm6384_vm8, %v955_v56, %v962_v35  ;;  %v1255_v46 = vld [vmem:[#allocation2 + $0x2c] sm:$0x1]  ;;  %v854_v48 = vmax.f32 %v784_v37, 0.0  ;;  %v804_v49 = vadd.f32 %v6326_v51, %v803_v44  ;;  %v1093_v58 = vshrl.u32 %v901_v41, 16 }
 0x13d   : > { %1254 = vst [vmem:[#allocation2 + $0x28] sm:$0xf] %v963_v45  ;;  %v1256_v52 = vsel %vm6282_vm2, %v964_v36, %v1255_v46  ;;  %v1031_v55 = vsel %vm6384_vm8, %v1023_v59, %v1030_v40  ;;  %v1283_v57 = vld [vmem:[#allocation2 + $0x5c] sm:$0x1]  ;;  %v1096_v60 = vshll.u32 %v901_v41, 16  ;;  %v909_v62 = vpack.c.bf16 %v877_v47, %v877_v47  ;;  %v805_v36 = vpop.f32.mrf.mxu1 }
 0x13e   : > { %1257 = vst [vmem:[#allocation2 + $0x2c] sm:$0x1] %v1256_v52  ;;  %v1284_v56 = vsel %vm6282_vm2, %v1032_v42, %v1283_v57  ;;  %v1311_v61 = vld [vmem:[#allocation2 + $0x8c] sm:$0x1]  ;;  %v886_v63 = vpack.c.bf16 %v854_v48, %v854_v48  ;;  %v478_v0 = vsel %vm6282_vm2, 0, %v477_v33  ;;  %v1095_v2 = vrot.slane %v1093_v58, 7  ;;  %v825_v41 = vpop.f32.mrf.mxu2 }
 0x13f   : > { %1282 = vst [vmem:[#allocation2 + $0x58] sm:$0xf] %v1031_v55  ;;  %v862_v4 = vmax.f32 %v804_v49, 0.0  ;;  %v490_v6 = vsel %vm6282_vm2, 0, %v489_v43  ;;  %v824_v7 = vadd.f32 %v6326_v51, %v823_v50  ;;  %v1159_v8 = vrot.slane %v6492_v53, 4 }
 0x140   : > { %1285 = vst [vmem:[#allocation2 + $0x5c] sm:$0x1] %v1284_v56  ;;  %v1161_v9 = vshrl.u32 %v909_v62, 16  ;;  %v966_v11 = vshrl.u32 %v886_v63, 16  ;;  %v969_v54 = vshll.u32 %v886_v63, 16  ;;  %v1098_v12 = vor.u32 %v1096_v60, %v1095_v2 }
 0x141   : > { %v1100_v13 = vrot.slane %v1095_v2, 4  ;;  %479 = vst [vmem:[#allocation2 + $0x60] sm:$0x1] %v478_v0  ;;  %v894_v3 = vpack.c.bf16 %v862_v4, %v862_v4  ;;  %v870_v14 = vmax.f32 %v824_v7, 0.0  ;;  %v501_v59 = vld [vmem:[#allocation2 + $0xc0] sm:$0x1]  ;;  %v844_v20 = vadd.f32 %v6326_v51, %v843_v1  ;;  %v845_v2 = vpop.f32.mrf.mxu3 }
 0x142   : > { %v1163_v16 = vrot.slane %v1161_v9, 7  ;;  %v1164_v17 = vshll.u32 %v909_v62, 16  ;;  %v6523_v19 = vrot.slane %v966_v11, 7  ;;  %491 = vst [vmem:[#allocation2 + $0x90] sm:$0x1] %v490_v6  ;;  %v1099_v53 = vsel %vm6384_vm8, %v1091_v18, %v1098_v12 }
 0x143   : > { %v1312_v21 = vsel %vm6282_vm2, %v1100_v13, %v1311_v61  ;;  %v1339_v23 = vld [vmem:[#allocation2 + $0xbc] sm:$0x1]  ;;  %v1258_v25 = vld [vmem:[#allocation2 + $0x30] sm:$0xf]  ;;  %v1034_v27 = vshrl.u32 %v894_v3, 16  ;;  %v1037_v28 = vshll.u32 %v894_v3, 16  ;;  %v786_v33 = vadd.f32 %v6326_v51, %v785_v15 }
 0x144   : > { %1310 = vst [vmem:[#allocation2 + $0x88] sm:$0xf] %v1099_v53  ;;  %v1166_v29 = vor.u32 %v1164_v17, %v1163_v16  ;;  %v1168_v30 = vrot.slane %v1163_v16, 4  ;;  %v971_v31 = vor.u32 %v969_v54, %v6523_v19  ;;  %v902_v34 = vpack.c.bf16 %v870_v14, %v870_v14  ;;  %v533_v40 = vld [vmem:[#allocation2 + $0x68] sm:$0x1] }
 0x145   : > { %1313 = vst [vmem:[#allocation2 + $0x8c] sm:$0x1] %v1312_v21  ;;  %v6534_v5 = vrot.slane %v1034_v27, 7  ;;  %v502_v18 = vsel %vm6282_vm2, 0, %v501_v59  ;;  %v878_v35 = vmax.f32 %v844_v20, 0.0  ;;  %v522_v45 = vsel %vm6293_vm4, 0, %v521_v32 }
 0x146   : > { %v1167_v38 = vsel %vm6384_vm8, %v1159_v8, %v1166_v29  ;;  %v1340_v37 = vsel %vm6282_vm2, %v1168_v30, %v1339_v23  ;;  %v1259_v39 = vsel %vm6352_vm6, %v971_v31, %v1258_v25  ;;  %503 = vst [vmem:[#allocation2 + $0xc0] sm:$0x1] %v502_v18  ;;  %v545_v42 = vld [vmem:[#allocation2 + $0x98] sm:$0x1]  ;;  %v1102_v43 = vshrl.u32 %v902_v34, 16 }
 0x147   : > { %1338 = vst [vmem:[#allocation2 + $0xb8] sm:$0xf] %v1167_v38  ;;  %v1039_v44 = vor.u32 %v1037_v28, %v6534_v5  ;;  %v557_v46 = vld [vmem:[#allocation2 + $0xc8] sm:$0x1]  ;;  %v1105_v48 = vshll.u32 %v902_v34, 16  ;;  %v910_v49 = vpack.c.bf16 %v878_v35, %v878_v35  ;;  %v855_v50 = vmax.f32 %v786_v33, 0.0 }
 0x148   : > { %1341 = vst [vmem:[#allocation2 + $0xbc] sm:$0x1] %v1340_v37  ;;  %v1286_v47 = vld [vmem:[#allocation2 + $0x60] sm:$0xf]  ;;  %v806_v52 = vadd.f32 %v6326_v51, %v805_v36  ;;  %v1104_v57 = vrot.slane %v1102_v43, 7  ;;  %v534_v60 = vsel %vm6293_vm4, 0, %v533_v40  ;;  %v826_v56 = vadd.f32 %v6326_v51, %v825_v41 }
 0x149   : > { %1260 = vst [vmem:[#allocation2 + $0x30] sm:$0xf] %v1259_v39  ;;  %v1287_v55 = vsel %vm6352_vm6, %v1039_v44, %v1286_v47  ;;  %v1314_v58 = vld [vmem:[#allocation2 + $0x90] sm:$0xf]  ;;  %v1170_v61 = vshrl.u32 %v910_v49, 16  ;;  %v887_v62 = vpack.c.bf16 %v855_v50, %v855_v50  ;;  %v546_v0 = vsel %vm6293_vm4, 0, %v545_v42 }
 0x14a   : > { %1288 = vst [vmem:[#allocation2 + $0x60] sm:$0xf] %v1287_v55  ;;  %v863_v63 = vmax.f32 %v806_v52, 0.0  ;;  %v1107_v4 = vor.u32 %v1105_v48, %v1104_v57  ;;  %v1173_v6 = vshll.u32 %v910_v49, 16  ;;  %v871_v7 = vmax.f32 %v826_v56, 0.0 }
 0x14b   : > { %523 = vst [vmem:[#allocation2 + $0x38] sm:$0x1] %v522_v45  ;;  %v1172_v1 = vrot.slane %v1170_v61, 7  ;;  %v974_v8 = vshrl.u32 %v887_v62, 16  ;;  %v558_v11 = vsel %vm6293_vm4, 0, %v557_v46  ;;  %v846_v3 = vadd.f32 %v6326_v51, %v845_v2 }
 0x14c   : > { %535 = vst [vmem:[#allocation2 + $0x68] sm:$0x1] %v534_v60  ;;  %v895_v9 = vpack.c.bf16 %v863_v63, %v863_v63  ;;  %v1315_v54 = vsel %vm6352_vm6, %v1107_v4, %v1314_v58  ;;  %v903_v13 = vpack.c.bf16 %v871_v7, %v871_v7  ;;  %v977_v15 = vshll.u32 %v887_v62, 16 }
 0x14d   : > { %v1342_v12 = vld [vmem:[#allocation2 + $0xc0] sm:$0xf]  ;;  %547 = vst [vmem:[#allocation2 + $0x98] sm:$0x1] %v546_v0  ;;  %v1175_v14 = vor.u32 %v1173_v6, %v1172_v1  ;;  %v976_v59 = vrot.slane %v974_v8, 7  ;;  %v972_v17 = vrot.slane %v6523_v19, 4 }
 0x14e   : > { %1316 = vst [vmem:[#allocation2 + $0x90] sm:$0xf] %v1315_v54  ;;  %v1042_v16 = vshrl.u32 %v895_v9, 16  ;;  %v1045_v20 = vshll.u32 %v895_v9, 16  ;;  %v1110_v53 = vshrl.u32 %v903_v13, 16  ;;  %v879_v26 = vmax.f32 %v846_v3, 0.0 }
 0x14f   : > { %559 = vst [vmem:[#allocation2 + $0xc8] sm:$0x1] %v558_v11  ;;  %v1343_v21 = vsel %vm6352_vm6, %v1175_v14, %v1342_v12  ;;  %v979_v23 = vor.u32 %v977_v15, %v976_v59  ;;  %v981_v25 = vrot.slane %v976_v59, 4  ;;  %v1040_v28 = vrot.slane %v6534_v5, 4 }
 0x150   : > { %v1044_v27 = vrot.slane %v1042_v16, 7  ;;  %1344 = vst [vmem:[#allocation2 + $0xc0] sm:$0xf] %v1343_v21  ;;  %v1112_v51 = vrot.slane %v1110_v53, 7  ;;  %v1113_v29 = vshll.u32 %v903_v13, 16  ;;  %v911_v30 = vpack.c.bf16 %v879_v26, %v879_v26 }
 0x151   : > { %v1108_v31 = vrot.slane %v1104_v57, 4  ;;  %v980_v19 = vsel %vm6384_vm8, %v972_v17, %v979_v23  ;;  %v1176_v45 = vrot.slane %v1172_v1, 4 }
 0x152   : > { %v1262_v32 = vld [vmem:[#allocation2 + $0x38] sm:$0x1]  ;;  %v1047_v33 = vor.u32 %v1045_v20, %v1044_v27  ;;  %v1049_v34 = vrot.slane %v1044_v27, 4  ;;  %1261 = vst [vmem:[#allocation2 + $0x34] sm:$0xf] %v980_v19  ;;  %v1115_v35 = vor.u32 %v1113_v29, %v1112_v51  ;;  %v1117_v36 = vrot.slane %v1112_v51, 4 }
 0x153   : > { %v1263_v24 = vsel %vm6282_vm2, %v981_v25, %v1262_v32  ;;  %v1290_v18 = vld [vmem:[#allocation2 + $0x68] sm:$0x1]  ;;  %v1178_v38 = vshrl.u32 %v911_v30, 16  ;;  %v1181_v44 = vshll.u32 %v911_v30, 16 }
 0x154   : > { %1264 = vst [vmem:[#allocation2 + $0x38] sm:$0x1] %v1263_v24  ;;  %v1048_v5 = vsel %vm6384_vm8, %v1040_v28, %v1047_v33  ;;  %v1291_v37 = vsel %vm6282_vm2, %v1049_v34, %v1290_v18  ;;  %v1318_v39 = vld [vmem:[#allocation2 + $0x98] sm:$0x1]  ;;  %v1116_v40 = vsel %vm6384_vm8, %v1108_v31, %v1115_v35 }
 0x155   : > { %1289 = vst [vmem:[#allocation2 + $0x64] sm:$0xf] %v1048_v5  ;;  %v1319_v42 = vsel %vm6282_vm2, %v1117_v36, %v1318_v39  ;;  %v1180_v41 = vrot.slane %v1178_v38, 7 }
 0x156   : > { %1292 = vst [vmem:[#allocation2 + $0x68] sm:$0x1] %v1291_v37  ;;  %v1346_v43 = vld [vmem:[#allocation2 + $0xc8] sm:$0x1] }
 0x157   : > { %1317 = vst [vmem:[#allocation2 + $0x94] sm:$0xf] %v1116_v40  ;;  %v1183_v46 = vor.u32 %v1181_v44, %v1180_v41  ;;  %v1185_v47 = vrot.slane %v1180_v41, 4 }
 0x158   : > { %1320 = vst [vmem:[#allocation2 + $0x98] sm:$0x1] %v1319_v42 }
 0x159   : > { %v1184_v48 = vsel %vm6384_vm8, %v1176_v45, %v1183_v46  ;;  %v1347_v49 = vsel %vm6282_vm2, %v1185_v47, %v1346_v43 }
 0x15a   : > { %1345 = vst [vmem:[#allocation2 + $0xc4] sm:$0xf] %v1184_v48 }
 0x15b   : > { %1348 = vst [vmem:[#allocation2 + $0xc8] sm:$0x1] %v1347_v49 }
 0x15c PF: > { %v5458_v50 = vld [vmem:[#allocation10 + $0x38] sm:$0xff]  ;;  %s7290_s21 = sld [smem:[#allocation20_spill]]  ;;  %v5457_v55 = vld [vmem:[#allocation10 + $0x30] sm:$0xff]  ;;  %v5456_v58 = vld [vmem:[#allocation10 + $0x28] sm:$0xff]  ;;  %vm1409_vm9 = vsmask.f32 3328 }
 0x15d   : > { %v5466_v52 = vld [vmem:[#allocation10 + $0x78] sm:$0xff]  ;;  %5556 = vmatpush.bf16.msra.mxu2 %v5458_v50  ;;  %v5465_v57 = vld [vmem:[#allocation10 + $0x70] sm:$0xff]  ;;  %3643 = vmatpush.bf16.msra.mxu0 %v5458_v50  ;;  %v5464_v60 = vld [vmem:[#allocation10 + $0x68] sm:$0xff]  ;;  %vm1410_vm10 = vsmask.f32 7440  ;;  %vm1684_vm12 = vcmask 1042432  }
 0x15e   : > { %5564 = vmatpush.bf16.msra.mxu3 %v5466_v52  ;;  %3692 = vmatpush.bf16.msra.mxu1 %v5466_v52  ;;  %v5455_v2 = vld [vmem:[#allocation10 + $0x20] sm:$0xff]  ;;  %vm6595_vm11 = vmor %vm1409_vm9, %vm1410_vm10  ;;  %v5454_v28 = vld [vmem:[#allocation10 + $0x18] sm:$0xff]  ;;  %vm1685_vm13 = vcmask 1046532   ;;  %s7295_s7 = sld [smem:[#allocation30_spill]]  ;;  %s4290_s24 = scalar_lea.sflag [#allocation6], %s380_s11 }
 0x15f   : > { %v5463_v54 = vld [vmem:[#allocation10 + $0x60] sm:$0xff]  ;;  %v5462_v51 = vld [vmem:[#allocation10 + $0x58] sm:$0xff]  ;;  %v5453_v24 = vld [vmem:[#allocation10 + $0x10] sm:$0xff]  ;;  %s7296_s5 = sld [smem:[#allocation32_spill]] }
 0x160   : > { %v5461_v5 = vld [vmem:[#allocation10 + $0x50] sm:$0xff]  ;;  %vm6679_vm14 = vmor %vm1684_vm12, %vm1685_vm13  ;;  %s7297_s18 = sld [smem:[#allocation21_spill]] }
 0x161   : > { %5557 = vmatpush.bf16.msra.mxu2 %v5457_v55  ;;  %3644 = vmatpush.bf16.msra.mxu0 %v5457_v55 }
 0x162   : > { %s5378_s25 = smul.u32 96, %s7290_s21  ;;  %5565 = vmatpush.bf16.msra.mxu3 %v5465_v57  ;;  %3693 = vmatpush.bf16.msra.mxu1 %v5465_v57  ;;  %s5531_s23 = sshll.u32 %s7290_s21, 4 }
 0x163   : > { %s4305_s21 = sshll.u32 %s6270_s8, 4  ;;  %s4306_s21 = int_to_ptr.vmem [resolvable:$true] %s4305_s21 }
 0x164   : > { %s6581_s30 = scalar_lea.vmem [#allocation2], %s5378_s25 }
 0x165   : > { %v1361_v22 = vld [vmem:[%s6581_s30 + $0x30] sm:$0xf]  ;;  %v1362_v10 = vld [vmem:[%s6581_s30 + $0x34] sm:$0xf]  ;;  %v1399_v62 = vld [vmem:[%s6581_s30 + $0x38] sm:$0x1]  ;;  %5558 = vmatpush.bf16.msra.mxu2 %v5456_v58  ;;  %3645 = vmatpush.bf16.msra.mxu0 %v5456_v58 }
 0x166   : > { %1377 = vst [vmem:[#allocation3 + $0x120] sm:$0xf] %v1361_v22  ;;  %v1397_v56 = vld [vmem:[%s6581_s30 + $0x30] sm:$0xf]  ;;  %v1398_v61 = vld [vmem:[%s6581_s30 + $0x34] sm:$0xf]  ;;  %5566 = vmatpush.bf16.msra.mxu3 %v5464_v60  ;;  %3694 = vmatpush.bf16.msra.mxu1 %v5464_v60 }
 0x167   : > { %1378 = vst [vmem:[#allocation3 + $0x144] sm:$0xf] %v1362_v10  ;;  %v1509_v63 = vshrl.u32 %v1397_v56, 16  ;;  %v1512_v0 = vshll.u32 %v1397_v56, 16  ;;  %v1518_v4 = vshll.u32 %v1398_v61, 16  ;;  %v1522_v6 = vshrl.u32 %v1398_v61, 16 }
 0x168   : > { %v1528_v7 = vshll.u32 %v1399_v62, 16  ;;  %v1353_v1 = vld [vmem:[%s6581_s30] sm:$0xf]  ;;  %v1354_v11 = vld [vmem:[%s6581_s30 + $0x4] sm:$0xf]  ;;  %s5348_s19 = sshll.u32 %s7297_s18, 5 }
 0x169   : > { %v1511_v8 = vrot.slane %v1509_v63, 4  ;;  %v1514_v9 = vrot.slane %v1512_v0, 5  ;;  %1369 = vst [vmem:[#allocation3] sm:$0xf] %v1353_v1  ;;  %v1520_v12 = vrot.slane %v1518_v4, 5  ;;  %v1524_v13 = vrot.slane %v1522_v6, 4  ;;  %5559 = vmatpush.bf16.msra.mxu2 %v5455_v2  ;;  %3646 = vmatpush.bf16.msra.mxu0 %v5455_v2  ;;  %s4302_s16 = sadd.s32 %s5531_s23, %s5348_s19 }
 0x16a   : > { %v1530_v3 = vrot.slane %v1528_v7, 5  ;;  %1370 = vst [vmem:[#allocation3 + $0x24] sm:$0xf] %v1354_v11  ;;  %v1385_v59 = vld [vmem:[%s6581_s30] sm:$0xf]  ;;  %5567 = vmatpush.bf16.msra.mxu3 %v5463_v54  ;;  %3695 = vmatpush.bf16.msra.mxu1 %v5463_v54  ;;  %v5451_v2 = vld [vmem:[#allocation10] sm:$0xff] }
 0x16b   : > { %v1515_v14 = vor.u32 %v1514_v9, %v1511_v8  ;;  %v1386_v15 = vld [vmem:[%s6581_s30 + $0x4] sm:$0xf]  ;;  %v1387_v16 = vld [vmem:[%s6581_s30 + $0x8] sm:$0x1]  ;;  %v1525_v20 = vor.u32 %v1524_v13, %v1520_v12  ;;  %v1413_v53 = vshrl.u32 %v1385_v59, 16  ;;  %v1416_v26 = vshll.u32 %v1385_v59, 16 }
 0x16c   : > { %v1422_v21 = vshll.u32 %v1386_v15, 16  ;;  %v1426_v25 = vshrl.u32 %v1386_v15, 16  ;;  %v1432_v27 = vshll.u32 %v1387_v16, 16  ;;  %v1363_v34 = vld [vmem:[%s6581_s30 + $0x3c] sm:$0xf]  ;;  %v5452_v22 = vld [vmem:[#allocation10 + $0x8] sm:$0xff] }
 0x16d   : > { %v1516_v23 = vrot.slane %v1515_v14, 4  ;;  %v1526_v29 = vrot.slane %v1525_v20, 4  ;;  %v1415_v30 = vrot.slane %v1413_v53, 4  ;;  %v1418_v31 = vrot.slane %v1416_v26, 5  ;;  %v1364_v36 = vld [vmem:[%s6581_s30 + $0x40] sm:$0xf]  ;;  %5560 = vmatpush.bf16.msra.mxu2 %v5454_v28  ;;  %3647 = vmatpush.bf16.msra.mxu0 %v5454_v28 }
 0x16e   : > { %v1424_v19 = vrot.slane %v1422_v21, 5  ;;  %v1428_v33 = vrot.slane %v1426_v25, 4  ;;  %v1400_v38 = vld [vmem:[%s6581_s30 + $0x3c] sm:$0xf]  ;;  %v1434_v39 = vrot.slane %v1432_v27, 5  ;;  %5568 = vmatpush.bf16.msra.mxu3 %v5462_v51  ;;  %3696 = vmatpush.bf16.msra.mxu1 %v5462_v51  ;;  %v5460_v10 = vld [vmem:[#allocation10 + $0x48] sm:$0xff] }
 0x16f   : > { %v1521_v32 = vsel %vm6595_vm11, %v1516_v23, %v1520_v12  ;;  %v1531_v18 = vsel %vm6595_vm11, %v1526_v29, %v1530_v3  ;;  %v1419_v35 = vor.u32 %v1418_v31, %v1415_v30  ;;  %v1401_v40 = vld [vmem:[%s6581_s30 + $0x40] sm:$0xf]  ;;  %1379 = vst [vmem:[#allocation3 + $0x168] sm:$0xf] %v1363_v34  ;;  %v1402_v41 = vld [vmem:[%s6581_s30 + $0x44] sm:$0x1] }
 0x170   : > { %1628 = vst [vmem:[#allocation3 + $0x124] sm:$0xf] %v1521_v32  ;;  %v1429_v37 = vor.u32 %v1428_v33, %v1424_v19  ;;  %v1533_v44 = vshrl.u32 %v1400_v38, 16  ;;  %v1536_v45 = vshll.u32 %v1400_v38, 16  ;;  %v1542_v46 = vshll.u32 %v1401_v40, 16  ;;  %v5459_v4 = vld [vmem:[#allocation10 + $0x40] sm:$0xff] }
 0x171   : > { %1629 = vst [vmem:[#allocation3 + $0x148] sm:$0xf] %v1531_v18  ;;  %v1420_v42 = vrot.slane %v1419_v35, 4  ;;  %v1546_v47 = vshrl.u32 %v1401_v40, 16  ;;  %v1552_v50 = vshll.u32 %v1402_v41, 16  ;;  %5561 = vmatpush.bf16.msra.mxu2 %v5453_v24  ;;  %3648 = vmatpush.bf16.msra.mxu0 %v5453_v24  ;;  %v5474_v9 = vld [vmem:[#allocation10 + $0xb8] sm:$0xff] }
 0x172   : > { %v1430_v43 = vrot.slane %v1429_v37, 4  ;;  %1380 = vst [vmem:[#allocation3 + $0x18c] sm:$0xf] %v1364_v36  ;;  %v1535_v49 = vrot.slane %v1533_v44, 4  ;;  %v1355_v52 = vld [vmem:[%s6581_s30 + $0xc] sm:$0xf]  ;;  %5569 = vmatpush.bf16.msra.mxu3 %v5461_v5  ;;  %3697 = vmatpush.bf16.msra.mxu1 %v5461_v5 }
 0x173   : > { %v1425_v48 = vsel %vm6595_vm11, %v1420_v42, %v1424_v19  ;;  %v1538_v57 = vrot.slane %v1536_v45, 5  ;;  %v1544_v58 = vrot.slane %v1542_v46, 5  ;;  %v1548_v60 = vrot.slane %v1546_v47, 4  ;;  %v1356_v56 = vld [vmem:[%s6581_s30 + $0x10] sm:$0xf]  ;;  %v5473_v34 = vld [vmem:[#allocation10 + $0xb0] sm:$0xff] }
 0x174   : > { %v1435_v55 = vsel %vm6595_vm11, %v1430_v43, %v1434_v39  ;;  %1620 = vst [vmem:[#allocation3 + $0x4] sm:$0xf] %v1425_v48  ;;  %v1554_v63 = vrot.slane %v1552_v50, 5  ;;  %v1388_v0 = vld [vmem:[%s6581_s30 + $0xc] sm:$0xf]  ;;  %v5482_v53 = vld [vmem:[#allocation10 + $0xf8] sm:$0xff] }
 0x175   : > { %1621 = vst [vmem:[#allocation3 + $0x28] sm:$0xf] %v1435_v55  ;;  %v1539_v61 = vor.u32 %v1538_v57, %v1535_v49  ;;  %v1549_v62 = vor.u32 %v1548_v60, %v1544_v58  ;;  %v4883_v6 = vld [vmem:[#allocation3 + $0x120] sm:$0xf]  ;;  %v5419_v7 = vld [vmem:[#allocation3 + $0x140] sm:$0xf0]  ;;  %5562 = vmatpush.bf16.msra.mxu2 %v5452_v22  ;;  %3649 = vmatpush.bf16.msra.mxu0 %v5452_v22 }
 0x176   : > { %1371 = vst [vmem:[#allocation3 + $0x48] sm:$0xf] %v1355_v52  ;;  %v1389_v1 = vld [vmem:[%s6581_s30 + $0x10] sm:$0xf]  ;;  %v4739_v11 = vld [vmem:[#allocation3] sm:$0xf]  ;;  %5570 = vmatpush.bf16.msra.mxu3 %v5460_v10  ;;  %3698 = vmatpush.bf16.msra.mxu1 %v5460_v10  ;;  %v4884_v29 = vor.u32 %v5419_v7, %v4883_v6 }
 0x177   : > { %1372 = vst [vmem:[#allocation3 + $0x6c] sm:$0xf] %v1356_v56  ;;  %v5415_v8 = vld [vmem:[#allocation3 + $0x124] sm:$0xf]  ;;  %v1540_v54 = vrot.slane %v1539_v61, 4  ;;  %v1550_v12 = vrot.slane %v1549_v62, 4 }
 0x178   : > { %v1390_v13 = vld [vmem:[%s6581_s30 + $0x14] sm:$0x1]  ;;  %v4885_v3 = vld [vmem:[#allocation3 + $0x144] sm:$0xf0]  ;;  %v1437_v14 = vshrl.u32 %v1388_v0, 16  ;;  %v1440_v59 = vshll.u32 %v1388_v0, 16 }
 0x179   : > { %v1446_v15 = vshll.u32 %v1389_v1, 16  ;;  %v1450_v16 = vshrl.u32 %v1389_v1, 16  ;;  %v5383_v20 = vld [vmem:[#allocation3 + $0x20] sm:$0xf0]  ;;  %v1545_v26 = vsel %vm6595_vm11, %v1540_v54, %v1544_v58  ;;  %v1555_v21 = vsel %vm6595_vm11, %v1550_v12, %v1554_v63  ;;  %v1365_v25 = vld [vmem:[%s6581_s30 + $0x48] sm:$0xf]  ;;  %5563 = vmatpush.bf16.msra.mxu2 %v5451_v2  ;;  %3650 = vmatpush.bf16.msra.mxu0 %v5451_v2 }
 0x17a   : > { %v1456_v23 = vshll.u32 %v1390_v13, 16  ;;  %1630 = vst [vmem:[#allocation3 + $0x16c] sm:$0xf] %v1545_v26  ;;  %v1439_v28 = vrot.slane %v1437_v14, 4  ;;  %v1442_v51 = vrot.slane %v1440_v59, 5  ;;  %v4888_v30 = vor.u32 %v5415_v8, %v4885_v3  ;;  %5571 = vmatpush.bf16.msra.mxu3 %v5459_v4  ;;  %v5481_v24 = vld [vmem:[#allocation10 + $0xf0] sm:$0xff]  ;;  %3699 = vmatpush.bf16.msra.mxu1 %v5459_v4 }
 0x17b   : > { %v5379_v27 = vld [vmem:[#allocation3 + $0x4] sm:$0xf]  ;;  %1631 = vst [vmem:[#allocation3 + $0x190] sm:$0xf] %v1555_v21  ;;  %v1448_v19 = vrot.slane %v1446_v15, 5  ;;  %v1452_v32 = vrot.slane %v1450_v16, 4  ;;  %v4740_v33 = vor.u32 %v5383_v20, %v4739_v11 }
 0x17c   : > { %v4741_v31 = vld [vmem:[#allocation3 + $0x24] sm:$0xf0]  ;;  %v1443_v18 = vor.u32 %v1442_v51, %v1439_v28  ;;  %v1366_v35 = vld [vmem:[%s6581_s30 + $0x4c] sm:$0xf]  ;;  %v5490_v38 = vld [vmem:[#allocation10 + $0x138] sm:$0xff]  ;;  %v1458_v37 = vrot.slane %v1456_v23, 5  ;;  %3671 = vmatmul.bf16.vlgmr.msra.gmra.mxu2 %v4884_v29 }
 0x17d   : > { %3741 = vmatpush.bf16.msrb.mxu2 %v5474_v9  ;;  %v4744_v36 = vor.u32 %v5379_v27, %v4741_v31  ;;  %v1453_v5 = vor.u32 %v1452_v32, %v1448_v19  ;;  %1381 = vst [vmem:[#allocation3 + $0x1b0] sm:$0xf] %v1365_v25  ;;  %v1403_v39 = vld [vmem:[%s6581_s30 + $0x48] sm:$0xf]  ;;  %v1404_v42 = vld [vmem:[%s6581_s30 + $0x4c] sm:$0xf]  ;;  %3720 = vmatmul.bf16.vlgmr.msra.gmra.mxu3 %v4888_v30 }
 0x17e   : > { %3790 = vmatpush.bf16.msrb.mxu3 %v5482_v53  ;;  %v1444_v40 = vrot.slane %v1443_v18, 4  ;;  %1382 = vst [vmem:[#allocation3 + $0x1d4] sm:$0xf] %v1366_v35  ;;  %v1557_v41 = vshrl.u32 %v1403_v39, 16  ;;  %v1405_v43 = vld [vmem:[%s6581_s30 + $0x50] sm:$0x1]  ;;  %3651 = vmatmul.bf16.vlgmr.msra.gmra.mxu0 %v4740_v33 }
 0x17f   : > { %v1454_v44 = vrot.slane %v1453_v5, 4  ;;  %v1560_v45 = vshll.u32 %v1403_v39, 16  ;;  %v1566_v46 = vshll.u32 %v1404_v42, 16  ;;  %v1570_v47 = vshrl.u32 %v1404_v42, 16  ;;  %v1357_v52 = vld [vmem:[%s6581_s30 + $0x18] sm:$0xf]  ;;  %3700 = vmatmul.bf16.vlgmr.msra.gmra.mxu1 %v4744_v36  ;;  %3839 = vmatpush.bf16.msrb.mxu0 %v5490_v38 }
 0x180   : > { %v1449_v48 = vsel %vm6595_vm11, %v1444_v40, %v1448_v19  ;;  %v1559_v49 = vrot.slane %v1557_v41, 4  ;;  %v1576_v50 = vshll.u32 %v1405_v43, 16  ;;  %v5472_v55 = vld [vmem:[#allocation10 + $0xa8] sm:$0xff]  ;;  %v5489_v10 = vld [vmem:[#allocation10 + $0x130] sm:$0xff]  ;;  %v1358_v62 = vld [vmem:[%s6581_s30 + $0x1c] sm:$0xf] }
 0x181   : > { %3742 = vmatpush.bf16.msrb.mxu2 %v5473_v34  ;;  %v1459_v57 = vsel %vm6595_vm11, %v1454_v44, %v1458_v37  ;;  %1622 = vst [vmem:[#allocation3 + $0x4c] sm:$0xf] %v1449_v48  ;;  %v1562_v58 = vrot.slane %v1560_v45, 5  ;;  %v1568_v60 = vrot.slane %v1566_v46, 5  ;;  %v5480_v22 = vld [vmem:[#allocation10 + $0xe8] sm:$0xff]  ;;  %v1572_v56 = vrot.slane %v1570_v47, 4 }
 0x182   : > { %3791 = vmatpush.bf16.msrb.mxu3 %v5481_v24  ;;  %1623 = vst [vmem:[#allocation3 + $0x70] sm:$0xf] %v1459_v57  ;;  %v1578_v0 = vrot.slane %v1576_v50, 5  ;;  %v1391_v2 = vld [vmem:[%s6581_s30 + $0x18] sm:$0xf]  ;;  %v5488_v12 = vld [vmem:[#allocation10 + $0x128] sm:$0xff] }
 0x183   : > { %v1563_v61 = vor.u32 %v1562_v58, %v1559_v49  ;;  %1373 = vst [vmem:[#allocation3 + $0x90] sm:$0xf] %v1357_v52  ;;  %v1573_v63 = vor.u32 %v1572_v56, %v1568_v60  ;;  %v5471_v4 = vld [vmem:[#allocation10 + $0xa0] sm:$0xff]  ;;  %v1461_v8 = vshrl.u32 %v1391_v2, 16  ;;  %v6634_v9 = vld [vmem:[#allocation3 + $0x168] sm:$0xf]  ;;  %3840 = vmatpush.bf16.msrb.mxu0 %v5489_v10 }
 0x184   : > { %1374 = vst [vmem:[#allocation3 + $0xb4] sm:$0xf] %v1358_v62  ;;  %v5479_v6 = vld [vmem:[#allocation10 + $0xe0] sm:$0xff]  ;;  %v6636_v11 = vld [vmem:[#allocation3 + $0x188] sm:$0xf0]  ;;  %v1464_v14 = vshll.u32 %v1391_v2, 16 }
 0x185   : > { %3743 = vmatpush.bf16.msrb.mxu2 %v5472_v55  ;;  %v1564_v7 = vrot.slane %v1563_v61, 4  ;;  %v1392_v1 = vld [vmem:[%s6581_s30 + $0x1c] sm:$0xf]  ;;  %v6638_v54 = vld [vmem:[#allocation3 + $0x16c] sm:$0xf]  ;;  %v1574_v13 = vrot.slane %v1573_v63, 4  ;;  %v4920_v35 = vor.u32 %v6636_v11, %v6634_v9 }
 0x186   : > { %3792 = vmatpush.bf16.msrb.mxu3 %v5480_v22  ;;  %v1393_v3 = vld [vmem:[%s6581_s30 + $0x20] sm:$0x1]  ;;  %v1470_v59 = vshll.u32 %v1392_v1, 16  ;;  %v4921_v15 = vld [vmem:[#allocation3 + $0x18c] sm:$0xf0]  ;;  %v5470_v26 = vld [vmem:[#allocation10 + $0x98] sm:$0xff] }
 0x187   : > { %v4775_v16 = vld [vmem:[#allocation3 + $0x48] sm:$0xf]  ;;  %v5392_v20 = vld [vmem:[#allocation3 + $0x68] sm:$0xf0]  ;;  %v1569_v53 = vsel %vm6595_vm11, %v1564_v7, %v1568_v60  ;;  %v1463_v21 = vrot.slane %v1461_v8, 4  ;;  %v1474_v23 = vshrl.u32 %v1392_v1, 16  ;;  %v1579_v51 = vsel %vm6595_vm11, %v1574_v13, %v1578_v0  ;;  %3841 = vmatpush.bf16.msrb.mxu0 %v5488_v12 }
 0x188   : > { %v1480_v25 = vshll.u32 %v1393_v3, 16  ;;  %v5498_v27 = vld [vmem:[#allocation10 + $0x178] sm:$0xff]  ;;  %v5388_v28 = vld [vmem:[#allocation3 + $0x4c] sm:$0xf]  ;;  %1632 = vst [vmem:[#allocation3 + $0x1b4] sm:$0xf] %v1569_v53  ;;  %v4924_v36 = vor.u32 %v6638_v54, %v4921_v15  ;;  %v4776_v40 = vor.u32 %v5392_v20, %v4775_v16 }
 0x189   : > { %v1466_v29 = vrot.slane %v1464_v14, 5  ;;  %v1472_v30 = vrot.slane %v1470_v59, 5  ;;  %v4777_v31 = vld [vmem:[#allocation3 + $0x6c] sm:$0xf0]  ;;  %3744 = vmatpush.bf16.msrb.mxu2 %v5471_v4  ;;  %1633 = vst [vmem:[#allocation3 + $0x1d8] sm:$0xf] %v1579_v51  ;;  %3888 = vmatpush.bf16.msrb.mxu1 %v5498_v27 }
 0x18a   : > { %v5478_v19 = vld [vmem:[#allocation10 + $0xd8] sm:$0xff]  ;;  %v1476_v32 = vrot.slane %v1474_v23, 4  ;;  %3793 = vmatpush.bf16.msrb.mxu3 %v5479_v6  ;;  %v5487_v33 = vld [vmem:[#allocation10 + $0x120] sm:$0xff]  ;;  %v1482_v5 = vrot.slane %v1480_v25, 5  ;;  %v5469_v37 = vld [vmem:[#allocation10 + $0x90] sm:$0xff]  ;;  %v4780_v42 = vor.u32 %v5388_v28, %v4777_v31  ;;  %s5349_s4 = sshll.u32 %s4302_s16, 3 }
 0x18b   : > { %v1467_v34 = vor.u32 %v1466_v29, %v1463_v21  ;;  %v1367_v24 = vld [vmem:[%s6581_s30 + $0x54] sm:$0xf]  ;;  %v1368_v18 = vld [vmem:[%s6581_s30 + $0x58] sm:$0xf]  ;;  %v5477_v44 = vld [vmem:[#allocation10 + $0xd0] sm:$0xff]  ;;  %3842 = vmatpush.bf16.msrb.mxu0 %v5487_v33 }
 0x18c   : > { %v1477_v38 = vor.u32 %v1476_v32, %v1472_v30  ;;  %1383 = vst [vmem:[#allocation3 + $0x1f8] sm:$0xf] %v1367_v24  ;;  %v1406_v39 = vld [vmem:[%s6581_s30 + $0x54] sm:$0xf]  ;;  %v1407_v43 = vld [vmem:[%s6581_s30 + $0x58] sm:$0xf]  ;;  %3676 = vmatmul.bf16.gmra.mxu2 %v4920_v35 }
 0x18d   : > { %v1468_v41 = vrot.slane %v1467_v34, 4  ;;  %1384 = vst [vmem:[#allocation3 + $0x21c] sm:$0xf] %v1368_v18  ;;  %v1581_v45 = vshrl.u32 %v1406_v39, 16  ;;  %3745 = vmatpush.bf16.msrb.mxu2 %v5470_v26  ;;  %v1408_v47 = vld [vmem:[%s6581_s30 + $0x5c] sm:$0x1]  ;;  %3725 = vmatmul.bf16.gmra.mxu3 %v4924_v36 }
 0x18e   : > { %v1478_v46 = vrot.slane %v1477_v38, 4  ;;  %v1584_v48 = vshll.u32 %v1406_v39, 16  ;;  %v1590_v49 = vshll.u32 %v1407_v43, 16  ;;  %v1594_v50 = vshrl.u32 %v1407_v43, 16  ;;  %3794 = vmatpush.bf16.msrb.mxu3 %v5478_v19  ;;  %v5486_v55 = vld [vmem:[#allocation10 + $0x118] sm:$0xff]  ;;  %v5497_v60 = vld [vmem:[#allocation10 + $0x170] sm:$0xff]  ;;  %3656 = vmatmul.bf16.gmra.mxu0 %v4776_v40 }
 0x18f   : > { %v1473_v52 = vsel %vm6595_vm11, %v1468_v41, %v1472_v30  ;;  %v1583_v57 = vrot.slane %v1581_v45, 4  ;;  %v1600_v58 = vshll.u32 %v1408_v47, 16  ;;  %v1359_v22 = vld [vmem:[%s6581_s30 + $0x24] sm:$0xf]  ;;  %3889 = vmatpush.bf16.msrb.mxu1 %v5497_v60  ;;  %v1360_v2 = vld [vmem:[%s6581_s30 + $0x28] sm:$0xf]  ;;  %3843 = vmatpush.bf16.msrb.mxu0 %v5486_v55 }
 0x190   : > { %v1483_v10 = vsel %vm6595_vm11, %v1478_v46, %v1482_v5  ;;  %1624 = vst [vmem:[#allocation3 + $0x94] sm:$0xf] %v1473_v52  ;;  %v1586_v56 = vrot.slane %v1584_v48, 5  ;;  %v1592_v61 = vrot.slane %v1590_v49, 5  ;;  %v1596_v62 = vrot.slane %v1594_v50, 4  ;;  %3705 = vmatmul.bf16.gmra.mxu1 %v4780_v42  ;;  %v5468_v0 = vld [vmem:[#allocation10 + $0x88] sm:$0xff] }
 0x191   : > { %1625 = vst [vmem:[#allocation3 + $0xb8] sm:$0xf] %v1483_v10  ;;  %3746 = vmatpush.bf16.msrb.mxu2 %v5469_v37  ;;  %v1602_v6 = vrot.slane %v1600_v58, 5  ;;  %v5476_v7 = vld [vmem:[#allocation10 + $0xc8] sm:$0xff]  ;;  %v5485_v1 = vld [vmem:[#allocation10 + $0x110] sm:$0xff]  ;;  %v5467_v21 = vld [vmem:[#allocation10 + $0x80] sm:$0xff] }
 0x192   : > { %v1587_v63 = vor.u32 %v1586_v56, %v1583_v57  ;;  %1375 = vst [vmem:[#allocation3 + $0xd8] sm:$0xf] %v1359_v22  ;;  %3795 = vmatpush.bf16.msrb.mxu3 %v5477_v44  ;;  %v1597_v4 = vor.u32 %v1596_v62, %v1592_v61  ;;  %v5496_v8 = vld [vmem:[#allocation10 + $0x168] sm:$0xff]  ;;  %v6660_v54 = vld [vmem:[#allocation3 + $0x1b0] sm:$0xf]  ;;  %v5495_v23 = vld [vmem:[#allocation10 + $0x160] sm:$0xff] }
 0x193   : > { %1376 = vst [vmem:[#allocation3 + $0xfc] sm:$0xf] %v1360_v2  ;;  %v1394_v11 = vld [vmem:[%s6581_s30 + $0x24] sm:$0xf]  ;;  %v6662_v12 = vld [vmem:[#allocation3 + $0x1d0] sm:$0xf0]  ;;  %3890 = vmatpush.bf16.msrb.mxu1 %v5496_v8  ;;  %3844 = vmatpush.bf16.msrb.mxu0 %v5485_v1 }
 0x194   : > { %v1588_v9 = vrot.slane %v1587_v63, 4  ;;  %v1598_v13 = vrot.slane %v1597_v4, 4  ;;  %v1395_v3 = vld [vmem:[%s6581_s30 + $0x28] sm:$0xf]  ;;  %v1396_v14 = vld [vmem:[%s6581_s30 + $0x2c] sm:$0x1]  ;;  %v4956_v36 = vor.u32 %v6662_v12, %v6660_v54 }
 0x195   : > { %v1485_v59 = vshrl.u32 %v1394_v11, 16  ;;  %v6666_v15 = vld [vmem:[#allocation3 + $0x1b4] sm:$0xf]  ;;  %3747 = vmatpush.bf16.msrb.mxu2 %v5468_v0  ;;  %v1488_v20 = vshll.u32 %v1394_v11, 16  ;;  %v1494_v53 = vshll.u32 %v1395_v3, 16  ;;  %v1498_v26 = vshrl.u32 %v1395_v3, 16 }
 0x196   : > { %v1593_v16 = vsel %vm6595_vm11, %v1588_v9, %v1592_v61  ;;  %v1603_v25 = vsel %vm6595_vm11, %v1598_v13, %v1602_v6  ;;  %3796 = vmatpush.bf16.msrb.mxu3 %v5476_v7  ;;  %v1504_v28 = vshll.u32 %v1396_v14, 16  ;;  %v5475_v51 = vld [vmem:[#allocation10 + $0xc0] sm:$0xff]  ;;  %v5484_v29 = vld [vmem:[#allocation10 + $0x108] sm:$0xff]  ;;  %v4957_v30 = vld [vmem:[#allocation3 + $0x1d4] sm:$0xf0] }
 0x197   : > { %1634 = vst [vmem:[#allocation3 + $0x1fc] sm:$0xf] %v1593_v16  ;;  %v1487_v27 = vrot.slane %v1485_v59, 4  ;;  %v4811_v31 = vld [vmem:[#allocation3 + $0x90] sm:$0xf]  ;;  %v1490_v32 = vrot.slane %v1488_v20, 5  ;;  %3891 = vmatpush.bf16.msrb.mxu1 %v5495_v23  ;;  %v4960_v42 = vor.u32 %v6666_v15, %v4957_v30  ;;  %3845 = vmatpush.bf16.msrb.mxu0 %v5484_v29 }
 0x198   : > { %v5401_v19 = vld [vmem:[#allocation3 + $0xb0] sm:$0xf0]  ;;  %1635 = vst [vmem:[#allocation3 + $0x220] sm:$0xf] %v1603_v25  ;;  %v1496_v33 = vrot.slane %v1494_v53, 5  ;;  %v1500_v18 = vrot.slane %v1498_v26, 4 }
 0x199   : > { %v5397_v34 = vld [vmem:[#allocation3 + $0x94] sm:$0xf]  ;;  %v4813_v24 = vld [vmem:[#allocation3 + $0xb4] sm:$0xf0]  ;;  %v1491_v38 = vor.u32 %v1490_v32, %v1487_v27  ;;  %v1506_v5 = vrot.slane %v1504_v28, 5  ;;  %3748 = vmatpush.bf16.msrb.mxu2 %v5467_v21  ;;  %v5483_v37 = vld [vmem:[#allocation10 + $0x100] sm:$0xff]  ;;  %v4812_v52 = vor.u32 %v5401_v19, %v4811_v31 }
 0x19a   : > { %v5494_v35 = vld [vmem:[#allocation10 + $0x158] sm:$0xff]  ;;  %v1636_v39 = vld [vmem:[%s6581_s30] sm:$0xe]  ;;  %v1637_v40 = vld [vmem:[%s6581_s30 + $0x4] sm:$0xf]  ;;  %v1501_v41 = vor.u32 %v1500_v18, %v1496_v33  ;;  %3797 = vmatpush.bf16.msrb.mxu3 %v5475_v51  ;;  %v4816_v55 = vor.u32 %v5397_v34, %v4813_v24 }
 0x19b   : > { %v1638_v44 = vld [vmem:[%s6581_s30 + $0x8] sm:$0x1]  ;;  %v4591_v43 = vld [vmem:[%s6581_s30 + $0xc] sm:$0xf]  ;;  %v1492_v45 = vrot.slane %v1491_v38, 4  ;;  %v4581_v47 = vrot.slane %v1636_v39, 9  ;;  %3892 = vmatpush.bf16.msrb.mxu1 %v5494_v35  ;;  %3846 = vmatpush.bf16.msrb.mxu0 %v5483_v37 }
 0x19c   : > { %v1689_v48 = vrot.slane %v1637_v40, 5  ;;  %v1692_v49 = vrot.slane %v1638_v44, 5  ;;  %v4592_v50 = vld [vmem:[%s6581_s30 + $0x10] sm:$0xf]  ;;  %v1502_v57 = vrot.slane %v1501_v41, 4  ;;  %v5493_v62 = vld [vmem:[#allocation10 + $0x150] sm:$0xff]  ;;  %3681 = vmatmul.bf16.gmra.mxu2 %v4956_v36 }
 0x19d   : > { %1795 = vst [vmem:[#allocation3 + $0xc] sm:$0xf] %v4591_v43  ;;  %v4607_v58 = vld [vmem:[%s6581_s30 + $0xc] sm:$0xf]  ;;  %v1497_v60 = vsel %vm6595_vm11, %v1492_v45, %v1496_v33  ;;  %3730 = vmatmul.bf16.gmra.mxu3 %v4960_v42  ;;  %v5506_v2 = vld [vmem:[#allocation10 + $0x1b8] sm:$0xff]  ;;  %v5492_v12 = vld [vmem:[#allocation10 + $0x148] sm:$0xff] }
 0x19e   : > { %v1690_v22 = vsel %vm6679_vm14, %v4581_v47, %v1689_v48  ;;  %v1691_v10 = vrot.slane %v1689_v48, 4  ;;  %1796 = vst [vmem:[#allocation3 + $0x30] sm:$0xf] %v4592_v50  ;;  %v1836_v56 = vshrl.u32 %v4607_v58, 16  ;;  %v1507_v61 = vsel %vm6595_vm11, %v1502_v57, %v1506_v5  ;;  %v4608_v4 = vld [vmem:[%s6581_s30 + $0x10] sm:$0xf]  ;;  %3661 = vmatmul.bf16.gmra.mxu0 %v4812_v52  ;;  %3937 = vmatpush.bf16.msra.mxu2 %v5506_v2 }
 0x19f   : > { %1626 = vst [vmem:[#allocation3 + $0xdc] sm:$0xf] %v1497_v60  ;;  %v1839_v63 = vshll.u32 %v4607_v58, 16  ;;  %3893 = vmatpush.bf16.msrb.mxu1 %v5493_v62  ;;  %v4609_v7 = vld [vmem:[%s6581_s30 + $0x14] sm:$0x1]  ;;  %v1845_v8 = vshll.u32 %v4608_v4, 16 }
 0x1a0   : > { %1627 = vst [vmem:[#allocation3 + $0x100] sm:$0xf] %v1507_v61  ;;  %v1693_v0 = vsel %vm6679_vm14, %v1691_v10, %v1692_v49  ;;  %v1838_v6 = vrot.slane %v1836_v56, 4  ;;  %3710 = vmatmul.bf16.gmra.mxu1 %v4816_v55  ;;  %v1849_v9 = vshrl.u32 %v4608_v4, 16  ;;  %v1855_v11 = vshll.u32 %v4609_v7, 16  ;;  %v5514_v54 = vld [vmem:[#allocation10 + $0x1f8] sm:$0xff] }
 0x1a1   : > { %1759 = vst [vmem:[#allocation3 + $0x8] sm:$0xf] %v1690_v22  ;;  %v1841_v1 = vrot.slane %v1839_v63, 5  ;;  %v1847_v3 = vrot.slane %v1845_v8, 5  ;;  %v5522_v14 = vld [vmem:[#allocation10 + $0x238] sm:$0xff]  ;;  %3986 = vmatpush.bf16.msra.mxu3 %v5514_v54  ;;  %v5491_v53 = vld [vmem:[#allocation10 + $0x140] sm:$0xff] }
 0x1a2   : > { %1760 = vst [vmem:[#allocation3 + $0x2c] sm:$0xf] %v1693_v0  ;;  %v4631_v59 = vld [vmem:[%s6581_s30 + $0xc] sm:$0xe]  ;;  %v1851_v15 = vrot.slane %v1849_v9, 4  ;;  %4035 = vmatpush.bf16.msra.mxu0 %v5522_v14  ;;  %v1857_v25 = vrot.slane %v1855_v11, 5 }
 0x1a3   : > { %v1842_v13 = vor.u32 %v1841_v1, %v1838_v6  ;;  %v4632_v16 = vld [vmem:[%s6581_s30 + $0x10] sm:$0xf]  ;;  %3894 = vmatpush.bf16.msrb.mxu1 %v5492_v12  ;;  %v4633_v26 = vld [vmem:[%s6581_s30 + $0x14] sm:$0x1]  ;;  %v4655_v21 = vrot.slane %v4631_v59, 9  ;;  %v5505_v6 = vld [vmem:[#allocation10 + $0x1b0] sm:$0xff] }
 0x1a4   : > { %v1852_v23 = vor.u32 %v1851_v15, %v1847_v3  ;;  %v2109_v27 = vrot.slane %v4632_v16, 5  ;;  %v2112_v28 = vrot.slane %v4633_v26, 5  ;;  %v1639_v51 = vld [vmem:[%s6581_s30 + $0xc] sm:$0xe]  ;;  %v4991_v29 = vld [vmem:[#allocation3 + $0x1f8] sm:$0xf]  ;;  %3938 = vmatpush.bf16.msra.mxu2 %v5505_v6 }
 0x1a5   : > { %v1843_v20 = vrot.slane %v1842_v13, 4  ;;  %v5446_v30 = vld [vmem:[#allocation3 + $0x218] sm:$0xf0]  ;;  %v4847_v19 = vld [vmem:[#allocation3 + $0xd8] sm:$0xf]  ;;  %v4582_v37 = vrot.slane %v1639_v51, 9 }
 0x1a6   : > { %v5442_v31 = vld [vmem:[#allocation3 + $0x1fc] sm:$0xf]  ;;  %v1640_v34 = vld [vmem:[%s6581_s30 + $0x10] sm:$0xf]  ;;  %v4993_v18 = vld [vmem:[#allocation3 + $0x21c] sm:$0xf0]  ;;  %v2110_v36 = vsel %vm6679_vm14, %v4655_v21, %v2109_v27  ;;  %v4992_v50 = vor.u32 %v5446_v30, %v4991_v29 }
 0x1a7   : > { %v5410_v32 = vld [vmem:[#allocation3 + $0xf8] sm:$0xf0]  ;;  %v1848_v33 = vsel %vm6595_vm11, %v1843_v20, %v1847_v3  ;;  %v1853_v35 = vrot.slane %v1852_v23, 4  ;;  %v2111_v38 = vrot.slane %v2109_v27, 4  ;;  %3895 = vmatpush.bf16.msrb.mxu1 %v5491_v53  ;;  %2179 = vst [vmem:[#allocation3 + $0x14] sm:$0xf] %v2110_v36  ;;  %v4996_v52 = vor.u32 %v5442_v31, %v4993_v18 }
 0x1a8   : > { %v1641_v24 = vld [vmem:[%s6581_s30 + $0x14] sm:$0x1]  ;;  %2043 = vst [vmem:[#allocation3 + $0x10] sm:$0xf] %v1848_v33  ;;  %v1696_v39 = vrot.slane %v1640_v34, 5  ;;  %v4848_v55 = vor.u32 %v5410_v32, %v4847_v19  ;;  %v5513_v9 = vld [vmem:[#allocation10 + $0x1f0] sm:$0xff] }
 0x1a9   : > { %v5406_v5 = vld [vmem:[#allocation3 + $0xdc] sm:$0xf]  ;;  %v4849_v40 = vld [vmem:[#allocation3 + $0xfc] sm:$0xf0]  ;;  %v1858_v42 = vsel %vm6595_vm11, %v1853_v35, %v1857_v25  ;;  %v2113_v41 = vsel %vm6679_vm14, %v2111_v38, %v2112_v28  ;;  %v1699_v44 = vrot.slane %v1641_v24, 5  ;;  %v5521_v11 = vld [vmem:[#allocation10 + $0x230] sm:$0xff]  ;;  %3987 = vmatpush.bf16.msra.mxu3 %v5513_v9 }
 0x1aa   : > { %v4593_v43 = vld [vmem:[%s6581_s30 + $0x18] sm:$0xf]  ;;  %2044 = vst [vmem:[#allocation3 + $0x34] sm:$0xf] %v1858_v42  ;;  %v1697_v45 = vsel %vm6679_vm14, %v4582_v37, %v1696_v39  ;;  %v1698_v47 = vrot.slane %v1696_v39, 4  ;;  %v4852_v61 = vor.u32 %v5406_v5, %v4849_v40  ;;  %4036 = vmatpush.bf16.msra.mxu0 %v5521_v11  ;;  %v5512_v11 = vld [vmem:[#allocation10 + $0x1e8] sm:$0xff] }
 0x1ab   : > { %v4594_v48 = vld [vmem:[%s6581_s30 + $0x1c] sm:$0xf]  ;;  %v4610_v49 = vld [vmem:[%s6581_s30 + $0x18] sm:$0xf]  ;;  %2180 = vst [vmem:[#allocation3 + $0x38] sm:$0xf] %v2113_v41 }
 0x1ac   : > { %v4611_v57 = vld [vmem:[%s6581_s30 + $0x1c] sm:$0xf]  ;;  %v4612_v58 = vld [vmem:[%s6581_s30 + $0x20] sm:$0x1]  ;;  %v1700_v60 = vsel %vm6679_vm14, %v1698_v47, %v1699_v44  ;;  %1761 = vst [vmem:[#allocation3 + $0x50] sm:$0xf] %v1697_v45  ;;  %3686 = vmatmul.bf16.gmra.mxu2 %v4992_v50 }
 0x1ad   : > { %v1860_v22 = vshrl.u32 %v4610_v49, 16  ;;  %v1863_v10 = vshll.u32 %v4610_v49, 16  ;;  %v1869_v56 = vshll.u32 %v4611_v57, 16  ;;  %1762 = vst [vmem:[#allocation3 + $0x74] sm:$0xf] %v1700_v60  ;;  %v1873_v62 = vshrl.u32 %v4611_v57, 16  ;;  %3735 = vmatmul.bf16.gmra.mxu3 %v4996_v52 }
 0x1ae   : > { %v1879_v63 = vshll.u32 %v4612_v58, 16  ;;  %1797 = vst [vmem:[#allocation3 + $0x54] sm:$0xf] %v4593_v43  ;;  %v4634_v4 = vld [vmem:[%s6581_s30 + $0x18] sm:$0xe]  ;;  %3666 = vmatmul.bf16.gmra.mxu0 %v4848_v55  ;;  %3988 = vmatpush.bf16.msra.mxu3 %v5512_v11 }
 0x1af   : > { %v1862_v0 = vrot.slane %v1860_v22, 4  ;;  %v1865_v2 = vrot.slane %v1863_v10, 5  ;;  %1798 = vst [vmem:[#allocation3 + $0x78] sm:$0xf] %v4594_v48  ;;  %v1871_v7 = vrot.slane %v1869_v56, 5  ;;  %v1875_v8 = vrot.slane %v1873_v62, 4 }
 0x1b0   : > { %v4635_v54 = vld [vmem:[%s6581_s30 + $0x1c] sm:$0xf]  ;;  %3715 = vmatmul.bf16.gmra.mxu1 %v4852_v61  ;;  %v4636_v12 = vld [vmem:[%s6581_s30 + $0x20] sm:$0x1]  ;;  %v4656_v13 = vrot.slane %v4634_v4, 9  ;;  %v1881_v15 = vrot.slane %v1879_v63, 5 }
 0x1b1   : > { %v1866_v1 = vor.u32 %v1865_v2, %v1862_v0  ;;  %v2116_v3 = vrot.slane %v4635_v54, 5  ;;  %v1876_v59 = vor.u32 %v1875_v8, %v1871_v7  ;;  %v2119_v16 = vrot.slane %v4636_v12, 5  ;;  %v1642_v20 = vld [vmem:[%s6581_s30 + $0x18] sm:$0xe]  ;;  %v1643_v21 = vld [vmem:[%s6581_s30 + $0x1c] sm:$0xf] }
 0x1b2   : > { %v4583_v23 = vrot.slane %v1642_v20, 9  ;;  %v1703_v28 = vrot.slane %v1643_v21, 5  ;;  %v1644_v29 = vld [vmem:[%s6581_s30 + $0x20] sm:$0x1]  ;;  %v5384_v31 = vld [vmem:[#allocation3 + $0x28] sm:$0xf0] }
 0x1b3   : > { %v1867_v14 = vrot.slane %v1866_v1, 4  ;;  %v2117_v53 = vsel %vm6679_vm14, %v4656_v13, %v2116_v3  ;;  %v2118_v26 = vrot.slane %v2116_v3, 4  ;;  %v1877_v27 = vrot.slane %v1876_v59, 4  ;;  %v4747_v30 = vld [vmem:[#allocation3 + $0x8] sm:$0xf] }
 0x1b4   : > { %2181 = vst [vmem:[#allocation3 + $0x5c] sm:$0xf] %v2117_v53  ;;  %v5380_v19 = vld [vmem:[#allocation3 + $0xc] sm:$0xf]  ;;  %v4749_v32 = vld [vmem:[#allocation3 + $0x2c] sm:$0xf0]  ;;  %v1704_v34 = vsel %vm6679_vm14, %v4583_v23, %v1703_v28  ;;  %v4748_v50 = vor.u32 %v5384_v31, %v4747_v30 }
 0x1b5   : > { %v1872_v25 = vsel %vm6595_vm11, %v1867_v14, %v1871_v7  ;;  %v2120_v51 = vsel %vm6679_vm14, %v2118_v26, %v2119_v16  ;;  %v1882_v33 = vsel %vm6595_vm11, %v1877_v27, %v1881_v15  ;;  %v1705_v24 = vrot.slane %v1703_v28, 4  ;;  %v4755_v35 = vld [vmem:[#allocation3 + $0x10] sm:$0xf]  ;;  %v5385_v36 = vld [vmem:[#allocation3 + $0x30] sm:$0xf0]  ;;  %v5504_v7 = vld [vmem:[#allocation10 + $0x1a8] sm:$0xff] }
 0x1b6   : > { %2045 = vst [vmem:[#allocation3 + $0x58] sm:$0xf] %v1872_v25  ;;  %v1706_v18 = vrot.slane %v1644_v29, 5  ;;  %v4595_v38 = vld [vmem:[%s6581_s30 + $0x24] sm:$0xf]  ;;  %v4752_v52 = vor.u32 %v5380_v19, %v4749_v32  ;;  %v4756_v58 = vor.u32 %v5385_v36, %v4755_v35  ;;  %3939 = vmatpush.bf16.msra.mxu2 %v5504_v7  ;;  %v5519_v7 = vld [vmem:[#allocation10 + $0x220] sm:$0xff] }
 0x1b7   : > { %2182 = vst [vmem:[#allocation3 + $0x80] sm:$0xf] %v2120_v51  ;;  %v4596_v5 = vld [vmem:[%s6581_s30 + $0x28] sm:$0xf]  ;;  %v5381_v37 = vld [vmem:[#allocation3 + $0x14] sm:$0xf] }
 0x1b8   : > { %2046 = vst [vmem:[#allocation3 + $0x7c] sm:$0xf] %v1882_v33  ;;  %v4757_v39 = vld [vmem:[#allocation3 + $0x34] sm:$0xf0]  ;;  %v1707_v40 = vsel %vm6679_vm14, %v1705_v24, %v1706_v18  ;;  %v4613_v42 = vld [vmem:[%s6581_s30 + $0x24] sm:$0xf] }
 0x1b9   : > { %1763 = vst [vmem:[#allocation3 + $0x98] sm:$0xf] %v1704_v34  ;;  %v4614_v41 = vld [vmem:[%s6581_s30 + $0x28] sm:$0xf]  ;;  %v4615_v44 = vld [vmem:[%s6581_s30 + $0x2c] sm:$0x1]  ;;  %v4760_v10 = vor.u32 %v5381_v37, %v4757_v39 }
 0x1ba   : > { %1764 = vst [vmem:[#allocation3 + $0xbc] sm:$0xf] %v1707_v40  ;;  %v1884_v43 = vshrl.u32 %v4613_v42, 16  ;;  %v1887_v45 = vshll.u32 %v4613_v42, 16  ;;  %v1893_v47 = vshll.u32 %v4614_v41, 16  ;;  %v1897_v48 = vshrl.u32 %v4614_v41, 16 }
 0x1bb   : > { %1799 = vst [vmem:[#allocation3 + $0x9c] sm:$0xf] %v4595_v38  ;;  %v1903_v49 = vshll.u32 %v4615_v44, 16  ;;  %v4637_v61 = vld [vmem:[%s6581_s30 + $0x24] sm:$0xe] }
 0x1bc   : > { %1800 = vst [vmem:[#allocation3 + $0xc0] sm:$0xf] %v4596_v5  ;;  %v1886_v55 = vrot.slane %v1884_v43, 4  ;;  %v1889_v57 = vrot.slane %v1887_v45, 5  ;;  %v1895_v60 = vrot.slane %v1893_v47, 5  ;;  %v1899_v22 = vrot.slane %v1897_v48, 4  ;;  %3749 = vmatmul.bf16.vlgmr.msrb.gmra.mxu2 %v4748_v50 }
 0x1bd   : > { %v4638_v62 = vld [vmem:[%s6581_s30 + $0x28] sm:$0xf]  ;;  %v1905_v0 = vrot.slane %v1903_v49, 5  ;;  %v4639_v2 = vld [vmem:[%s6581_s30 + $0x2c] sm:$0x1]  ;;  %v4657_v4 = vrot.slane %v4637_v61, 9  ;;  %3798 = vmatmul.bf16.vlgmr.msrb.gmra.mxu3 %v4752_v52 }
 0x1be   : > { %v1890_v56 = vor.u32 %v1889_v57, %v1886_v55  ;;  %v1900_v63 = vor.u32 %v1899_v22, %v1895_v60  ;;  %v2123_v6 = vrot.slane %v4638_v62, 5  ;;  %v2126_v8 = vrot.slane %v4639_v2, 5  ;;  %3847 = vmatmul.bf16.vlgmr.msrb.gmra.mxu0 %v4756_v58  ;;  %v5520_v54 = vld [vmem:[#allocation10 + $0x228] sm:$0xff]  ;;  %v1646_v16 = vld [vmem:[%s6581_s30 + $0x28] sm:$0xf]  ;;  %v5503_v62 = vld [vmem:[#allocation10 + $0x1a0] sm:$0xff] }
 0x1bf   : > { %v1645_v14 = vld [vmem:[%s6581_s30 + $0x24] sm:$0xe]  ;;  %4037 = vmatpush.bf16.msra.mxu0 %v5520_v54  ;;  %v1647_v20 = vld [vmem:[%s6581_s30 + $0x2c] sm:$0x1]  ;;  %v1710_v26 = vrot.slane %v1646_v16, 5  ;;  %3940 = vmatpush.bf16.msra.mxu2 %v5503_v62 }
 0x1c0   : > { %v1891_v1 = vrot.slane %v1890_v56, 4  ;;  %v1901_v9 = vrot.slane %v1900_v63, 4  ;;  %v2124_v12 = vsel %vm6679_vm14, %v4657_v4, %v2123_v6  ;;  %v2125_v13 = vrot.slane %v2123_v6, 4  ;;  %3896 = vmatmul.bf16.vlgmr.msrb.gmra.mxu1 %v4760_v10  ;;  %v4597_v23 = vld [vmem:[%s6581_s30 + $0x30] sm:$0xf]  ;;  %v5511_v6 = vld [vmem:[#allocation10 + $0x1e0] sm:$0xff] }
 0x1c1   : > { %2183 = vst [vmem:[#allocation3 + $0xa4] sm:$0xf] %v2124_v12  ;;  %v4584_v53 = vrot.slane %v1645_v14, 9  ;;  %v1713_v21 = vrot.slane %v1647_v20, 5  ;;  %v1712_v27 = vrot.slane %v1710_v26, 4  ;;  %3989 = vmatpush.bf16.msra.mxu3 %v5511_v6 }
 0x1c2   : > { %v1896_v3 = vsel %vm6595_vm11, %v1891_v1, %v1895_v60  ;;  %v1906_v59 = vsel %vm6595_vm11, %v1901_v9, %v1905_v0  ;;  %v2127_v15 = vsel %vm6679_vm14, %v2125_v13, %v2126_v8  ;;  %v4598_v28 = vld [vmem:[%s6581_s30 + $0x34] sm:$0xf]  ;;  %1801 = vst [vmem:[#allocation3 + $0xe4] sm:$0xf] %v4597_v23  ;;  %v4783_v51 = vld [vmem:[#allocation3 + $0x50] sm:$0xf] }
 0x1c3   : > { %2047 = vst [vmem:[#allocation3 + $0xa0] sm:$0xf] %v1896_v3  ;;  %v1711_v25 = vsel %vm6679_vm14, %v4584_v53, %v1710_v26  ;;  %v5393_v29 = vld [vmem:[#allocation3 + $0x70] sm:$0xf0]  ;;  %v4785_v31 = vld [vmem:[#allocation3 + $0x74] sm:$0xf0]  ;;  %v1714_v33 = vsel %vm6679_vm14, %v1712_v27, %v1713_v21  ;;  %4038 = vmatpush.bf16.msra.mxu0 %v5519_v7 }
 0x1c4   : > { %2048 = vst [vmem:[#allocation3 + $0xc4] sm:$0xf] %v1906_v59  ;;  %v5389_v30 = vld [vmem:[#allocation3 + $0x54] sm:$0xf]  ;;  %v4616_v19 = vld [vmem:[%s6581_s30 + $0x30] sm:$0xf]  ;;  %v4784_v45 = vor.u32 %v5393_v29, %v4783_v51 }
 0x1c5   : > { %2184 = vst [vmem:[#allocation3 + $0xc8] sm:$0xf] %v2127_v15  ;;  %v4617_v32 = vld [vmem:[%s6581_s30 + $0x34] sm:$0xf]  ;;  %v4618_v34 = vld [vmem:[%s6581_s30 + $0x38] sm:$0x1]  ;;  %v4788_v47 = vor.u32 %v5389_v30, %v4785_v31 }
 0x1c6   : > { %1765 = vst [vmem:[#allocation3 + $0xe0] sm:$0xf] %v1711_v25  ;;  %v1908_v24 = vshrl.u32 %v4616_v19, 16  ;;  %v1911_v18 = vshll.u32 %v4616_v19, 16  ;;  %v4791_v35 = vld [vmem:[#allocation3 + $0x58] sm:$0xf] }
 0x1c7   : > { %1802 = vst [vmem:[#allocation3 + $0x108] sm:$0xf] %v4598_v28  ;;  %v5390_v36 = vld [vmem:[#allocation3 + $0x5c] sm:$0xf]  ;;  %v1917_v38 = vshll.u32 %v4617_v32, 16  ;;  %v1921_v5 = vshrl.u32 %v4617_v32, 16 }
 0x1c8   : > { %1766 = vst [vmem:[#allocation3 + $0x104] sm:$0xf] %v1714_v33  ;;  %v5394_v37 = vld [vmem:[#allocation3 + $0x78] sm:$0xf0]  ;;  %v1910_v39 = vrot.slane %v1908_v24, 4  ;;  %v1913_v40 = vrot.slane %v1911_v18, 5 }
 0x1c9   : > { %v1927_v42 = vshll.u32 %v4618_v34, 16  ;;  %v4793_v41 = vld [vmem:[#allocation3 + $0x7c] sm:$0xf0]  ;;  %v1919_v44 = vrot.slane %v1917_v38, 5  ;;  %v1923_v43 = vrot.slane %v1921_v5, 4  ;;  %v4792_v50 = vor.u32 %v5394_v37, %v4791_v35 }
 0x1ca   : > { %v1914_v48 = vor.u32 %v1913_v40, %v1910_v39  ;;  %v4641_v49 = vld [vmem:[%s6581_s30 + $0x34] sm:$0xf]  ;;  %v4796_v58 = vor.u32 %v5390_v36, %v4793_v41  ;;  %v4640_v22 = vld [vmem:[%s6581_s30 + $0x30] sm:$0xe]  ;;  %v4642_v56 = vld [vmem:[%s6581_s30 + $0x38] sm:$0x1] }
 0x1cb   : > { %v1924_v52 = vor.u32 %v1923_v43, %v1919_v44  ;;  %v1929_v55 = vrot.slane %v1927_v42, 5  ;;  %v2130_v57 = vrot.slane %v4641_v49, 5  ;;  %v4658_v61 = vrot.slane %v4640_v22, 9  ;;  %v1649_v8 = vld [vmem:[%s6581_s30 + $0x34] sm:$0xf] }
 0x1cc   : > { %v1915_v60 = vrot.slane %v1914_v48, 4  ;;  %3754 = vmatmul.bf16.gmra.mxu2 %v4784_v45  ;;  %v2133_v2 = vrot.slane %v4642_v56, 5  ;;  %v1648_v11 = vld [vmem:[%s6581_s30 + $0x30] sm:$0xe]  ;;  %v1650_v54 = vld [vmem:[%s6581_s30 + $0x38] sm:$0x1] }
 0x1cd   : > { %v1925_v10 = vrot.slane %v1924_v52, 4  ;;  %3803 = vmatmul.bf16.gmra.mxu3 %v4788_v47  ;;  %v2132_v0 = vrot.slane %v2130_v57, 4  ;;  %v2131_v1 = vsel %vm6679_vm14, %v4658_v61, %v2130_v57  ;;  %v4585_v12 = vrot.slane %v1648_v11, 9  ;;  %v4619_v14 = vld [vmem:[%s6581_s30 + $0x3c] sm:$0xf] }
 0x1ce   : > { %v1920_v63 = vsel %vm6595_vm11, %v1915_v60, %v1919_v44  ;;  %3852 = vmatmul.bf16.gmra.mxu0 %v4792_v50  ;;  %2185 = vst [vmem:[#allocation3 + $0xec] sm:$0xf] %v2131_v1  ;;  %v1717_v13 = vrot.slane %v1649_v8, 5  ;;  %v1720_v3 = vrot.slane %v1650_v54, 5  ;;  %v4599_v16 = vld [vmem:[%s6581_s30 + $0x3c] sm:$0xf] }
 0x1cf   : > { %v1930_v4 = vsel %vm6595_vm11, %v1925_v10, %v1929_v55  ;;  %2049 = vst [vmem:[#allocation3 + $0xe8] sm:$0xf] %v1920_v63  ;;  %v2134_v9 = vsel %vm6679_vm14, %v2132_v0, %v2133_v2  ;;  %v4600_v20 = vld [vmem:[%s6581_s30 + $0x40] sm:$0xf]  ;;  %v1932_v53 = vshrl.u32 %v4619_v14, 16  ;;  %v1935_v51 = vshll.u32 %v4619_v14, 16 }
 0x1d0   : > { %3901 = vmatmul.bf16.gmra.mxu1 %v4796_v58  ;;  %2050 = vst [vmem:[#allocation3 + $0x10c] sm:$0xf] %v1930_v4  ;;  %v1718_v59 = vsel %vm6679_vm14, %v4585_v12, %v1717_v13  ;;  %v1719_v15 = vrot.slane %v1717_v13, 4  ;;  %v4620_v26 = vld [vmem:[%s6581_s30 + $0x40] sm:$0xf]  ;;  %v5502_v58 = vld [vmem:[#allocation10 + $0x198] sm:$0xff] }
 0x1d1   : > { %2186 = vst [vmem:[#allocation3 + $0x110] sm:$0xf] %v2134_v9  ;;  %v4621_v21 = vld [vmem:[%s6581_s30 + $0x44] sm:$0x1]  ;;  %v4819_v23 = vld [vmem:[#allocation3 + $0x98] sm:$0xf]  ;;  %3941 = vmatpush.bf16.msra.mxu2 %v5502_v58 }
 0x1d2   : > { %1767 = vst [vmem:[#allocation3 + $0x128] sm:$0xf] %v1718_v59  ;;  %v5402_v25 = vld [vmem:[#allocation3 + $0xb8] sm:$0xf0]  ;;  %v1721_v27 = vsel %vm6679_vm14, %v1719_v15, %v1720_v3  ;;  %v1934_v28 = vrot.slane %v1932_v53, 4  ;;  %v1941_v29 = vshll.u32 %v4620_v26, 16 }
 0x1d3   : > { %1803 = vst [vmem:[#allocation3 + $0x12c] sm:$0xf] %v4599_v16  ;;  %v5398_v30 = vld [vmem:[#allocation3 + $0x9c] sm:$0xf]  ;;  %v1945_v31 = vshrl.u32 %v4620_v26, 16  ;;  %v1951_v19 = vshll.u32 %v4621_v21, 16  ;;  %v4820_v37 = vor.u32 %v5402_v25, %v4819_v23 }
 0x1d4   : > { %1768 = vst [vmem:[#allocation3 + $0x14c] sm:$0xf] %v1721_v27  ;;  %v4821_v32 = vld [vmem:[#allocation3 + $0xbc] sm:$0xf0]  ;;  %v1937_v33 = vrot.slane %v1935_v51, 5  ;;  %v1943_v34 = vrot.slane %v1941_v29, 5 }
 0x1d5   : > { %1804 = vst [vmem:[#allocation3 + $0x150] sm:$0xf] %v4600_v20  ;;  %v4827_v24 = vld [vmem:[#allocation3 + $0xa0] sm:$0xf]  ;;  %v5403_v18 = vld [vmem:[#allocation3 + $0xc0] sm:$0xf0]  ;;  %v4824_v39 = vor.u32 %v5398_v30, %v4821_v32 }
 0x1d6   : > { %v1947_v35 = vrot.slane %v1945_v31, 4  ;;  %v5399_v36 = vld [vmem:[#allocation3 + $0xa4] sm:$0xf]  ;;  %v4829_v38 = vld [vmem:[#allocation3 + $0xc4] sm:$0xf0]  ;;  %v1938_v5 = vor.u32 %v1937_v33, %v1934_v28  ;;  %v1953_v42 = vrot.slane %v1951_v19, 5  ;;  %v4828_v44 = vor.u32 %v5403_v18, %v4827_v24 }
 0x1d7   : > { %v4644_v41 = vld [vmem:[%s6581_s30 + $0x40] sm:$0xf]  ;;  %v4832_v47 = vor.u32 %v5399_v36, %v4829_v38  ;;  %v4643_v49 = vld [vmem:[%s6581_s30 + $0x3c] sm:$0xe]  ;;  %v4645_v52 = vld [vmem:[%s6581_s30 + $0x44] sm:$0x1] }
 0x1d8   : > { %v1948_v40 = vor.u32 %v1947_v35, %v1943_v34  ;;  %v1939_v43 = vrot.slane %v1938_v5, 4  ;;  %v2137_v45 = vrot.slane %v4644_v41, 5  ;;  %v4659_v55 = vrot.slane %v4643_v49, 9  ;;  %v5510_v10 = vld [vmem:[#allocation10 + $0x1d8] sm:$0xff]  ;;  %v1652_v61 = vld [vmem:[%s6581_s30 + $0x40] sm:$0xf] }
 0x1d9   : > { %v2140_v22 = vrot.slane %v4645_v52, 5  ;;  %v1651_v63 = vld [vmem:[%s6581_s30 + $0x3c] sm:$0xe]  ;;  %v1653_v0 = vld [vmem:[%s6581_s30 + $0x44] sm:$0x1]  ;;  %3990 = vmatpush.bf16.msra.mxu3 %v5510_v10  ;;  %v1724_v4 = vrot.slane %v1652_v61, 5 }
 0x1da   : > { %v1949_v48 = vrot.slane %v1948_v40, 4  ;;  %v1944_v50 = vsel %vm6595_vm11, %v1939_v43, %v1943_v34  ;;  %v2139_v57 = vrot.slane %v2137_v45, 4  ;;  %v2138_v56 = vsel %vm6679_vm14, %v4659_v55, %v2137_v45  ;;  %v4622_v7 = vld [vmem:[%s6581_s30 + $0x48] sm:$0xf]  ;;  %v4623_v1 = vld [vmem:[%s6581_s30 + $0x4c] sm:$0xf] }
 0x1db   : > { %2051 = vst [vmem:[#allocation3 + $0x130] sm:$0xf] %v1944_v50  ;;  %v4586_v2 = vrot.slane %v1651_v63, 9  ;;  %v1727_v6 = vrot.slane %v1653_v0, 5  ;;  %v4624_v8 = vld [vmem:[%s6581_s30 + $0x50] sm:$0x1] }
 0x1dc   : > { %3759 = vmatmul.bf16.gmra.mxu2 %v4820_v37  ;;  %v1954_v60 = vsel %vm6595_vm11, %v1949_v48, %v1953_v42  ;;  %v2141_v62 = vsel %vm6679_vm14, %v2139_v57, %v2140_v22  ;;  %2187 = vst [vmem:[#allocation3 + $0x134] sm:$0xf] %v2138_v56  ;;  %v1726_v11 = vrot.slane %v1724_v4, 4  ;;  %v4601_v54 = vld [vmem:[%s6581_s30 + $0x48] sm:$0xf]  ;;  %v1956_v13 = vshrl.u32 %v4622_v7, 16 }
 0x1dd   : > { %3808 = vmatmul.bf16.gmra.mxu3 %v4824_v39  ;;  %2052 = vst [vmem:[#allocation3 + $0x154] sm:$0xf] %v1954_v60  ;;  %v1725_v9 = vsel %vm6679_vm14, %v4586_v2, %v1724_v4  ;;  %v4602_v12 = vld [vmem:[%s6581_s30 + $0x4c] sm:$0xf]  ;;  %v1959_v3 = vshll.u32 %v4622_v7, 16  ;;  %v1965_v14 = vshll.u32 %v4623_v1, 16 }
 0x1de   : > { %3857 = vmatmul.bf16.gmra.mxu0 %v4828_v44  ;;  %2188 = vst [vmem:[#allocation3 + $0x158] sm:$0xf] %v2141_v62  ;;  %v1969_v59 = vshrl.u32 %v4623_v1, 16  ;;  %v4855_v15 = vld [vmem:[#allocation3 + $0xe0] sm:$0xf]  ;;  %v1728_v20 = vsel %vm6679_vm14, %v1726_v11, %v1727_v6  ;;  %v1958_v53 = vrot.slane %v1956_v13, 4 }
 0x1df   : > { %1769 = vst [vmem:[#allocation3 + $0x170] sm:$0xf] %v1725_v9  ;;  %v5407_v16 = vld [vmem:[#allocation3 + $0xe4] sm:$0xf]  ;;  %v1975_v26 = vshll.u32 %v4624_v8, 16  ;;  %v1961_v23 = vrot.slane %v1959_v3, 5 }
 0x1e0   : > { %3906 = vmatmul.bf16.gmra.mxu1 %v4832_v47  ;;  %1805 = vst [vmem:[#allocation3 + $0x174] sm:$0xf] %v4601_v54  ;;  %v4857_v21 = vld [vmem:[#allocation3 + $0x104] sm:$0xf0]  ;;  %v1967_v25 = vrot.slane %v1965_v14, 5  ;;  %v5518_v28 = vld [vmem:[#allocation10 + $0x218] sm:$0xff] }
 0x1e1   : > { %1770 = vst [vmem:[#allocation3 + $0x194] sm:$0xf] %v1728_v20  ;;  %v5411_v27 = vld [vmem:[#allocation3 + $0x100] sm:$0xf0]  ;;  %v1971_v51 = vrot.slane %v1969_v59, 4  ;;  %v1962_v31 = vor.u32 %v1961_v23, %v1958_v53  ;;  %4039 = vmatpush.bf16.msra.mxu0 %v5518_v28  ;;  %v1977_v34 = vrot.slane %v1975_v26, 5  ;;  %v4860_v18 = vor.u32 %v5407_v16, %v4857_v21 }
 0x1e2   : > { %1806 = vst [vmem:[#allocation3 + $0x198] sm:$0xf] %v4602_v12  ;;  %v4863_v29 = vld [vmem:[#allocation3 + $0xe8] sm:$0xf]  ;;  %v5412_v30 = vld [vmem:[#allocation3 + $0x108] sm:$0xf0]  ;;  %v4856_v24 = vor.u32 %v5411_v27, %v4855_v15 }
 0x1e3   : > { %v5408_v19 = vld [vmem:[#allocation3 + $0xec] sm:$0xf]  ;;  %v4865_v32 = vld [vmem:[#allocation3 + $0x10c] sm:$0xf0]  ;;  %v1972_v33 = vor.u32 %v1971_v51, %v1967_v25  ;;  %v1963_v35 = vrot.slane %v1962_v31, 4  ;;  %v4864_v38 = vor.u32 %v5412_v30, %v4863_v29 }
 0x1e4   : > { %v4647_v36 = vld [vmem:[%s6581_s30 + $0x4c] sm:$0xf]  ;;  %v4868_v39 = vor.u32 %v5408_v19, %v4865_v32  ;;  %v4646_v42 = vld [vmem:[%s6581_s30 + $0x48] sm:$0xe]  ;;  %v4648_v41 = vld [vmem:[%s6581_s30 + $0x50] sm:$0x1] }
 0x1e5   : > { %v1973_v5 = vrot.slane %v1972_v33, 4  ;;  %v2144_v37 = vrot.slane %v4647_v36, 5  ;;  %v1968_v40 = vsel %vm6595_vm11, %v1963_v35, %v1967_v25  ;;  %v4660_v43 = vrot.slane %v4646_v42, 9  ;;  %v5501_v47 = vld [vmem:[#allocation10 + $0x190] sm:$0xff]  ;;  %v4625_v55 = vld [vmem:[%s6581_s30 + $0x54] sm:$0xf] }
 0x1e6   : > { %2053 = vst [vmem:[#allocation3 + $0x178] sm:$0xf] %v1968_v40  ;;  %v2147_v48 = vrot.slane %v4648_v41, 5  ;;  %v5509_v49 = vld [vmem:[#allocation10 + $0x1d0] sm:$0xff]  ;;  %3942 = vmatpush.bf16.msra.mxu2 %v5501_v47  ;;  %v1656_v60 = vld [vmem:[%s6581_s30 + $0x50] sm:$0x1] }
 0x1e7   : > { %v1978_v44 = vsel %vm6595_vm11, %v1973_v5, %v1977_v34  ;;  %v2146_v45 = vrot.slane %v2144_v37, 4  ;;  %v2145_v50 = vsel %vm6679_vm14, %v4660_v43, %v2144_v37  ;;  %v1655_v52 = vld [vmem:[%s6581_s30 + $0x4c] sm:$0xf]  ;;  %v1654_v58 = vld [vmem:[%s6581_s30 + $0x48] sm:$0xe]  ;;  %3991 = vmatpush.bf16.msra.mxu3 %v5509_v49  ;;  %v1734_v56 = vrot.slane %v1656_v60, 5 }
 0x1e8   : > { %2054 = vst [vmem:[#allocation3 + $0x19c] sm:$0xf] %v1978_v44  ;;  %v4587_v22 = vrot.slane %v1654_v58, 9  ;;  %v1731_v10 = vrot.slane %v1655_v52, 5  ;;  %v1980_v61 = vshrl.u32 %v4625_v55, 16  ;;  %v1983_v0 = vshll.u32 %v4625_v55, 16 }
 0x1e9   : > { %v2148_v57 = vsel %vm6679_vm14, %v2146_v45, %v2147_v48  ;;  %2189 = vst [vmem:[#allocation3 + $0x17c] sm:$0xf] %v2145_v50  ;;  %v4626_v62 = vld [vmem:[%s6581_s30 + $0x58] sm:$0xf]  ;;  %v4627_v63 = vld [vmem:[%s6581_s30 + $0x5c] sm:$0x1] }
 0x1ea   : > { %2190 = vst [vmem:[#allocation3 + $0x1a0] sm:$0xf] %v2148_v57  ;;  %v1732_v2 = vsel %vm6679_vm14, %v4587_v22, %v1731_v10  ;;  %v1733_v4 = vrot.slane %v1731_v10, 4  ;;  %v4603_v6 = vld [vmem:[%s6581_s30 + $0x54] sm:$0xf]  ;;  %v1982_v7 = vrot.slane %v1980_v61, 4 }
 0x1eb   : > { %1771 = vst [vmem:[#allocation3 + $0x1b8] sm:$0xf] %v1732_v2  ;;  %v4604_v1 = vld [vmem:[%s6581_s30 + $0x58] sm:$0xf]  ;;  %v1985_v8 = vrot.slane %v1983_v0, 5  ;;  %v1989_v9 = vshll.u32 %v4626_v62, 16 }
 0x1ec   : > { %3764 = vmatmul.bf16.gmra.mxu2 %v4856_v24  ;;  %v4891_v11 = vld [vmem:[#allocation3 + $0x128] sm:$0xf]  ;;  %v5416_v54 = vld [vmem:[#allocation3 + $0x12c] sm:$0xf]  ;;  %v1735_v12 = vsel %vm6679_vm14, %v1733_v4, %v1734_v56  ;;  %1807 = vst [vmem:[#allocation3 + $0x1bc] sm:$0xf] %v4603_v6 }
 0x1ed   : > { %3813 = vmatmul.bf16.gmra.mxu3 %v4860_v18  ;;  %v1993_v13 = vshrl.u32 %v4626_v62, 16  ;;  %v1999_v3 = vshll.u32 %v4627_v63, 16  ;;  %v5420_v14 = vld [vmem:[#allocation3 + $0x148] sm:$0xf0]  ;;  %1772 = vst [vmem:[#allocation3 + $0x1dc] sm:$0xf] %v1735_v12  ;;  %v1986_v59 = vor.u32 %v1985_v8, %v1982_v7 }
 0x1ee   : > { %3862 = vmatmul.bf16.gmra.mxu0 %v4864_v38  ;;  %v1991_v15 = vrot.slane %v1989_v9, 5  ;;  %v4893_v16 = vld [vmem:[#allocation3 + $0x14c] sm:$0xf0]  ;;  %1808 = vst [vmem:[#allocation3 + $0x1e0] sm:$0xf] %v4604_v1  ;;  %v4892_v29 = vor.u32 %v5420_v14, %v4891_v11  ;;  %v5500_v44 = vld [vmem:[#allocation10 + $0x188] sm:$0xff] }
 0x1ef   : > { %v5517_v20 = vld [vmem:[#allocation10 + $0x210] sm:$0xff]  ;;  %v1995_v53 = vrot.slane %v1993_v13, 4  ;;  %v1987_v23 = vrot.slane %v1986_v59, 4  ;;  %v4901_v27 = vld [vmem:[#allocation3 + $0x154] sm:$0xf0]  ;;  %v2001_v51 = vrot.slane %v1999_v3, 5  ;;  %v4896_v30 = vor.u32 %v5416_v54, %v4893_v16  ;;  %3943 = vmatpush.bf16.msra.mxu2 %v5500_v44 }
 0x1f0   : > { %3911 = vmatmul.bf16.gmra.mxu1 %v4868_v39  ;;  %v4899_v26 = vld [vmem:[#allocation3 + $0x130] sm:$0xf]  ;;  %v5421_v21 = vld [vmem:[#allocation3 + $0x150] sm:$0xf0]  ;;  %4040 = vmatpush.bf16.msra.mxu0 %v5517_v20  ;;  %v4650_v19 = vld [vmem:[%s6581_s30 + $0x58] sm:$0xf] }
 0x1f1   : > { %v5417_v25 = vld [vmem:[#allocation3 + $0x134] sm:$0xf]  ;;  %v1996_v28 = vor.u32 %v1995_v53, %v1991_v15  ;;  %v1992_v31 = vsel %vm6595_vm11, %v1987_v23, %v1991_v15  ;;  %v6839_v32 = vld [vmem:[%s7295_s7] ss:$0 sm:$0xff]  ;;  %v4900_v33 = vor.u32 %v5421_v21, %v4899_v26  ;;  %v2151_v24 = vrot.slane %v4650_v19, 5 }
 0x1f2   : > { %2055 = vst [vmem:[#allocation3 + $0x1c0] sm:$0xf] %v1992_v31  ;;  %v4904_v35 = vor.u32 %v5417_v25, %v4901_v27  ;;  %v4649_v36 = vld [vmem:[%s6581_s30 + $0x54] sm:$0xe]  ;;  %v4651_v38 = vld [vmem:[%s6581_s30 + $0x5c] sm:$0x1] }
 0x1f3   : > { %v1997_v34 = vrot.slane %v1996_v28, 4  ;;  %v4661_v40 = vrot.slane %v4649_v36, 9  ;;  %v2153_v42 = vrot.slane %v2151_v24, 4  ;;  %v4628_v41 = vld [vmem:[%s6581_s30 + $0x60] sm:$0xf]  ;;  %v2154_v43 = vrot.slane %v4651_v38, 5 }
 0x1f4   : > { %v5508_v47 = vld [vmem:[#allocation10 + $0x1c8] sm:$0xff]  ;;  %v1658_v49 = vld [vmem:[%s6581_s30 + $0x58] sm:$0xf]  ;;  %v2004_v52 = vshrl.u32 %v4628_v41, 16  ;;  %v1657_v57 = vld [vmem:[%s6581_s30 + $0x54] sm:$0xe] }
 0x1f5   : > { %v2002_v39 = vsel %vm6595_vm11, %v1997_v34, %v2001_v51  ;;  %v2152_v48 = vsel %vm6679_vm14, %v4661_v40, %v2151_v24  ;;  %v4629_v50 = vld [vmem:[%s6581_s30 + $0x64] sm:$0xf]  ;;  %v2155_v55 = vsel %vm6679_vm14, %v2153_v42, %v2154_v43  ;;  %v1659_v58 = vld [vmem:[%s6581_s30 + $0x5c] sm:$0x1]  ;;  %3992 = vmatpush.bf16.msra.mxu3 %v5508_v47  ;;  %v4588_v10 = vrot.slane %v1657_v57, 9 }
 0x1f6   : > { %2056 = vst [vmem:[#allocation3 + $0x1e4] sm:$0xf] %v2002_v39  ;;  %v1738_v56 = vrot.slane %v1658_v49, 5  ;;  %v1741_v61 = vrot.slane %v1659_v58, 5  ;;  %v4630_v63 = vld [vmem:[%s6581_s30 + $0x68] sm:$0x1] }
 0x1f7   : > { %2191 = vst [vmem:[#allocation3 + $0x1c4] sm:$0xf] %v2152_v48  ;;  %v2006_v0 = vrot.slane %v2004_v52, 4  ;;  %v2007_v2 = vshll.u32 %v4628_v41, 16  ;;  %v2013_v4 = vshll.u32 %v4629_v50, 16  ;;  %v2017_v9 = vshrl.u32 %v4629_v50, 16 }
 0x1f8   : > { %2192 = vst [vmem:[#allocation3 + $0x1e8] sm:$0xf] %v2155_v55  ;;  %v1739_v6 = vsel %vm6679_vm14, %v4588_v10, %v1738_v56  ;;  %v1740_v7 = vrot.slane %v1738_v56, 4  ;;  %v4605_v1 = vld [vmem:[%s6581_s30 + $0x60] sm:$0xf]  ;;  %v2023_v3 = vshll.u32 %v4630_v63, 16 }
 0x1f9   : > { %v4606_v8 = vld [vmem:[%s6581_s30 + $0x64] sm:$0xf]  ;;  %1773 = vst [vmem:[#allocation3 + $0x200] sm:$0xf] %v1739_v6  ;;  %v2009_v12 = vrot.slane %v2007_v2, 5  ;;  %v2015_v13 = vrot.slane %v2013_v4, 5 }
 0x1fa   : > { %v4927_v59 = vld [vmem:[#allocation3 + $0x170] sm:$0xf]  ;;  %v1742_v15 = vsel %vm6679_vm14, %v1740_v7, %v1741_v61  ;;  %1809 = vst [vmem:[#allocation3 + $0x204] sm:$0xf] %v4605_v1  ;;  %v2019_v16 = vrot.slane %v2017_v9, 4  ;;  %v5516_v23 = vld [vmem:[#allocation10 + $0x208] sm:$0xff] }
 0x1fb   : > { %v3652_v18 = vpop.f32.mrf.mxu0  ;;  %v5429_v20 = vld [vmem:[#allocation3 + $0x190] sm:$0xf0]  ;;  %1774 = vst [vmem:[#allocation3 + $0x224] sm:$0xf] %v1742_v15  ;;  %v2010_v26 = vor.u32 %v2009_v12, %v2006_v0  ;;  %v4929_v21 = vld [vmem:[#allocation3 + $0x194] sm:$0xf0]  ;;  %4041 = vmatpush.bf16.msra.mxu0 %v5516_v23 }
 0x1fc   : > { %v3653_v5 = vadd.f32 %v6839_v32, %v3652_v18  ;;  %v3701_v37 = vpop.f32.mrf.mxu1  ;;  %3769 = vmatmul.bf16.gmra.mxu2 %v4892_v29  ;;  %v5425_v53 = vld [vmem:[#allocation3 + $0x174] sm:$0xf]  ;;  %1810 = vst [vmem:[#allocation3 + $0x228] sm:$0xf] %v4606_v8  ;;  %v2020_v25 = vor.u32 %v2019_v16, %v2015_v13  ;;  %v2025_v27 = vrot.slane %v2023_v3, 5  ;;  %v4928_v18 = vor.u32 %v5429_v20, %v4927_v59  ;;  %v5499_v58 = vld [vmem:[#allocation10 + $0x180] sm:$0xff] }
 0x1fd   : > { %3818 = vmatmul.bf16.gmra.mxu3 %v4896_v30  ;;  %v4935_v28 = vld [vmem:[#allocation3 + $0x178] sm:$0xf]  ;;  %v5430_v51 = vld [vmem:[#allocation3 + $0x198] sm:$0xf0]  ;;  %v2011_v29 = vrot.slane %v2010_v26, 4  ;;  %v5507_v56 = vld [vmem:[#allocation10 + $0x1c0] sm:$0xff]  ;;  %3944 = vmatpush.bf16.msra.mxu2 %v5499_v58 }
 0x1fe   : > { %v6847_v45 = vadd.f32 %v3701_v37, %v3653_v5  ;;  %3867 = vmatmul.bf16.gmra.mxu0 %v4900_v33  ;;  %v5426_v19 = vld [vmem:[#allocation3 + $0x17c] sm:$0xf]  ;;  %v4937_v33 = vld [vmem:[#allocation3 + $0x19c] sm:$0xf0]  ;;  %v2021_v34 = vrot.slane %v2020_v25, 4  ;;  %v4936_v37 = vor.u32 %v5430_v51, %v4935_v28  ;;  %3993 = vmatpush.bf16.msra.mxu3 %v5507_v56 }
 0x1ff   : > { %v3672_v60 = vpop.f32.mrf.mxu2  ;;  %v2016_v36 = vsel %vm6595_vm11, %v2011_v29, %v2015_v13  ;;  %v4653_v38 = vld [vmem:[%s6581_s30 + $0x64] sm:$0xf]  ;;  %v4681_v5 = vld [vmem:[%s6581_s30 + $0x18] sm:$0xf]  ;;  %v4940_v43 = vor.u32 %v5426_v19, %v4937_v33  ;;  %v4652_v47 = vld [vmem:[%s6581_s30 + $0x60] sm:$0xe] }
 0x200   : > { %3916 = vmatmul.bf16.gmra.mxu1 %v4904_v35  ;;  %v3721_v22 = vpop.f32.mrf.mxu3  ;;  %v3673_v62 = vadd.f32 %v6839_v32, %v3672_v60  ;;  %v4932_v35 = vor.u32 %v5425_v53, %v4929_v21  ;;  %v2026_v39 = vsel %vm6595_vm11, %v2021_v34, %v2025_v27  ;;  %2057 = vst [vmem:[#allocation3 + $0x208] sm:$0xf] %v2016_v36  ;;  %v2158_v40 = vrot.slane %v4653_v38, 5  ;;  %v4654_v50 = vld [vmem:[%s6581_s30 + $0x68] sm:$0x1] }
 0x201   : > { %v2256_v42 = vshrl.u32 %v4681_v5, 16  ;;  %2058 = vst [vmem:[#allocation3 + $0x22c] sm:$0xf] %v2026_v39  ;;  %v4662_v52 = vrot.slane %v4652_v47, 9  ;;  %v4682_v57 = vld [vmem:[%s6581_s30 + $0x1c] sm:$0xf] }
 0x202   : > { %v6863_v11 = vadd.f32 %v3721_v22, %v3673_v62  ;;  %v2160_v55 = vrot.slane %v2158_v40, 4  ;;  %v2161_v60 = vrot.slane %v4654_v50, 5  ;;  %v4683_v22 = vld [vmem:[%s6581_s30 + $0x20] sm:$0x1]  ;;  %v2259_v0 = vshll.u32 %v4681_v5, 16 }
 0x203   : > { %v6865_v54 = vpop.f32.mrf.mxu0  ;;  %v2159_v61 = vsel %vm6679_vm14, %v4662_v52, %v2158_v40  ;;  %v2258_v62 = vrot.slane %v2256_v42, 4  ;;  %v2265_v2 = vshll.u32 %v4682_v57, 16  ;;  %v2269_v4 = vshrl.u32 %v4682_v57, 16  ;;  %v4706_v3 = vld [vmem:[%s6581_s30 + $0x1c] sm:$0xf] }
 0x204   : > { %v6867_v14 = vpop.f32.mrf.mxu1  ;;  %v2162_v63 = vsel %vm6679_vm14, %v2160_v55, %v2161_v60  ;;  %2193 = vst [vmem:[#allocation3 + $0x20c] sm:$0xf] %v2159_v61  ;;  %v2275_v1 = vshll.u32 %v4683_v22, 16  ;;  %v2261_v9 = vrot.slane %v2259_v0, 5  ;;  %v4665_v59 = vld [vmem:[%s6581_s30 + $0x18] sm:$0xf] }
 0x205   : > { %2194 = vst [vmem:[#allocation3 + $0x230] sm:$0xf] %v2162_v63  ;;  %v2267_v12 = vrot.slane %v2265_v2, 5  ;;  %v2271_v13 = vrot.slane %v2269_v4, 4  ;;  %v4666_v15 = vld [vmem:[%s6581_s30 + $0x1c] sm:$0xf] }
 0x206   : > { %2215 = vst [vmem:[#allocation3 + $0x18] sm:$0xf] %v4665_v59  ;;  %v2262_v53 = vor.u32 %v2261_v9, %v2258_v62  ;;  %v4705_v21 = vld [vmem:[%s6581_s30 + $0x18] sm:$0xe]  ;;  %v4707_v23 = vld [vmem:[%s6581_s30 + $0x20] sm:$0x1] }
 0x207   : > { %v3674_v30 = vpop.f32.mrf.mxu2  ;;  %v2272_v26 = vor.u32 %v2271_v13, %v2267_v12  ;;  %v4963_v27 = vld [vmem:[#allocation3 + $0x1b8] sm:$0xf]  ;;  %2216 = vst [vmem:[#allocation3 + $0x3c] sm:$0xf] %v4666_v15  ;;  %v2277_v28 = vrot.slane %v2275_v1, 5  ;;  %v4729_v51 = vrot.slane %v4705_v21, 9 }
 0x208   : > { %v3723_v31 = vpop.f32.mrf.mxu3  ;;  %v3675_v24 = vadd.f32 %v6839_v32, %v3674_v30  ;;  %v2529_v29 = vrot.slane %v4706_v3, 5  ;;  %v5434_v30 = vld [vmem:[#allocation3 + $0x1bc] sm:$0xf]  ;;  %v2532_v33 = vrot.slane %v4707_v23, 5  ;;  %v4971_v38 = vld [vmem:[#allocation3 + $0x1c0] sm:$0xf] }
 0x209   : > { %v2273_v19 = vrot.slane %v2272_v26, 4  ;;  %v5438_v34 = vld [vmem:[#allocation3 + $0x1d8] sm:$0xf0]  ;;  %v5439_v5 = vld [vmem:[#allocation3 + $0x1e0] sm:$0xf0] }
 0x20a   : > { %v6878_v41 = vadd.f32 %v3723_v31, %v3675_v24  ;;  %v2263_v31 = vrot.slane %v2262_v53, 4  ;;  %v4965_v24 = vld [vmem:[#allocation3 + $0x1dc] sm:$0xf0]  ;;  %v2531_v36 = vrot.slane %v2529_v29, 4  ;;  %v4684_v52 = vld [vmem:[%s6581_s30 + $0x24] sm:$0xf]  ;;  %v4972_v57 = vor.u32 %v5439_v5, %v4971_v38 }
 0x20b   : > { %v3657_v44 = vpop.f32.mrf.mxu0  ;;  %v2278_v39 = vsel %vm6595_vm11, %v2273_v19, %v2277_v28  ;;  %v4968_v50 = vor.u32 %v5434_v30, %v4965_v24  ;;  %v4685_v55 = vld [vmem:[%s6581_s30 + $0x28] sm:$0xf]  ;;  %v2280_v58 = vshrl.u32 %v4684_v52, 16  ;;  %v2283_v60 = vshll.u32 %v4684_v52, 16  ;;  %v4710_v19 = vld [vmem:[%s6581_s30 + $0x2c] sm:$0x1] }
 0x20c   : > { %v3658_v48 = vadd.f32 %v6839_v32, %v3657_v44  ;;  %3774 = vmatmul.bf16.gmra.mxu2 %v4928_v18  ;;  %v5515_v18 = vld [vmem:[#allocation10 + $0x200] sm:$0xff]  ;;  %v2533_v47 = vsel %vm6679_vm14, %v2531_v36, %v2532_v33  ;;  %2464 = vst [vmem:[#allocation3 + $0x40] sm:$0xf] %v2278_v39  ;;  %v2289_v62 = vshll.u32 %v4685_v55, 16  ;;  %v2293_v63 = vshrl.u32 %v4685_v55, 16 }
 0x20d   : > { %v3706_v49 = vpop.f32.mrf.mxu1  ;;  %3823 = vmatmul.bf16.gmra.mxu3 %v4932_v35  ;;  %v2530_v35 = vsel %vm6679_vm14, %v4729_v51, %v2529_v29  ;;  %v5435_v44 = vld [vmem:[#allocation3 + $0x1c4] sm:$0xf]  ;;  %4042 = vmatpush.bf16.msra.mxu0 %v5515_v18  ;;  %2600 = vst [vmem:[#allocation3 + $0x44] sm:$0xf] %v2533_v47  ;;  %v2282_v4 = vrot.slane %v2280_v58, 4 }
 0x20e   : > { %v6885_v10 = vadd.f32 %v3706_v49, %v3658_v48  ;;  %3872 = vmatmul.bf16.gmra.mxu0 %v4936_v37  ;;  %v2268_v37 = vsel %vm6595_vm11, %v2263_v31, %v2267_v12  ;;  %2599 = vst [vmem:[#allocation3 + $0x20] sm:$0xf] %v2530_v35  ;;  %v4964_v49 = vor.u32 %v5438_v34, %v4963_v27  ;;  %v2291_v1 = vrot.slane %v2289_v62, 5  ;;  %v4709_v59 = vld [vmem:[%s6581_s30 + $0x28] sm:$0xf] }
 0x20f   : > { %v3677_v6 = vpop.f32.mrf.mxu2  ;;  %2463 = vst [vmem:[#allocation3 + $0x1c] sm:$0xf] %v2268_v37  ;;  %v2536_v23 = vrot.slane %v4709_v59, 5  ;;  %v4708_v51 = vld [vmem:[%s6581_s30 + $0x24] sm:$0xe]  ;;  %v2539_v37 = vrot.slane %v4710_v19, 5 }
 0x210   : > { %3921 = vmatmul.bf16.gmra.mxu1 %v4940_v43  ;;  %v3726_v7 = vpop.f32.mrf.mxu3  ;;  %v3678_v8 = vadd.f32 %v6839_v32, %v3677_v6  ;;  %v4973_v43 = vld [vmem:[#allocation3 + $0x1e4] sm:$0xf0]  ;;  %v2285_v6 = vrot.slane %v2283_v60, 5  ;;  %v4667_v29 = vld [vmem:[%s6581_s30 + $0x24] sm:$0xf]  ;;  %v4730_v18 = vrot.slane %v4708_v51, 9 }
 0x211   : > { %v4976_v61 = vor.u32 %v5435_v44, %v4973_v43  ;;  %v4668_v30 = vld [vmem:[%s6581_s30 + $0x28] sm:$0xf]  ;;  %2217 = vst [vmem:[#allocation3 + $0x60] sm:$0xf] %v4667_v29  ;;  %v2538_v35 = vrot.slane %v2536_v23, 4 }
 0x212   : > { %v6895_v16 = vadd.f32 %v3726_v7, %v3678_v8  ;;  %v4686_v7 = vld [vmem:[%s6581_s30 + $0x2c] sm:$0x1]  ;;  %v2295_v8 = vrot.slane %v2293_v63, 4  ;;  %v2286_v12 = vor.u32 %v2285_v6, %v2282_v4  ;;  %v4999_v38 = vld [vmem:[#allocation3 + $0x200] sm:$0xf] }
 0x213   : > { %v6897_v20 = vpop.f32.mrf.mxu0  ;;  %v2299_v13 = vshll.u32 %v4686_v7, 16  ;;  %v5443_v5 = vld [vmem:[#allocation3 + $0x204] sm:$0xf]  ;;  %2218 = vst [vmem:[#allocation3 + $0x84] sm:$0xf] %v4668_v30  ;;  %v2540_v47 = vsel %vm6679_vm14, %v2538_v35, %v2539_v37 }
 0x214   : > { %v2296_v3 = vor.u32 %v2295_v8, %v2291_v1  ;;  %v2287_v26 = vrot.slane %v2286_v12, 4  ;;  %v5447_v39 = vld [vmem:[#allocation3 + $0x220] sm:$0xf0]  ;;  %v5007_v44 = vld [vmem:[#allocation3 + $0x208] sm:$0xf] }
 0x215   : > { %v6901_v25 = vpop.f32.mrf.mxu1  ;;  %v2301_v21 = vrot.slane %v2299_v13, 5  ;;  %v5448_v43 = vld [vmem:[#allocation3 + $0x228] sm:$0xf0]  ;;  %v5009_v52 = vld [vmem:[#allocation3 + $0x22c] sm:$0xf0] }
 0x216   : > { %v2297_v28 = vrot.slane %v2296_v3, 4  ;;  %v2292_v31 = vsel %vm6595_vm11, %v2287_v26, %v2291_v1  ;;  %2602 = vst [vmem:[#allocation3 + $0x8c] sm:$0xf] %v2540_v47  ;;  %v5008_v60 = vor.u32 %v5448_v43, %v5007_v44  ;;  %v4689_v3 = vld [vmem:[%s6581_s30 + $0x38] sm:$0x1]  ;;  %v5530_v43 = vld [vmem:[#allocation12 + $0x38] sm:$0xff] }
 0x217   : > { %v3679_v40 = vpop.f32.mrf.mxu2  ;;  %2465 = vst [vmem:[#allocation3 + $0x64] sm:$0xf] %v2292_v31  ;;  %v4713_v35 = vld [vmem:[%s6581_s30 + $0x38] sm:$0x1]  ;;  %4176 = vmatpush.bf16.msra.mxu1 %v5530_v43  ;;  %v4671_v43 = vld [vmem:[%s6581_s30 + $0x3c] sm:$0xf] }
 0x218   : > { %v3728_v42 = vpop.f32.mrf.mxu3  ;;  %v3680_v48 = vadd.f32 %v6839_v32, %v3679_v40  ;;  %v2302_v24 = vsel %vm6595_vm11, %v2297_v28, %v2301_v21  ;;  %v5001_v40 = vld [vmem:[#allocation3 + $0x224] sm:$0xf0]  ;;  %v2323_v21 = vshll.u32 %v4689_v3, 16  ;;  %2221 = vst [vmem:[#allocation3 + $0xf0] sm:$0xf] %v4671_v43 }
 0x219   : > { %2466 = vst [vmem:[#allocation3 + $0x88] sm:$0xf] %v2302_v24  ;;  %v5004_v58 = vor.u32 %v5443_v5, %v5001_v40  ;;  %v4670_v5 = vld [vmem:[%s6581_s30 + $0x34] sm:$0xf] }
 0x21a   : > { %v6914_v22 = vadd.f32 %v3728_v42, %v3680_v48  ;;  %v2537_v42 = vsel %vm6679_vm14, %v4730_v18, %v2536_v23  ;;  %v2325_v30 = vrot.slane %v2323_v21, 5  ;;  %v4711_v18 = vld [vmem:[%s6581_s30 + $0x30] sm:$0xe]  ;;  %2220 = vst [vmem:[#allocation3 + $0xcc] sm:$0xf] %v4670_v5 }
 0x21b   : > { %v3662_v56 = vpop.f32.mrf.mxu0  ;;  %2601 = vst [vmem:[#allocation3 + $0x68] sm:$0xf] %v2537_v42 }
 0x21c   : > { %v3663_v0 = vadd.f32 %v6839_v32, %v3662_v56  ;;  %3779 = vmatmul.bf16.gmra.mxu2 %v4964_v49  ;;  %v4687_v56 = vld [vmem:[%s6581_s30 + $0x30] sm:$0xf] }
 0x21d   : > { %v3711_v2 = vpop.f32.mrf.mxu1  ;;  %3828 = vmatmul.bf16.gmra.mxu3 %v4968_v50  ;;  %v5444_v50 = vld [vmem:[#allocation3 + $0x20c] sm:$0xf]  ;;  %v2304_v62 = vshrl.u32 %v4687_v56, 16  ;;  %v2307_v63 = vshll.u32 %v4687_v56, 16  ;;  %v5387_v56 = vld [vmem:[#allocation3 + $0x40] sm:$0xf0] }
 0x21e   : > { %v6918_v9 = vadd.f32 %v3711_v2, %v3663_v0  ;;  %3877 = vmatmul.bf16.gmra.mxu0 %v4972_v57  ;;  %v5000_v57 = vor.u32 %v5447_v39, %v4999_v38  ;;  %v5012_v7 = vor.u32 %v5444_v50, %v5009_v52  ;;  %v4669_v38 = vld [vmem:[%s6581_s30 + $0x30] sm:$0xf]  ;;  %v4731_v39 = vrot.slane %v4711_v18, 9  ;;  %v5386_v50 = vld [vmem:[#allocation3 + $0x38] sm:$0xf0] }
 0x21f   : > { %v3682_v15 = vpop.f32.mrf.mxu2  ;;  %v2306_v8 = vrot.slane %v2304_v62, 4  ;;  %v2309_v12 = vrot.slane %v2307_v63, 5  ;;  %2219 = vst [vmem:[#allocation3 + $0xa8] sm:$0xf] %v4669_v38 }
 0x220   : > { %3926 = vmatmul.bf16.gmra.mxu1 %v4976_v61  ;;  %v3731_v53 = vpop.f32.mrf.mxu3  ;;  %v3683_v27 = vadd.f32 %v6839_v32, %v3682_v15  ;;  %v4688_v61 = vld [vmem:[%s6581_s30 + $0x34] sm:$0xf] }
 0x221   : > { %v2313_v0 = vshll.u32 %v4688_v61, 16  ;;  %v2317_v2 = vshrl.u32 %v4688_v61, 16  ;;  %v2310_v26 = vor.u32 %v2309_v12, %v2306_v8 }
 0x222   : > { %v6928_v33 = vadd.f32 %v3731_v53, %v3683_v27  ;;  %v4712_v27 = vld [vmem:[%s6581_s30 + $0x34] sm:$0xf] }
 0x223   : > { %v6930_v34 = vpop.f32.mrf.mxu0  ;;  %v2315_v59 = vrot.slane %v2313_v0, 5  ;;  %v2319_v15 = vrot.slane %v2317_v2, 4  ;;  %v2311_v29 = vrot.slane %v2310_v26, 4  ;;  %v2543_v31 = vrot.slane %v4712_v27, 5  ;;  %v4692_v27 = vld [vmem:[%s6581_s30 + $0x44] sm:$0x1] }
 0x225   : > { %v6934_v36 = vpop.f32.mrf.mxu1  ;;  %v2320_v23 = vor.u32 %v2319_v15, %v2315_v59  ;;  %v2316_v37 = vsel %vm6595_vm11, %v2311_v29, %v2315_v59  ;;  %v2545_v40 = vrot.slane %v2543_v31, 4  ;;  %v2544_v52 = vsel %vm6679_vm14, %v4731_v39, %v2543_v31  ;;  %v4715_v31 = vld [vmem:[%s6581_s30 + $0x40] sm:$0xf]  ;;  %v4714_v39 = vld [vmem:[%s6581_s30 + $0x3c] sm:$0xe] }
 0x226   : > { %2467 = vst [vmem:[#allocation3 + $0xac] sm:$0xf] %v2316_v37  ;;  %v2347_v29 = vshll.u32 %v4692_v27, 16  ;;  %v2550_v38 = vrot.slane %v4715_v31, 5 }
 0x227   : > { %v3684_v48 = vpop.f32.mrf.mxu2  ;;  %v2321_v24 = vrot.slane %v2320_v23, 4  ;;  %2603 = vst [vmem:[#allocation3 + $0xb0] sm:$0xf] %v2544_v52  ;;  %v3655_v52 = vadd.f32 %v6839_v32, %v6865_v54 }
 0x228   : > { %v3733_v49 = vpop.f32.mrf.mxu3  ;;  %v3685_v55 = vadd.f32 %v6839_v32, %v3684_v48  ;;  %v2546_v48 = vrot.slane %v4713_v35, 5  ;;  %v2349_v35 = vrot.slane %v2347_v29, 5 }
 0x229   : > { %v2326_v47 = vsel %vm6595_vm11, %v2321_v24, %v2325_v30 }
 0x22a   : > { %v6943_v4 = vadd.f32 %v3733_v49, %v3685_v55  ;;  %v4763_v49 = vld [vmem:[#allocation3 + $0x18] sm:$0xf]  ;;  %v5382_v55 = vld [vmem:[#allocation3 + $0x1c] sm:$0xf]  ;;  %2468 = vst [vmem:[#allocation3 + $0xd0] sm:$0xf] %v2326_v47 }
 0x22b   : > { %v3667_v6 = vpop.f32.mrf.mxu0  ;;  %v4764_v0 = vor.u32 %v5386_v50, %v4763_v49  ;;  %v4672_v47 = vld [vmem:[%s6581_s30 + $0x40] sm:$0xf]  ;;  %v4732_v49 = vrot.slane %v4714_v39, 9  ;;  %v2552_v50 = vrot.slane %v2550_v38, 4 }
 0x22c   : > { %v3668_v1 = vadd.f32 %v6839_v32, %v3667_v6  ;;  %3784 = vmatmul.bf16.gmra.mxu2 %v5000_v57  ;;  %v4771_v57 = vld [vmem:[#allocation3 + $0x20] sm:$0xf]  ;;  %2222 = vst [vmem:[#allocation3 + $0x114] sm:$0xf] %v4672_v47 }
 0x22d   : > { %3833 = vmatmul.bf16.gmra.mxu3 %v5004_v58  ;;  %v3716_v13 = vpop.f32.mrf.mxu1  ;;  %v2547_v58 = vsel %vm6679_vm14, %v2545_v40, %v2546_v48  ;;  %v4772_v6 = vor.u32 %v5387_v56, %v4771_v57  ;;  %v4716_v40 = vld [vmem:[%s6581_s30 + $0x44] sm:$0x1]  ;;  %v4799_v56 = vld [vmem:[#allocation3 + $0x60] sm:$0xf] }
 0x22e   : > { %v6947_v53 = vadd.f32 %v3716_v13, %v3668_v1  ;;  %3882 = vmatmul.bf16.gmra.mxu0 %v5008_v60  ;;  %v4765_v60 = vld [vmem:[#allocation3 + $0x3c] sm:$0xf0]  ;;  %2604 = vst [vmem:[#allocation3 + $0xd4] sm:$0xf] %v2547_v58  ;;  %v4691_v1 = vld [vmem:[%s6581_s30 + $0x40] sm:$0xf] }
 0x22f   : > { %v3687_v28 = vpop.f32.mrf.mxu2  ;;  %v4768_v2 = vor.u32 %v5382_v55, %v4765_v60  ;;  %v2337_v13 = vshll.u32 %v4691_v1, 16  ;;  %v2341_v3 = vshrl.u32 %v4691_v1, 16  ;;  %v5529_v58 = vld [vmem:[#allocation12 + $0x30] sm:$0xff]  ;;  %v2553_v60 = vrot.slane %v4716_v40, 5 }
 0x230   : > { %3931 = vmatmul.bf16.gmra.mxu1 %v5012_v7  ;;  %v3736_v51 = vpop.f32.mrf.mxu3  ;;  %v3688_v19 = vadd.f32 %v6839_v32, %v3687_v28  ;;  %v4690_v7 = vld [vmem:[%s6581_s30 + $0x3c] sm:$0xf]  ;;  %v3704_v1 = vadd.f32 %v6867_v14, %v3655_v52  ;;  %v4718_v40 = vld [vmem:[%s6581_s30 + $0x4c] sm:$0xf] }
 0x231   : > { %v2328_v8 = vshrl.u32 %v4690_v7, 16  ;;  %v2331_v12 = vshll.u32 %v4690_v7, 16  ;;  %v2339_v23 = vrot.slane %v2337_v13, 5  ;;  %v2343_v28 = vrot.slane %v2341_v3, 4  ;;  %4177 = vmatpush.bf16.msra.mxu1 %v5529_v58  ;;  %v5396_v7 = vld [vmem:[#allocation3 + $0x88] sm:$0xf0] }
 0x232   : > { %v6957_v42 = vadd.f32 %v3736_v51, %v3688_v19  ;;  %v2554_v54 = vsel %vm6679_vm14, %v2552_v50, %v2553_v60  ;;  %v2557_v50 = vrot.slane %v4718_v40, 5  ;;  %v4719_v58 = vld [vmem:[%s6581_s30 + $0x50] sm:$0x1]  ;;  %v4674_v60 = vld [vmem:[%s6581_s30 + $0x4c] sm:$0xf] }
 0x233   : > { %v6959_v44 = vpop.f32.mrf.mxu0  ;;  %v2330_v26 = vrot.slane %v2328_v8, 4  ;;  %v2333_v21 = vrot.slane %v2331_v12, 5  ;;  %v2344_v30 = vor.u32 %v2343_v28, %v2339_v23  ;;  %2606 = vst [vmem:[#allocation3 + $0x11c] sm:$0xf] %v2554_v54 }
 0x234   : > { %2224 = vst [vmem:[#allocation3 + $0x15c] sm:$0xf] %v4674_v60 }
 0x235   : > { %v2334_v51 = vor.u32 %v2333_v21, %v2330_v26  ;;  %v2345_v37 = vrot.slane %v2344_v30, 4  ;;  %v4693_v21 = vld [vmem:[%s6581_s30 + $0x48] sm:$0xf] }
 0x236   : > { %v2352_v27 = vshrl.u32 %v4693_v21, 16  ;;  %v2355_v28 = vshll.u32 %v4693_v21, 16  ;;  %v5405_v21 = vld [vmem:[#allocation3 + $0xd0] sm:$0xf0] }
 0x237   : > { %v3689_v61 = vpop.f32.mrf.mxu2  ;;  %v2335_v18 = vrot.slane %v2334_v51, 4 }
 0x238   : > { %v3738_v62 = vpop.f32.mrf.mxu3  ;;  %v3690_v63 = vadd.f32 %v6839_v32, %v3689_v61  ;;  %v5395_v61 = vld [vmem:[#allocation3 + $0x80] sm:$0xf0]  ;;  %v2357_v14 = vrot.slane %v2355_v28, 5 }
 0x239   : > { %v2340_v48 = vsel %vm6595_vm11, %v2335_v18, %v2339_v23  ;;  %v4800_v3 = vor.u32 %v5395_v61, %v4799_v56  ;;  %v4694_v23 = vld [vmem:[%s6581_s30 + $0x4c] sm:$0xf] }
 0x23a   : > { %v6970_v59 = vadd.f32 %v3738_v62, %v3690_v63  ;;  %v2551_v62 = vsel %vm6679_vm14, %v4732_v49, %v2550_v38  ;;  %2469 = vst [vmem:[#allocation3 + $0xf4] sm:$0xf] %v2340_v48  ;;  %v2361_v51 = vshll.u32 %v4694_v23, 16  ;;  %v2365_v29 = vshrl.u32 %v4694_v23, 16 }
 0x23b   : > { %v3848_v15 = vpop.f32.mrf.mxu0  ;;  %2605 = vst [vmem:[#allocation3 + $0xf8] sm:$0xf] %v2551_v62  ;;  %v2559_v62 = vrot.slane %v2557_v50, 4 }
 0x23c   : > { %3945 = vmatmul.bf16.vlgmr.msra.gmra.mxu2 %v4764_v0  ;;  %v5391_v0 = vld [vmem:[#allocation3 + $0x64] sm:$0xf]  ;;  %v2367_v38 = vrot.slane %v2365_v29, 4 }
 0x23d   : > { %3994 = vmatmul.bf16.vlgmr.msra.gmra.mxu3 %v4768_v2  ;;  %v4801_v2 = vld [vmem:[#allocation3 + $0x84] sm:$0xf0] }
 0x23e   : > { %4043 = vmatmul.bf16.vlgmr.msra.gmra.mxu0 %v4772_v6  ;;  %v4807_v6 = vld [vmem:[#allocation3 + $0x68] sm:$0xf] }
 0x23f   : > { %v3750_v19 = vpop.f32.mrf.mxu2  ;;  %v4808_v26 = vor.u32 %v5396_v7, %v4807_v6  ;;  %v5528_v6 = vld [vmem:[#allocation12 + $0x28] sm:$0xff]  ;;  %v2560_v7 = vrot.slane %v4719_v58, 5 }
 0x240   : > { %v3799_v24 = vpop.f32.mrf.mxu3  ;;  %v3751_v5 = vadd.f32 %v3750_v19, %v6847_v45  ;;  %v2350_v45 = vsel %vm6595_vm11, %v2345_v37, %v2349_v35  ;;  %v2354_v19 = vrot.slane %v2352_v27, 4  ;;  %v4695_v35 = vld [vmem:[%s6581_s30 + $0x50] sm:$0x1]  ;;  %4178 = vmatpush.bf16.msra.mxu1 %v5528_v6  ;;  %v4675_v6 = vld [vmem:[%s6581_s30 + $0x54] sm:$0xf] }
 0x241   : > { %2470 = vst [vmem:[#allocation3 + $0x118] sm:$0xf] %v2350_v45  ;;  %v2371_v37 = vshll.u32 %v4695_v35, 16  ;;  %v4673_v45 = vld [vmem:[%s6581_s30 + $0x48] sm:$0xf] }
 0x242   : > { %v3800_v55 = vadd.f32 %v3799_v24, %v3751_v5  ;;  %v2363_v24 = vrot.slane %v2361_v51, 5  ;;  %v2358_v5 = vor.u32 %v2357_v14, %v2354_v19  ;;  %2223 = vst [vmem:[#allocation3 + $0x138] sm:$0xf] %v4673_v45  ;;  %v4696_v19 = vld [vmem:[%s6581_s30 + $0x54] sm:$0xf] }
 0x243   : > { %v3850_v57 = vpop.f32.mrf.mxu0  ;;  %v2373_v49 = vrot.slane %v2371_v37, 5  ;;  %v4697_v14 = vld [vmem:[%s6581_s30 + $0x58] sm:$0xf]  ;;  %v2379_v35 = vshll.u32 %v4696_v19, 16  ;;  %2225 = vst [vmem:[#allocation3 + $0x180] sm:$0xf] %v4675_v6 }
 0x244   : > { %v6987_v63 = vadd.f32 %v3848_v15, %v3800_v55  ;;  %v4804_v15 = vor.u32 %v5391_v0, %v4801_v2  ;;  %v2368_v39 = vor.u32 %v2367_v38, %v2363_v24  ;;  %v2359_v48 = vrot.slane %v2358_v5, 4 }
 0x245   : > { %v3660_v0 = vadd.f32 %v6839_v32, %v6897_v20  ;;  %v2561_v20 = vsel %vm6679_vm14, %v2559_v62, %v2560_v7  ;;  %v2385_v38 = vshll.u32 %v4697_v14, 16  ;;  %v2389_v5 = vshrl.u32 %v4697_v14, 16 }
 0x246   : > { %v2369_v55 = vrot.slane %v2368_v39, 4  ;;  %v2364_v56 = vsel %vm6595_vm11, %v2359_v48, %v2363_v24  ;;  %2608 = vst [vmem:[#allocation3 + $0x164] sm:$0xf] %v2561_v20  ;;  %v2376_v24 = vshrl.u32 %v4696_v19, 16  ;;  %v4698_v48 = vld [vmem:[%s6581_s30 + $0x5c] sm:$0x1] }
 0x247   : > { %v3752_v8 = vpop.f32.mrf.mxu2  ;;  %2471 = vst [vmem:[#allocation3 + $0x13c] sm:$0xf] %v2364_v56  ;;  %v3709_v23 = vadd.f32 %v6901_v25, %v3660_v0  ;;  %v2381_v25 = vrot.slane %v2379_v35, 5  ;;  %v5527_v20 = vld [vmem:[#allocation12 + $0x20] sm:$0xff] }
 0x248   : > { %v3801_v12 = vpop.f32.mrf.mxu3  ;;  %v3753_v13 = vadd.f32 %v3752_v8, %v3704_v1  ;;  %v4835_v1 = vld [vmem:[#allocation3 + $0xa8] sm:$0xf]  ;;  %v5404_v8 = vld [vmem:[#allocation3 + $0xc8] sm:$0xf0]  ;;  %v2378_v40 = vrot.slane %v2376_v24, 4  ;;  %4179 = vmatpush.bf16.msra.mxu1 %v5527_v20 }
 0x249   : > { %v4836_v29 = vor.u32 %v5404_v8, %v4835_v1 }
 0x24a   : > { %v3802_v30 = vadd.f32 %v3801_v12, %v3753_v13 }
 0x24b   : > { %v3853_v31 = vpop.f32.mrf.mxu0 }
 0x24c   : > { %3950 = vmatmul.bf16.gmra.mxu2 %v4800_v3  ;;  %v6994_v18 = vadd.f32 %v3850_v57, %v3802_v30  ;;  %v4717_v57 = vld [vmem:[%s6581_s30 + $0x48] sm:$0xe]  ;;  %v5400_v3 = vld [vmem:[#allocation3 + $0xac] sm:$0xf] }
 0x24d   : > { %3999 = vmatmul.bf16.gmra.mxu3 %v4804_v15  ;;  %v4733_v61 = vrot.slane %v4717_v57, 9  ;;  %v4837_v15 = vld [vmem:[#allocation3 + $0xcc] sm:$0xf0]  ;;  %v4721_v57 = vld [vmem:[%s6581_s30 + $0x58] sm:$0xf] }
 0x24e   : > { %4048 = vmatmul.bf16.gmra.mxu0 %v4808_v26  ;;  %v4843_v26 = vld [vmem:[#allocation3 + $0xb0] sm:$0xf]  ;;  %v4840_v30 = vor.u32 %v5400_v3, %v4837_v15 }
 0x24f   : > { %v3755_v43 = vpop.f32.mrf.mxu2  ;;  %v2558_v12 = vsel %vm6679_vm14, %v4733_v61, %v2557_v50  ;;  %v2382_v50 = vor.u32 %v2381_v25, %v2378_v40  ;;  %v2564_v61 = vrot.slane %v4721_v57, 5 }
 0x250   : > { %v3804_v47 = vpop.f32.mrf.mxu3  ;;  %v3756_v52 = vadd.f32 %v3755_v43, %v6885_v10  ;;  %v2374_v10 = vsel %vm6595_vm11, %v2369_v55, %v2373_v49  ;;  %2607 = vst [vmem:[#allocation3 + $0x140] sm:$0xf] %v2558_v12  ;;  %v2387_v43 = vrot.slane %v2385_v38, 5  ;;  %v2391_v49 = vrot.slane %v2389_v5, 4 }
 0x251   : > { %2472 = vst [vmem:[#allocation3 + $0x160] sm:$0xf] %v2374_v10  ;;  %v2383_v60 = vrot.slane %v2382_v50, 4  ;;  %v4676_v10 = vld [vmem:[%s6581_s30 + $0x58] sm:$0xf]  ;;  %v2566_v8 = vrot.slane %v2564_v61, 4  ;;  %v3665_v12 = vadd.f32 %v6839_v32, %v6930_v34 }
 0x252   : > { %v3805_v2 = vadd.f32 %v3804_v47, %v3756_v52  ;;  %v2395_v52 = vshll.u32 %v4698_v48, 16  ;;  %v2392_v55 = vor.u32 %v2391_v49, %v2387_v43  ;;  %2226 = vst [vmem:[#allocation3 + $0x1a4] sm:$0xf] %v4676_v10  ;;  %v4879_v34 = vld [vmem:[#allocation3 + $0xf8] sm:$0xf] }
 0x253   : > { %v3855_v54 = vpop.f32.mrf.mxu0  ;;  %v2388_v7 = vsel %vm6595_vm11, %v2383_v60, %v2387_v43 }
 0x254   : > { %v7011_v13 = vadd.f32 %v3853_v31, %v3805_v2  ;;  %v4844_v31 = vor.u32 %v5405_v21, %v4843_v26  ;;  %v2397_v56 = vrot.slane %v2395_v52, 5  ;;  %v2393_v0 = vrot.slane %v2392_v55, 4  ;;  %v4720_v2 = vld [vmem:[%s6581_s30 + $0x54] sm:$0xe]  ;;  %v4871_v21 = vld [vmem:[#allocation3 + $0xf0] sm:$0xf] }
 0x255   : > { %v4734_v1 = vrot.slane %v4720_v2, 9  ;;  %2473 = vst [vmem:[#allocation3 + $0x184] sm:$0xf] %v2388_v7 }
 0x257   : > { %v3757_v27 = vpop.f32.mrf.mxu2 }
 0x258   : > { %v3806_v28 = vpop.f32.mrf.mxu3  ;;  %v3758_v51 = vadd.f32 %v3757_v27, %v3709_v23  ;;  %v5413_v23 = vld [vmem:[#allocation3 + $0x110] sm:$0xf0]  ;;  %v2565_v27 = vsel %vm6679_vm14, %v4734_v1, %v2564_v61 }
 0x259   : > { %2609 = vst [vmem:[#allocation3 + $0x188] sm:$0xf] %v2565_v27  ;;  %v4872_v35 = vor.u32 %v5413_v23, %v4871_v21  ;;  %v5720_v21 = vld [vmem:[%s7295_s7] ss:$0 sm:$0xff] }
 0x25a   : > { %v3807_v37 = vadd.f32 %v3806_v28, %v3758_v51  ;;  %v5409_v51 = vld [vmem:[#allocation3 + $0xf4] sm:$0xf]  ;;  %v3670_v23 = vadd.f32 %v5720_v21, %v6959_v44 }
 0x25b   : > { %v3858_v39 = vpop.f32.mrf.mxu0 }
 0x25c   : > { %3955 = vmatmul.bf16.gmra.mxu2 %v4836_v29  ;;  %v7018_v47 = vadd.f32 %v3855_v54, %v3807_v37  ;;  %v4722_v54 = vld [vmem:[%s6581_s30 + $0x5c] sm:$0x1]  ;;  %v4873_v29 = vld [vmem:[#allocation3 + $0x114] sm:$0xf0]  ;;  %v4699_v37 = vld [vmem:[%s6581_s30 + $0x60] sm:$0xf] }
 0x25d   : > { %4004 = vmatmul.bf16.gmra.mxu3 %v4840_v30  ;;  %v2567_v26 = vrot.slane %v4722_v54, 5  ;;  %v5414_v30 = vld [vmem:[#allocation3 + $0x118] sm:$0xf0]  ;;  %v4876_v38 = vor.u32 %v5409_v51, %v4873_v29  ;;  %v2400_v40 = vshrl.u32 %v4699_v37, 16  ;;  %v2403_v25 = vshll.u32 %v4699_v37, 16 }
 0x25e   : > { %4053 = vmatmul.bf16.gmra.mxu0 %v4844_v31  ;;  %v3714_v31 = vadd.f32 %v6934_v36, %v3665_v12  ;;  %v4880_v5 = vor.u32 %v5414_v30, %v4879_v34  ;;  %v4725_v12 = vld [vmem:[%s6581_s30 + $0x68] sm:$0x1]  ;;  %v5526_v29 = vld [vmem:[#allocation12 + $0x18] sm:$0xff]  ;;  %v3718_v34 = vpop.f32.mrf.mxu1 }
 0x25f   : > { %v3760_v58 = vpop.f32.mrf.mxu2  ;;  %v2568_v32 = vsel %vm6679_vm14, %v2566_v8, %v2567_v26  ;;  %v2402_v52 = vrot.slane %v2400_v40, 4  ;;  %v2405_v36 = vrot.slane %v2403_v25, 5  ;;  %v4723_v8 = vld [vmem:[%s6581_s30 + $0x60] sm:$0xe]  ;;  %v4907_v30 = vld [vmem:[#allocation3 + $0x138] sm:$0xf]  ;;  %4180 = vmatpush.bf16.msra.mxu1 %v5526_v29  ;;  %v3719_v37 = vadd.f32 %v3718_v34, %v3670_v23 }
 0x260   : > { %v3809_v45 = vpop.f32.mrf.mxu3  ;;  %v3761_v62 = vadd.f32 %v3760_v58, %v6918_v9  ;;  %v2398_v9 = vsel %vm6595_vm11, %v2393_v0, %v2397_v56  ;;  %2610 = vst [vmem:[#allocation3 + $0x1ac] sm:$0xf] %v2568_v32  ;;  %v4701_v58 = vld [vmem:[%s6581_s30 + $0x68] sm:$0x1]  ;;  %v2574_v32 = vrot.slane %v4725_v12, 5 }
 0x261   : > { %2474 = vst [vmem:[#allocation3 + $0x1a8] sm:$0xf] %v2398_v9  ;;  %v2406_v60 = vor.u32 %v2405_v36, %v2402_v52  ;;  %v2419_v56 = vshll.u32 %v4701_v58, 16  ;;  %v4735_v9 = vrot.slane %v4723_v8, 9  ;;  %v4703_v52 = vld [vmem:[%s6581_s30 + $0x70] sm:$0xf] }
 0x262   : > { %v3810_v3 = vadd.f32 %v3809_v45, %v3761_v62  ;;  %v4724_v62 = vld [vmem:[%s6581_s30 + $0x64] sm:$0xf]  ;;  %v2433_v58 = vshll.u32 %v4703_v52, 16  ;;  %v4727_v8 = vld [vmem:[%s6581_s30 + $0x70] sm:$0xf] }
 0x263   : > { %v3860_v15 = vpop.f32.mrf.mxu0  ;;  %v2407_v54 = vrot.slane %v2406_v60, 4  ;;  %v2421_v6 = vrot.slane %v2419_v56, 5  ;;  %v2571_v10 = vrot.slane %v4724_v62, 5  ;;  %v4726_v23 = vld [vmem:[%s6581_s30 + $0x6c] sm:$0xe] }
 0x264   : > { %v7035_v28 = vadd.f32 %v3858_v39, %v3810_v3  ;;  %v4700_v39 = vld [vmem:[%s6581_s30 + $0x64] sm:$0xf]  ;;  %v4677_v3 = vld [vmem:[%s6581_s30 + $0x60] sm:$0xf]  ;;  %v4680_v29 = vld [vmem:[%s6581_s30 + $0x70] sm:$0xf] }
 0x265   : > { %v2409_v43 = vshll.u32 %v4700_v39, 16  ;;  %v2413_v48 = vshrl.u32 %v4700_v39, 16  ;;  %v2573_v26 = vrot.slane %v2571_v10, 4  ;;  %2227 = vst [vmem:[#allocation3 + $0x1c8] sm:$0xf] %v4677_v3 }
 0x266   : > { %2230 = vst [vmem:[#allocation3 + $0x234] sm:$0xf] %v4680_v29 }
 0x267   : > { %v3762_v19 = vpop.f32.mrf.mxu2  ;;  %v2411_v55 = vrot.slane %v2409_v43, 5  ;;  %v2415_v45 = vrot.slane %v2413_v48, 4  ;;  %v2575_v44 = vsel %vm6679_vm14, %v2573_v26, %v2574_v32  ;;  %v4736_v32 = vrot.slane %v4726_v23, 9  ;;  %v5432_v17 = vld [vmem:[#allocation3 + $0x1a8] sm:$0xf0]  ;;  %v3897_v23 = vpop.f32.mrf.mxu1 }
 0x268   : > { %v3811_v14 = vpop.f32.mrf.mxu3  ;;  %v3763_v24 = vadd.f32 %v3762_v19, %v3714_v31  ;;  %v5422_v31 = vld [vmem:[#allocation3 + $0x158] sm:$0xf0]  ;;  %v2572_v19 = vsel %vm6679_vm14, %v4735_v9, %v2571_v10  ;;  %2612 = vst [vmem:[#allocation3 + $0x1f4] sm:$0xf] %v2575_v44  ;;  %v2578_v9 = vrot.slane %v4727_v8, 5 }
 0x269   : > { %v2416_v61 = vor.u32 %v2415_v45, %v2411_v55  ;;  %v2412_v20 = vsel %vm6595_vm11, %v2407_v54, %v2411_v55  ;;  %2611 = vst [vmem:[#allocation3 + $0x1d0] sm:$0xf] %v2572_v19  ;;  %v4908_v43 = vor.u32 %v5422_v31, %v4907_v30  ;;  %v2437_v45 = vshrl.u32 %v4703_v52, 16  ;;  %v4704_v54 = vld [vmem:[%s6581_s30 + $0x74] sm:$0x1]  ;;  %v5525_v19 = vld [vmem:[#allocation12 + $0x10] sm:$0xff] }
 0x26a   : > { %v3812_v49 = vadd.f32 %v3811_v14, %v3763_v24  ;;  %v5418_v24 = vld [vmem:[#allocation3 + $0x13c] sm:$0xf]  ;;  %2475 = vst [vmem:[#allocation3 + $0x1cc] sm:$0xf] %v2412_v20  ;;  %v2580_v34 = vrot.slane %v2578_v9, 4  ;;  %4181 = vmatpush.bf16.msra.mxu1 %v5525_v19 }
 0x26b   : > { %v3863_v50 = vpop.f32.mrf.mxu0  ;;  %v2417_v1 = vrot.slane %v2416_v61, 4 }
 0x26c   : > { %3960 = vmatmul.bf16.gmra.mxu2 %v4872_v35  ;;  %v7042_v57 = vadd.f32 %v3860_v15, %v3812_v49  ;;  %v4678_v15 = vld [vmem:[%s6581_s30 + $0x64] sm:$0xf]  ;;  %v4909_v35 = vld [vmem:[#allocation3 + $0x15c] sm:$0xf0] }
 0x26d   : > { %4009 = vmatmul.bf16.gmra.mxu3 %v4876_v38  ;;  %2228 = vst [vmem:[#allocation3 + $0x1ec] sm:$0xf] %v4678_v15  ;;  %v4915_v38 = vld [vmem:[#allocation3 + $0x140] sm:$0xf]  ;;  %v4912_v48 = vor.u32 %v5418_v24, %v4909_v35 }
 0x26e   : > { %4058 = vmatmul.bf16.gmra.mxu0 %v4880_v5  ;;  %v5423_v5 = vld [vmem:[#allocation3 + $0x160] sm:$0xf0] }
 0x26f   : > { %v3765_v0 = vpop.f32.mrf.mxu2  ;;  %v4916_v49 = vor.u32 %v5423_v5, %v4915_v38  ;;  %v4943_v38 = vld [vmem:[#allocation3 + $0x180] sm:$0xf]  ;;  %v5431_v5 = vld [vmem:[#allocation3 + $0x1a0] sm:$0xf0]  ;;  %v5441_v8 = vld [vmem:[#allocation3 + $0x1f0] sm:$0xf0] }
 0x270   : > { %v3814_v2 = vpop.f32.mrf.mxu3  ;;  %v3766_v7 = vadd.f32 %v3765_v0, %v6947_v53  ;;  %v2422_v53 = vsel %vm6595_vm11, %v2417_v1, %v2421_v6  ;;  %v2435_v0 = vrot.slane %v2433_v58, 5  ;;  %v2439_v6 = vrot.slane %v2437_v45, 4 }
 0x271   : > { %2476 = vst [vmem:[#allocation3 + $0x1f0] sm:$0xf] %v2422_v53 }
 0x272   : > { %v3815_v27 = vadd.f32 %v3814_v2, %v3766_v7  ;;  %v2443_v7 = vshll.u32 %v4704_v54, 16  ;;  %v2440_v1 = vor.u32 %v2439_v6, %v2435_v0 }
 0x273   : > { %v3865_v51 = vpop.f32.mrf.mxu0 }
 0x274   : > { %v7061_v14 = vadd.f32 %v3863_v50, %v3815_v27  ;;  %v4702_v50 = vld [vmem:[%s6581_s30 + $0x6c] sm:$0xf]  ;;  %v2445_v20 = vrot.slane %v2443_v7, 5  ;;  %v2441_v21 = vrot.slane %v2440_v1, 4  ;;  %v4728_v27 = vld [vmem:[%s6581_s30 + $0x74] sm:$0x1] }
 0x275   : > { %v2424_v36 = vshrl.u32 %v4702_v50, 16  ;;  %v2427_v55 = vshll.u32 %v4702_v50, 16  ;;  %v2581_v35 = vrot.slane %v4728_v27, 5  ;;  %v4944_v50 = vor.u32 %v5431_v5, %v4943_v38  ;;  %v5440_v6 = vld [vmem:[#allocation3 + $0x1e8] sm:$0xf0]  ;;  %v5523_v5 = vld [vmem:[#allocation12] sm:$0xff] }
 0x276   : > { %v2446_v24 = vsel %vm6595_vm11, %v2441_v21, %v2445_v20  ;;  %v4987_v1 = vld [vmem:[#allocation3 + $0x1d0] sm:$0xf] }
 0x277   : > { %v3767_v39 = vpop.f32.mrf.mxu2  ;;  %v2426_v61 = vrot.slane %v2424_v36, 4  ;;  %v2429_v62 = vrot.slane %v2427_v55, 5  ;;  %2478 = vst [vmem:[#allocation3 + $0x238] sm:$0xf] %v2446_v24 }
 0x278   : > { %v3816_v40 = vpop.f32.mrf.mxu3  ;;  %v3768_v25 = vadd.f32 %v3767_v39, %v3719_v37  ;;  %v2582_v37 = vsel %vm6679_vm14, %v2580_v34, %v2581_v35  ;;  %v5427_v39 = vld [vmem:[#allocation3 + $0x184] sm:$0xf]  ;;  %v4981_v7 = vld [vmem:[#allocation3 + $0x1ec] sm:$0xf0]  ;;  %v3899_v35 = vpop.f32.mrf.mxu1 }
 0x279   : > { %v2430_v10 = vor.u32 %v2429_v62, %v2426_v61  ;;  %2614 = vst [vmem:[#allocation3 + $0x23c] sm:$0xf] %v2582_v37 }
 0x27a   : > { %v3817_v60 = vadd.f32 %v3816_v40, %v3768_v25  ;;  %v4945_v40 = vld [vmem:[#allocation3 + $0x1a4] sm:$0xf0] }
 0x27b   : > { %v3868_v56 = vpop.f32.mrf.mxu0  ;;  %v2431_v15 = vrot.slane %v2430_v10, 4  ;;  %v4951_v25 = vld [vmem:[#allocation3 + $0x188] sm:$0xf]  ;;  %v4948_v52 = vor.u32 %v5427_v39, %v4945_v40  ;;  %v5436_v10 = vld [vmem:[#allocation3 + $0x1cc] sm:$0xf] }
 0x27c   : > { %3965 = vmatmul.bf16.gmra.mxu2 %v4908_v43  ;;  %v7067_v2 = vadd.f32 %v3865_v51, %v3817_v60  ;;  %v4679_v51 = vld [vmem:[%s6581_s30 + $0x6c] sm:$0xf]  ;;  %v4952_v36 = vor.u32 %v5432_v17, %v4951_v25  ;;  %s7298_s30 = sld [smem:[#allocation33_spill]] }
 0x27d   : > { %4014 = vmatmul.bf16.gmra.mxu3 %v4912_v48  ;;  %v2436_v53 = vsel %vm6595_vm11, %v2431_v15, %v2435_v0  ;;  %2229 = vst [vmem:[#allocation3 + $0x210] sm:$0xf] %v4679_v51  ;;  %v5524_v0 = vld [vmem:[#allocation12 + $0x8] sm:$0xff] }
 0x27e   : > { %4063 = vmatmul.bf16.gmra.mxu0 %v4916_v49  ;;  %2477 = vst [vmem:[#allocation3 + $0x214] sm:$0xf] %v2436_v53  ;;  %4182 = vmatpush.bf16.msra.mxu1 %v5524_v0  ;;  %v5017_v24 = vld [vmem:[#allocation3 + $0x234] sm:$0xf0] }
 0x27f   : > { %v3770_v12 = vpop.f32.mrf.mxu2 }
 0x280   : > { %v3819_v3 = vpop.f32.mrf.mxu3  ;;  %v3771_v26 = vadd.f32 %v3770_v12, %v6863_v11  ;;  %v2579_v11 = vsel %vm6679_vm14, %v4736_v32, %v2578_v9  ;;  %v4984_v9 = vor.u32 %v5436_v10, %v4981_v7  ;;  %v5450_v38 = vld [vmem:[#allocation3 + $0x238] sm:$0xf0] }
 0x281   : > { %2613 = vst [vmem:[#allocation3 + $0x218] sm:$0xf] %v2579_v11 }
 0x282   : > { %v3820_v30 = vadd.f32 %v3819_v3, %v3771_v26  ;;  %v4988_v26 = vor.u32 %v5441_v8, %v4987_v1  ;;  %4183 = vmatpush.bf16.msra.mxu1 %v5523_v5  ;;  %v3898_v1 = vadd.f32 %v3897_v23, %v6987_v63  ;;  %s7299_s17 = smov %s7298_s30  ;;  %s4304_s0 = scalar_lea.hbm %s7298_s30, %s5349_s4 }
 0x283   : > { %v3870_v31 = vpop.f32.mrf.mxu0  ;;  %s4307_s6 = sshll.u32 %s4304_s0, 4  ;;  %s5891_s23 = scalar_lea.hbm %s7299_s17, 512  ;;  %s4308_s6 = int_to_ptr.hbm [resolvable:$true] %s4307_s6 }
 0x284   : > { %v7082_v44 = vadd.f32 %v3868_v56, %v3820_v30  ;;  %s5885_s3 = sshra.s32 %s4308_s6, 4  ;;  %s5886_s3 = int_to_ptr.hbm [resolvable:$true] %s5885_s3 }
 0x285   : > { %v5445_v19 = vld [vmem:[#allocation3 + $0x214] sm:$0xf]  ;;  %p5892_p5 = scmp.lt.s32.totalorder %s5886_s3, %s7299_s17 }
 0x286   : > { %v5020_v17 = vor.u32 %v5445_v19, %v5017_v24 }
 0x287   : > { %v3772_v43 = vpop.f32.mrf.mxu2 }
 0x288   : > { %v3821_v48 = vpop.f32.mrf.mxu3  ;;  %v3773_v49 = vadd.f32 %v3772_v43, %v6878_v41  ;;  %v4979_v41 = vld [vmem:[#allocation3 + $0x1c8] sm:$0xf]  ;;  %v5023_v11 = vld [vmem:[#allocation3 + $0x218] sm:$0xf] }
 0x289   : > { %v4980_v20 = vor.u32 %v5440_v6, %v4979_v41 }
 0x28a   : > { %v3822_v55 = vadd.f32 %v3821_v48, %v3773_v49 }
 0x28b   : > { %v3873_v58 = vpop.f32.mrf.mxu0 }
 0x28c   : > { %3970 = vmatmul.bf16.gmra.mxu2 %v4944_v50  ;;  %v7087_v46 = vadd.f32 %v3870_v31, %v3822_v55  ;;  %v5449_v31 = vld [vmem:[#allocation3 + $0x230] sm:$0xf0] }
 0x28d   : > { %4019 = vmatmul.bf16.gmra.mxu3 %v4948_v52 }
 0x28e   : > { %4068 = vmatmul.bf16.gmra.mxu0 %v4952_v36  ;;  %v3902_v36 = vpop.f32.mrf.mxu1 }
 0x28f   : > { %v3775_v45 = vpop.f32.mrf.mxu2  ;;  %v3903_v63 = vadd.f32 %v3902_v36, %v7011_v13 }
 0x290   : > { %v3824_v60 = vpop.f32.mrf.mxu3  ;;  %v3776_v56 = vadd.f32 %v3775_v45, %v6895_v16 }
 0x292   : > { %v3825_v61 = vadd.f32 %v3824_v60, %v3776_v56 }
 0x293   : > { %v3875_v62 = vpop.f32.mrf.mxu0 }
 0x294   : > { %v7090_v54 = vadd.f32 %v3873_v58, %v3825_v61 }
 0x297   : > { %v3777_v12 = vpop.f32.mrf.mxu2 }
 0x298   : > { %v3826_v3 = vpop.f32.mrf.mxu3  ;;  %v3778_v15 = vadd.f32 %v3777_v12, %v6914_v22  ;;  %v5015_v22 = vld [vmem:[#allocation3 + $0x210] sm:$0xf] }
 0x299   : > { %v5016_v25 = vor.u32 %v5449_v31, %v5015_v22 }
 0x29a   : > { %v3827_v16 = vadd.f32 %v3826_v3, %v3778_v15  ;;  %v3900_v3 = vadd.f32 %v3899_v35, %v6994_v18 }
 0x29b   : > { %v3878_v21 = vpop.f32.mrf.mxu0 }
 0x29c   : > { %3975 = vmatmul.bf16.gmra.mxu2 %v4980_v20  ;;  %v7093_v27 = vadd.f32 %v3875_v62, %v3827_v16  ;;  %v3904_v62 = vpop.f32.mrf.mxu1 }
 0x29d   : > { %4024 = vmatmul.bf16.gmra.mxu3 %v4984_v9  ;;  %v3905_v18 = vadd.f32 %v3904_v62, %v7018_v47 }
 0x29e   : > { %4073 = vmatmul.bf16.gmra.mxu0 %v4988_v26 }
 0x29f   : > { %v3780_v51 = vpop.f32.mrf.mxu2 }
 0x2a0   : > { %v3829_v29 = vpop.f32.mrf.mxu3  ;;  %v3781_v53 = vadd.f32 %v3780_v51, %v6928_v33  ;;  %v5024_v33 = vor.u32 %v5450_v38, %v5023_v11 }
 0x2a2   : > { %v3830_v32 = vadd.f32 %v3829_v29, %v3781_v53 }
 0x2a3   : > { %v3880_v34 = vpop.f32.mrf.mxu0 }
 0x2a4   : > { %v7096_v30 = vadd.f32 %v3878_v21, %v3830_v32 }
 0x2a7   : > { %v3782_v37 = vpop.f32.mrf.mxu2 }
 0x2a8   : > { %v3831_v39 = vpop.f32.mrf.mxu3  ;;  %v3783_v40 = vadd.f32 %v3782_v37, %v6943_v4 }
 0x2aa   : > { %v3832_v43 = vadd.f32 %v3831_v39, %v3783_v40 }
 0x2ab   : > { %v3883_v48 = vpop.f32.mrf.mxu0 }
 0x2ac   : > { %3980 = vmatmul.bf16.gmra.mxu2 %v5016_v25  ;;  %v7099_v49 = vadd.f32 %v3880_v34, %v3832_v43 }
 0x2ad   : > { %4029 = vmatmul.bf16.gmra.mxu3 %v5020_v17 }
 0x2ae   : > { %4078 = vmatmul.bf16.gmra.mxu0 %v5024_v33 }
 0x2af   : > { %v3785_v50 = vpop.f32.mrf.mxu2 }
 0x2b0   : > { %v3834_v52 = vpop.f32.mrf.mxu3  ;;  %v3786_v55 = vadd.f32 %v3785_v50, %v6957_v42  ;;  %v3907_v42 = vpop.f32.mrf.mxu1 }
 0x2b1   : > { %v3908_v13 = vadd.f32 %v3907_v42, %v7035_v28 }
 0x2b2   : > { %v3835_v58 = vadd.f32 %v3834_v52, %v3786_v55 }
 0x2b3   : > { %v3885_v45 = vpop.f32.mrf.mxu0 }
 0x2b4   : > { %v7102_v60 = vadd.f32 %v3883_v48, %v3835_v58 }
 0x2b7   : > { %v3787_v4 = vpop.f32.mrf.mxu2 }
 0x2b8   : > { %v3836_v56 = vpop.f32.mrf.mxu3  ;;  %v3788_v61 = vadd.f32 %v3787_v4, %v6970_v59  ;;  %v3909_v29 = vpop.f32.mrf.mxu1 }
 0x2b9   : > { %v3910_v55 = vadd.f32 %v3909_v29, %v7042_v57 }
 0x2ba   : > { %v3837_v0 = vadd.f32 %v3836_v56, %v3788_v61 }
 0x2bb   : > { %v4044_v41 = vpop.f32.mrf.mxu0 }
 0x2bc   : > { %v7105_v6 = vadd.f32 %v3885_v45, %v3837_v0 }
 0x2bf   : > { %v3946_v10 = vpop.f32.mrf.mxu2 }
 0x2c0   : > { %v3995_v7 = vpop.f32.mrf.mxu3  ;;  %v3947_v8 = vadd.f32 %v3946_v10, %v3898_v1  ;;  %v3912_v38 = vpop.f32.mrf.mxu1 }
 0x2c2   : > { %v3996_v15 = vadd.f32 %v3995_v7, %v3947_v8 }
 0x2c3   : > { %v4046_v12 = vpop.f32.mrf.mxu0 }
 0x2c4   : > { %v4045_v16 = vadd.f32 %v4044_v41, %v3996_v15 }
 0x2c6   : > { %v4084_v53 = vmax.f32 %v4045_v16, 0.0 }
 0x2c7   : > { %v3948_v20 = vpop.f32.mrf.mxu2 }
 0x2c8   : > { %v3997_v9 = vpop.f32.mrf.mxu3  ;;  %v3949_v26 = vadd.f32 %v3948_v20, %v3900_v3  ;;  %v3914_v52 = vpop.f32.mrf.mxu1 }
 0x2c9   : > { %v3915_v57 = vadd.f32 %v3914_v52, %v7067_v2 }
 0x2ca   : > { %v3998_v59 = vadd.f32 %v3997_v9, %v3949_v26 }
 0x2cb   : > { %v4049_v21 = vpop.f32.mrf.mxu0 }
 0x2cc   : > { %v4047_v51 = vadd.f32 %v4046_v12, %v3998_v59  ;;  %v3913_v12 = vadd.f32 %v3912_v38, %v7061_v14 }
 0x2ce   : > { %v4085_v32 = vmax.f32 %v4047_v51, 0.0 }
 0x2cf   : > { %v3951_v34 = vpop.f32.mrf.mxu2 }
 0x2d0   : > { %v4000_v22 = vpop.f32.mrf.mxu3  ;;  %v4100_v23 = vpack.c.bf16 %v4085_v32, %v4084_v53  ;;  %v3952_v31 = vadd.f32 %v3951_v34, %v3903_v63  ;;  %v3917_v41 = vpop.f32.mrf.mxu1 }
 0x2d1   : > { %v3918_v14 = vadd.f32 %v3917_v41, %v7082_v44 }
 0x2d2   : > { %4184 = vmatmul.bf16.vlgmr.msra.gmra.mxu1 %v4100_v23  ;;  %v4001_v24 = vadd.f32 %v4000_v22, %v3952_v31 }
 0x2d3   : > { %v4051_v19 = vpop.f32.mrf.mxu0 }
 0x2d4   : > { %v4050_v37 = vadd.f32 %v4049_v21, %v4001_v24 }
 0x2d6   : > { %v4086_v17 = vmax.f32 %v4050_v37, 0.0 }
 0x2d7   : > { %v3953_v35 = vpop.f32.mrf.mxu2 }
 0x2d8   : > { %v4002_v11 = vpop.f32.mrf.mxu3  ;;  %v3954_v5 = vadd.f32 %v3953_v35, %v3905_v18  ;;  %v3919_v20 = vpop.f32.mrf.mxu1 }
 0x2d9   : > { %v3920_v18 = vadd.f32 %v3919_v20, %v7087_v46 }
 0x2da   : > { %v4003_v39 = vadd.f32 %v4002_v11, %v3954_v5 }
 0x2db   : > { %v4054_v40 = vpop.f32.mrf.mxu0 }
 0x2dc   : > { %v4052_v25 = vadd.f32 %v4051_v19, %v4003_v39 }
 0x2de   : > { %v4087_v33 = vmax.f32 %v4052_v25, 0.0 }
 0x2df   : > { %v3956_v43 = vpop.f32.mrf.mxu2 }
 0x2e0   : > { %v4005_v48 = vpop.f32.mrf.mxu3  ;;  %v4101_v50 = vpack.c.bf16 %v4087_v33, %v4086_v17  ;;  %v3957_v36 = vadd.f32 %v3956_v43, %v3908_v13  ;;  %v3922_v23 = vpop.f32.mrf.mxu1 }
 0x2e2   : > { %4189 = vmatmul.bf16.gmra.mxu1 %v4101_v50  ;;  %v4006_v58 = vadd.f32 %v4005_v48, %v3957_v36  ;;  %v3923_v48 = vadd.f32 %v3922_v23, %v7090_v54 }
 0x2e3   : > { %v4056_v47 = vpop.f32.mrf.mxu0 }
 0x2e4   : > { %v4055_v61 = vadd.f32 %v4054_v40, %v4006_v58 }
 0x2e6   : > { %v4088_v7 = vmax.f32 %v4055_v61, 0.0 }
 0x2e7   : > { %v3958_v45 = vpop.f32.mrf.mxu2 }
 0x2e8   : > { %v4007_v4 = vpop.f32.mrf.mxu3  ;;  %v3959_v56 = vadd.f32 %v3958_v45, %v3910_v55  ;;  %v3924_v5 = vpop.f32.mrf.mxu1 }
 0x2e9   : > { %v3925_v36 = vadd.f32 %v3924_v5, %v7093_v27  ;;  %v4225_v5 = vld [vmem:[%s6256_s27] sm:$0xff] }
 0x2ea   : > { %v4008_v62 = vadd.f32 %v4007_v4, %v3959_v56 }
 0x2eb   : > { %v4059_v0 = vpop.f32.mrf.mxu0 }
 0x2ec   : > { %v4057_v10 = vadd.f32 %v4056_v47, %v4008_v62 }
 0x2ee   : > { %v4089_v1 = vmax.f32 %v4057_v10, 0.0 }
 0x2ef   : > { %v3961_v8 = vpop.f32.mrf.mxu2 }
 0x2f0   : > { %v4010_v28 = vpop.f32.mrf.mxu3  ;;  %v4102_v42 = vpack.c.bf16 %v4089_v1, %v4088_v7  ;;  %v3962_v3 = vadd.f32 %v3961_v8, %v3913_v12  ;;  %v3927_v46 = vpop.f32.mrf.mxu1 }
 0x2f1   : > { %v3928_v1 = vadd.f32 %v3927_v46, %v7096_v30 }
 0x2f2   : > { %4194 = vmatmul.bf16.gmra.mxu1 %v4102_v42  ;;  %v4011_v9 = vadd.f32 %v4010_v28, %v3962_v3 }
 0x2f3   : > { %v4061_v15 = vpop.f32.mrf.mxu0 }
 0x2f4   : > { %v4060_v21 = vadd.f32 %v4059_v0, %v4011_v9 }
 0x2f6   : > { %v4090_v32 = vmax.f32 %v4060_v21, 0.0 }
 0x2f7   : > { %v3963_v26 = vpop.f32.mrf.mxu2 }
 0x2f8   : > { %v4012_v16 = vpop.f32.mrf.mxu3  ;;  %v3964_v59 = vadd.f32 %v3963_v26, %v3915_v57  ;;  %v3929_v0 = vpop.f32.mrf.mxu1 }
 0x2f9   : > { %v3930_v27 = vadd.f32 %v3929_v0, %v7099_v49 }
 0x2fa   : > { %v4013_v51 = vadd.f32 %v4012_v16, %v3964_v59 }
 0x2fb   : > { %v4064_v29 = vpop.f32.mrf.mxu0 }
 0x2fc   : > { %v4062_v53 = vadd.f32 %v4061_v15, %v4013_v51 }
 0x2fe   : > { %v4091_v34 = vmax.f32 %v4062_v53, 0.0 }
 0x2ff   : > { %v3966_v22 = vpop.f32.mrf.mxu2 }
 0x300   : > { %v4015_v63 = vpop.f32.mrf.mxu3  ;;  %v4103_v31 = vpack.c.bf16 %v4091_v34, %v4090_v32  ;;  %v3967_v19 = vadd.f32 %v3966_v22, %v3918_v14  ;;  %v3932_v20 = vpop.f32.mrf.mxu1 }
 0x301   : > { %v3933_v30 = vadd.f32 %v3932_v20, %v7102_v60 }
 0x302   : > { %4199 = vmatmul.bf16.gmra.mxu1 %v4103_v31  ;;  %v4016_v24 = vadd.f32 %v4015_v63, %v3967_v19 }
 0x303   : > { %v4066_v2 = vpop.f32.mrf.mxu0 }
 0x304   : > { %v4065_v37 = vadd.f32 %v4064_v29, %v4016_v24 }
 0x306   : > { %v4092_v17 = vmax.f32 %v4065_v37, 0.0 }
 0x307   : > { %v3968_v35 = vpop.f32.mrf.mxu2 }
 0x308   : > { %v4017_v11 = vpop.f32.mrf.mxu3  ;;  %v3969_v38 = vadd.f32 %v3968_v35, %v3920_v18  ;;  %v3934_v49 = vpop.f32.mrf.mxu1 }
 0x309   : > { %v3935_v22 = vadd.f32 %v3934_v49, %v7105_v6  ;;  %v7126_v6 = vld [vmem:[%s7296_s5] ss:$0 sm:$0xff]  ;;  %s5887_s5 = scalar_lea.hbm %s5886_s3, 128 }
 0x30a   : > { %v4018_v39 = vadd.f32 %v4017_v11, %v3969_v38  ;;  %p5888_p0 = scmp.ne.s32.totalorder %s5886_s3, %s5887_s5  ;;  %p5893_p9 = scmp.lt.s32.totalorder %s5891_s23, %s5887_s5 }
 0x30b   : > { %v4069_v40 = vpop.f32.mrf.mxu0 }
 0x30c   : > { %v4067_v25 = vadd.f32 %v4066_v2, %v4018_v39  ;;  %p5889_p4 = pnand %p5888_p0, %p6217_p3  ;;  %p5894_p10 = por %p5893_p9, %p5892_p5 }
 0x30e   : > { %v4093_v33 = vmax.f32 %v4067_v25, 0.0  ;;  %p5890_p1 = pneg %p5889_p4 }
 0x30f   : > { %v3971_v43 = vpop.f32.mrf.mxu2 }
 0x310   : > { %v4020_v44 = vpop.f32.mrf.mxu3  ;;  %v4104_v13 = vpack.c.bf16 %v4093_v33, %v4092_v17  ;;  %v3972_v50 = vadd.f32 %v3971_v43, %v3923_v48  ;;  %v4226_v17 = vld [vmem:[%s6256_s27 + $0x8] sm:$0xff]  ;;  %p5895_p11 = pnand %p5894_p10, %p5890_p1 }
 0x312   : > { %4204 = vmatmul.bf16.gmra.mxu1 %v4104_v13  ;;  %v4021_v47 = vadd.f32 %v4020_v44, %v3972_v50  ;;  %v4227_v13 = vld [vmem:[%s6256_s27 + $0x10] sm:$0xff] }
 0x313   : > { %v4071_v52 = vpop.f32.mrf.mxu0 }
 0x314   : > { %v4070_v4 = vadd.f32 %v4069_v40, %v4021_v47  ;;  %v4228_v47 = vld [vmem:[%s6256_s27 + $0x18] sm:$0xff] }
 0x316   : > { %v4094_v41 = vmax.f32 %v4070_v4, 0.0 }
 0x317   : > { %v3973_v55 = vpop.f32.mrf.mxu2 }
 0x318   : > { %v4022_v58 = vpop.f32.mrf.mxu3  ;;  %v3974_v45 = vadd.f32 %v3973_v55, %v3925_v36 }
 0x31a   : > { %v4023_v56 = vadd.f32 %v4022_v58, %v3974_v45 }
 0x31b   : > { %v4074_v62 = vpop.f32.mrf.mxu0 }
 0x31c   : > { %v4072_v61 = vadd.f32 %v4071_v52, %v4023_v56  ;;  %v4229_v56 = vld [vmem:[%s6256_s27 + $0x20] sm:$0xff] }
 0x31e   : > { %v4095_v10 = vmax.f32 %v4072_v61, 0.0 }
 0x31f   : > { %v3976_v7 = vpop.f32.mrf.mxu2 }
 0x320   : > { %v4025_v54 = vpop.f32.mrf.mxu3  ;;  %v4105_v8 = vpack.c.bf16 %v4095_v10, %v4094_v41  ;;  %v3977_v28 = vadd.f32 %v3976_v7, %v3928_v1  ;;  %v4230_v10 = vld [vmem:[%s6256_s27 + $0x28] sm:$0xff] }
 0x322   : > { %4209 = vmatmul.bf16.gmra.mxu1 %v4105_v8  ;;  %v4026_v12 = vadd.f32 %v4025_v54, %v3977_v28  ;;  %v4231_v28 = vld [vmem:[%s6256_s27 + $0x30] sm:$0xff] }
 0x323   : > { %v4076_v42 = vpop.f32.mrf.mxu0 }
 0x324   : > { %v4075_v9 = vadd.f32 %v4074_v62, %v4026_v12 }
 0x326   : > { %v4096_v59 = vmax.f32 %v4075_v9, 0.0 }
 0x327   : > { %v3978_v3 = vpop.f32.mrf.mxu2 }
 0x328   : > { %v4027_v15 = vpop.f32.mrf.mxu3  ;;  %v3979_v57 = vadd.f32 %v3978_v3, %v3930_v27 }
 0x32a   : > { %v4028_v26 = vadd.f32 %v4027_v15, %v3979_v57  ;;  %v4232_v15 = vld [vmem:[%s6256_s27 + $0x38] sm:$0xff] }
 0x32b   : > { %v4079_v32 = vpop.f32.mrf.mxu0 }
 0x32c   : > { %v4077_v16 = vadd.f32 %v4076_v42, %v4028_v26 }
 0x32e   : > { %v4097_v21 = vmax.f32 %v4077_v16, 0.0  ;;  %v4233_v16 = vld [vmem:[%s6256_s27 + $0x40] sm:$0xff] }
 0x32f   : > { %v3981_v51 = vpop.f32.mrf.mxu2 }
 0x330   : > { %v4030_v29 = vpop.f32.mrf.mxu3  ;;  %v4106_v53 = vpack.c.bf16 %v4097_v21, %v4096_v59  ;;  %v3982_v34 = vadd.f32 %v3981_v51, %v3933_v30  ;;  %v4234_v30 = vld [vmem:[%s6256_s27 + $0x48] sm:$0xff] }
 0x332   : > { %4214 = vmatmul.bf16.gmra.mxu1 %v4106_v53  ;;  %v4031_v63 = vadd.f32 %v4030_v29, %v3982_v34 }
 0x333   : > { %v4081_v18 = vpop.f32.mrf.mxu0 }
 0x334   : > { %v4080_v19 = vadd.f32 %v4079_v32, %v4031_v63 }
 0x336   : > { %v4098_v35 = vmax.f32 %v4080_v19, 0.0  ;;  %v4236_v19 = vld [vmem:[%s6256_s27 + $0x58] sm:$0xff] }
 0x337   : > { %v3983_v14 = vpop.f32.mrf.mxu2 }
 0x338   : > { %v3984_v23 = vadd.f32 %v3983_v14, %v3935_v22  ;;  %v4032_v31 = vpop.f32.mrf.mxu3  ;;  %v4235_v22 = vld [vmem:[%s6256_s27 + $0x50] sm:$0xff] }
 0x33a   : > { %v4033_v2 = vadd.f32 %v4032_v31, %v3984_v23 }
 0x33c   : > { %v4082_v24 = vadd.f32 %v4081_v18, %v4033_v2 }
 0x33e   : > { %v4099_v60 = vmax.f32 %v4082_v24, 0.0 }
 0x340   : > { %v4107_v11 = vpack.c.bf16 %v4099_v60, %v4098_v35  ;;  %v4237_v60 = vld [vmem:[%s6256_s27 + $0x60] sm:$0xff] }
 0x342   : > { %4219 = vmatmul.bf16.gmra.mxu1 %v4107_v11 }
 0x34f   : > { %v4185_v38 = vpop.f32.mrf.mxu1 }
 0x350   : > { %v4186_v37 = vadd.f32 %v7126_v6, %v4185_v38 }
 0x352   : > { %v4241_v39 = vadd.f32 %v4225_v5, %v4186_v37 }
 0x354   : > { %v4257_v40 = vmax.f32 %v4241_v39, 0.0  ;;  %v4238_v39 = vld [vmem:[%s6256_s27 + $0x68] sm:$0xff] }
 0x356   : > { %4273 = vst [vmem:[%s6270_s8] sm:$0xff] %v4257_v40 }
 0x357   : > { %v4187_v25 = vpop.f32.mrf.mxu1 }
 0x358   : > { %v4188_v33 = vadd.f32 %v7126_v6, %v4187_v25 }
 0x35a   : > { %v4242_v43 = vadd.f32 %v4226_v17, %v4188_v33 }
 0x35c   : > { %v4258_v44 = vmax.f32 %v4242_v43, 0.0  ;;  %v4239_v43 = vld [vmem:[%s6256_s27 + $0x70] sm:$0xff] }
 0x35e   : > { %4274 = vst [vmem:[%s6270_s8 + $0x8] sm:$0xff] %v4258_v44 }
 0x35f   : > { %v4190_v48 = vpop.f32.mrf.mxu1 }
 0x360   : > { %v4191_v50 = vadd.f32 %v7126_v6, %v4190_v48 }
 0x362   : > { %v4243_v52 = vadd.f32 %v4227_v13, %v4191_v50 }
 0x364   : > { %v4259_v46 = vmax.f32 %v4243_v52, 0.0  ;;  %v4240_v52 = vld [vmem:[%s6256_s27 + $0x78] sm:$0xff] }
 0x366   : > { %4275 = vst [vmem:[%s6270_s8 + $0x10] sm:$0xff] %v4259_v46 }
 0x367   : > { %v4192_v36 = vpop.f32.mrf.mxu1 }
 0x368   : > { %v4193_v55 = vadd.f32 %v7126_v6, %v4192_v36 }
 0x36a   : > { %v4244_v58 = vadd.f32 %v4228_v47, %v4193_v55 }
 0x36c   : > { %v4260_v45 = vmax.f32 %v4244_v58, 0.0 }
 0x36e   : > { %4276 = vst [vmem:[%s6270_s8 + $0x18] sm:$0xff] %v4260_v45 }
 0x36f   : > { %v4195_v4 = vpop.f32.mrf.mxu1 }
 0x370   : > { %v4196_v61 = vadd.f32 %v7126_v6, %v4195_v4 }
 0x372   : > { %v4245_v62 = vadd.f32 %v4229_v56, %v4196_v61 }
 0x374   : > { %v4261_v0 = vmax.f32 %v4245_v62, 0.0 }
 0x376   : > { %4277 = vst [vmem:[%s6270_s8 + $0x20] sm:$0xff] %v4261_v0 }
 0x377   : > { %v4197_v41 = vpop.f32.mrf.mxu1 }
 0x378   : > { %v4198_v7 = vadd.f32 %v7126_v6, %v4197_v41 }
 0x37a   : > { %v4246_v54 = vadd.f32 %v4230_v10, %v4198_v7 }
 0x37c   : > { %v4262_v1 = vmax.f32 %v4246_v54, 0.0 }
 0x37e   : > { %4278 = vst [vmem:[%s6270_s8 + $0x28] sm:$0xff] %v4262_v1 }
 0x37f   : > { %v4200_v8 = vpop.f32.mrf.mxu1 }
 0x380   : > { %v4201_v27 = vadd.f32 %v7126_v6, %v4200_v8 }
 0x382   : > { %v4247_v12 = vadd.f32 %v4231_v28, %v4201_v27 }
 0x384   : > { %v4263_v42 = vmax.f32 %v4247_v12, 0.0 }
 0x386   : > { %4279 = vst [vmem:[%s6270_s8 + $0x30] sm:$0xff] %v4263_v42 }
 0x387   : > { %v4202_v3 = vpop.f32.mrf.mxu1 }
 0x388   : > { %v4203_v57 = vadd.f32 %v7126_v6, %v4202_v3 }
 0x38a   : > { %v4248_v20 = vadd.f32 %v4232_v15, %v4203_v57 }
 0x38c   : > { %v4264_v9 = vmax.f32 %v4248_v20, 0.0 }
 0x38e   : > { %4280 = vst [vmem:[%s6270_s8 + $0x38] sm:$0xff] %v4264_v9 }
 0x38f   : > { %v4205_v26 = vpop.f32.mrf.mxu1 }
 0x390   : > { %v4206_v59 = vadd.f32 %v7126_v6, %v4205_v26 }
 0x392   : > { %v4249_v21 = vadd.f32 %v4233_v16, %v4206_v59 }
 0x394   : > { %v4265_v51 = vmax.f32 %v4249_v21, 0.0 }
 0x396   : > { %4281 = vst [vmem:[%s6270_s8 + $0x40] sm:$0xff] %v4265_v51 }
 0x397   : > { %v4207_v29 = vpop.f32.mrf.mxu1 }
 0x398   : > { %v4208_v53 = vadd.f32 %v7126_v6, %v4207_v29 }
 0x39a   : > { %v4250_v32 = vadd.f32 %v4234_v30, %v4208_v53 }
 0x39c   : > { %v4266_v34 = vmax.f32 %v4250_v32, 0.0 }
 0x39e   : > { %4282 = vst [vmem:[%s6270_s8 + $0x48] sm:$0xff] %v4266_v34 }
 0x39f   : > { %v4210_v49 = vpop.f32.mrf.mxu1 }
 0x3a0   : > { %v4211_v63 = vadd.f32 %v7126_v6, %v4210_v49 }
 0x3a2   : > { %v4251_v14 = vadd.f32 %v4235_v22, %v4211_v63 }
 0x3a4   : > { %v4267_v23 = vmax.f32 %v4251_v14, 0.0 }
 0x3a6   : > { %4283 = vst [vmem:[%s6270_s8 + $0x50] sm:$0xff] %v4267_v23 }
 0x3a7   : > { %v4212_v31 = vpop.f32.mrf.mxu1 }
 0x3a8   : > { %v4213_v2 = vadd.f32 %v7126_v6, %v4212_v31 }
 0x3aa   : > { %v4252_v18 = vadd.f32 %v4236_v19, %v4213_v2 }
 0x3ac   : > { %v4268_v24 = vmax.f32 %v4252_v18, 0.0 }
 0x3ae   : > { %4284 = vst [vmem:[%s6270_s8 + $0x58] sm:$0xff] %v4268_v24 }
 0x3af   : > { %v4215_v35 = vpop.f32.mrf.mxu1 }
 0x3b0   : > { %v4216_v11 = vadd.f32 %v7126_v6, %v4215_v35 }
 0x3b2   : > { %v4253_v38 = vadd.f32 %v4237_v60, %v4216_v11 }
 0x3b4   : > { %v4269_v5 = vmax.f32 %v4253_v38, 0.0 }
 0x3b6   : > { %4285 = vst [vmem:[%s6270_s8 + $0x60] sm:$0xff] %v4269_v5 }
 0x3b7   : > { %v4217_v37 = vpop.f32.mrf.mxu1 }
 0x3b8   : > { %v4218_v40 = vadd.f32 %v7126_v6, %v4217_v37 }
 0x3ba   : > { %v4254_v25 = vadd.f32 %v4238_v39, %v4218_v40 }
 0x3bc   : > { %v4270_v17 = vmax.f32 %v4254_v25, 0.0 }
 0x3be   : > { %4286 = vst [vmem:[%s6270_s8 + $0x68] sm:$0xff] %v4270_v17 }
 0x3bf   : > { %v4220_v33 = vpop.f32.mrf.mxu1 }
 0x3c0   : > { %v4221_v44 = vadd.f32 %v7126_v6, %v4220_v33 }
 0x3c2   : > { %v4255_v48 = vadd.f32 %v4239_v43, %v4221_v44 }
 0x3c4   : > { %v4271_v13 = vmax.f32 %v4255_v48, 0.0 }
 0x3c6   : > { %4287 = vst [vmem:[%s6270_s8 + $0x70] sm:$0xff] %v4271_v13 }
 0x3c7   : > { %v4222_v50 = vpop.f32.mrf.mxu1 }
 0x3c8   : > { %v4223_v46 = vadd.f32 %v7126_v6, %v4222_v50 }
 0x3ca   : > { %v4256_v36 = vadd.f32 %v4240_v52, %v4223_v46 }
 0x3cc   : > { %v4272_v47 = vmax.f32 %v4256_v36, 0.0 }
 0x3ce   : > { %4288 = vst [vmem:[%s6270_s8 + $0x78] sm:$0xff] %v4272_v47 }
 0x3cf   : > { %5898 = shalt.err (!%p5895_p11)
}
 0x3d0   : > { %s6015_s11 = smov 128   ;;  %s6016_s8 = smov 8  }
 0x3d1   : > { %5588 = dma.vmem_to_hbm [thread:$0]  (%p6217_p3), %s4306_s21, 2048, %s4308_s6, %s4290_s24, %s6015_s11, %s6015_s11, %s6016_s8  }
 0x3d2 PF: > { %s7301_s4 = sld [smem:[#allocation19_spill]]  ;;  %p5618_p13 = scmp.ge.s32.totalorder %s6005_s15, 2 }
 0x3d4   : > { %p5608_p7 = pnand %p5618_p13, %p6132_p6 }
 0x3d6   : > { %p5609_p12 = pneg %p5608_p7 }
 0x3d8   : > { %s4322_s25 = sand.u32 1, %s7301_s4  }
 0x3d9   : > { %s4323_s30 = scalar_lea.sflag [#allocation6], %s4322_s25 }
 0x3da   : > { %5960 = dma.done.wait (%p5609_p12), %s4323_s30, 2048  }
 0x3db   : > { %5962 = vsyncadd (%p5609_p12), %s4323_s30, 4294965248  ;;  %s28_s15 = sadd.s32 1, %s6005_s15   ;;  %s7303_s0 = sld [smem:[#allocation24_spill]] }
 0x3dc   : > { %p25_p2 = scmp.ge.s32.totalorder %s28_s15, 6   ;;  %s7304_s27 = smov %s5969_s28 }
 0x3dd   : > { %s7305_s28 = smov %s5973_s29  ;;  %s7306_s29 = smov %s6234_s12 }
 0x3de   : > { %s7307_s30 = smov %s5981_s9  ;;  %s7308_s9 = smov %s5985_s10 }
 0x3df   : > { %s7309_s10 = smov %s6231_s20  ;;  %s7310_s11 = smov %s5997_s13 }
 0x3e0   : > { %s7311_s12 = smov %s6001_s14  ;;  %s7313_s14 = smov %s7319_s2 }
 0x3e1   : > { %s7312_s13 = smov %s7303_s0  ;;  %27 = sbr.rel (!%p25_p2) target bundleno = 21 (0x15), region = 131 }
 0x3e6   :  { %4329 = vsyncpa [#allocation5], 1 }
 0x3e7   :  { %4331 = vsyncpa [#allocation5 + $0x1], 1 }
 0x3e8   :  { %4332 = vsyncpa [#allocation8], 1 }
 0x3e9   :  { %4334 = vsyncpa [#allocation8 + $0x1], 1 }
 0x3ea   :  { %4335 = vsyncpa [#allocation11], 1 }
 0x3eb   :  { %4336 = vsyncpa [#allocation6], 1 }
 0x3ec   :  { %4338 = vsyncpa [#allocation6 + $0x1], 1 }

</bundles_post_ra>
